<compile_context>
chip_gen: v7x
topology: tpu7x:2x2x1
jax: 0.10.0
libtpu: 0.0.40
codegen_flags: <defaults>
</compile_context>

<pallas_src>
import numpy as np
import jax
import jax.numpy as jnp
from jax.experimental import pallas as pl
from jax.experimental.pallas import tpu as pltpu

_K = 4  # conv kernel size for every layer


# ---------------------------------------------------------------------------
# Fused kernel: the whole discriminator in one gridless pallas_call.
# Activation layout everywhere: rows = (sample, channel)  [sublane axis],
#                               cols = (h, w) spatial     [lane axis].
# ---------------------------------------------------------------------------
def _disc_fused_kernel(p1_ref, w1_ref, t2_ref, w2_ref, p2_ref,
                       t3_ref, w3_ref, p3_ref, w4_ref, g_ref, o_ref,
                       *, eps=1e-5, slope=0.2):
    f32 = jnp.float32
    bf16 = jnp.bfloat16

    def lrelu(v):
        return jnp.where(v >= 0.0, v, slope * v)

    def bn_lrelu(y, p_avg):
        # Training-mode BatchNorm (biased variance, gamma=1, beta=0) + LReLU.
        # p_avg[i, j] = 1/(N*M) iff rows i, j belong to the same channel, so a
        # single tiny matmul broadcasts the per-channel mean/var back to rows.
        rs = jnp.sum(y, axis=1, keepdims=True)                      # (N*C, 1)
        mean = jnp.dot(p_avg, rs, preferred_element_type=f32)       # (N*C, 1)
        cen = y - mean
        vs = jnp.sum(cen * cen, axis=1, keepdims=True)
        var = jnp.dot(p_avg, vs, preferred_element_type=f32)
        return lrelu(cen * jax.lax.rsqrt(var + eps))

    # ---- Layer 1: Conv(C->H, 4, 2, 1) + LeakyReLU ---------------------------
    # p1: bf16 im2col patches (N*16*C, 256), rows (n, kh, kw, c), cols (ho, wo)
    # w1: block-diag-over-batch weights (N*H, N*16*C), f32.
    y1 = jnp.dot(w1_ref[...], p1_ref[...].astype(f32),
                 preferred_element_type=f32)                        # (N*H, 256)
    y1 = lrelu(y1).astype(bf16)

    # ---- Layer 2: Conv(H->2H, 4, 2, 1) + BatchNorm + LeakyReLU --------------
    # For each of the 16 (kh, kw) taps: a batch-independent 0/1 selection dot
    # gathers the shifted window, then a block-diag weight dot accumulates.
    m2 = t2_ref.shape[2]                                            # 8*8 = 64
    acc2 = jnp.zeros((w2_ref.shape[1], m2), f32)                    # (N*2H, 64)
    for j in range(_K * _K):
        win = jnp.dot(y1, t2_ref[j], preferred_element_type=f32)    # (N*H, 64)
        acc2 = acc2 + jnp.dot(w2_ref[j], win, preferred_element_type=f32)
    y2 = bn_lrelu(acc2, p2_ref[...]).astype(bf16)                   # (N*2H, 64)

    # ---- Layer 3: Conv(2H->4H, 4, 2, 1) + BatchNorm + LeakyReLU -------------
    m3 = t3_ref.shape[2]                                            # 4*4 = 16
    acc3 = jnp.zeros((w3_ref.shape[1], m3), f32)                    # (N*4H, 16)
    for j in range(_K * _K):
        win = jnp.dot(y2, t3_ref[j], preferred_element_type=f32)    # (N*2H, 16)
        acc3 = acc3 + jnp.dot(w3_ref[j], win, preferred_element_type=f32)
    y3 = bn_lrelu(acc3, p3_ref[...])                                # (N*4H, 16)

    # ---- Layer 4: Conv(4H->1, 4, 1, 0) + Sigmoid, folded into the epilogue --
    prod = y3 * w4_ref[...]                                         # (N*4H, 16)
    s = jnp.sum(prod, axis=1, keepdims=True)                        # (N*4H, 1)
    logits = jnp.dot(g_ref[...], s, preferred_element_type=f32)     # (N, 1)
    o_ref[...] = (1.0 / (1.0 + jnp.exp(-logits))).astype(o_ref.dtype)


# ---------------------------------------------------------------------------
# Host-side preparation (runs once per parameter set / batch size).
# ---------------------------------------------------------------------------
def _im2col_layer1(x):
    """(N, C, 32, 32) -> bf16 (N*16*C, 256); rows (n, kh, kw, c), cols (ho, wo).

    Cheap XLA glue on the HBM input (which must be read from HBM anyway); a
    dense in-kernel selection matrix for this layer would be ~8 MiB.
    """
    n, c, h, w = x.shape
    ho, wo = h // 2, w // 2
    xp = jnp.pad(x, ((0, 0), (0, 0), (1, 1), (1, 1)))
    cols = [xp[:, :, kh:kh + 2 * ho:2, kw:kw + 2 * wo:2]
            for kh in range(_K) for kw in range(_K)]
    p = jnp.stack(cols, axis=1)                  # (N, 16, C, Ho, Wo)
    return p.reshape(n * 16 * c, ho * wo).astype(jnp.bfloat16)


def init_params(key, rgb_channel, hidden_dim):
    ks = jax.random.split(key, 4)

    def w(k, co, ci):
        # deterministic DCGAN-style init (N(0, 0.02)), bias=False everywhere
        return 0.02 * jax.random.normal(k, (co, ci, _K, _K), jnp.float32)

    return {
        "w1": w(ks[0], hidden_dim, rgb_channel),
        "w2": w(ks[1], hidden_dim * 2, hidden_dim),
        "w3": w(ks[2], hidden_dim * 4, hidden_dim * 2),
        "w4": w(ks[3], 1, hidden_dim * 4),
    }


def _make_tap_select(h_in, w_in, h_out, w_out, stride, pad):
    """(16, h_in*w_in, h_out*w_out) 0/1 tensors; slice j gathers tap (kh, kw)."""
    t = np.zeros((_K * _K, h_in * w_in, h_out * w_out), np.float32)
    for kh in range(_K):
        for kw in range(_K):
            j = kh * _K + kw
            for ho in range(h_out):
                for wo in range(w_out):
                    hi = stride * ho - pad + kh
                    wi = stride * wo - pad + kw
                    if 0 <= hi < h_in and 0 <= wi < w_in:
                        t[j, hi * w_in + wi, ho * w_out + wo] = 1.0
    return t


def _block_diag(w2d, n):
    """kron(I_n, w2d): rows/cols ordered (sample, channel)."""
    return np.kron(np.eye(n, dtype=np.float32), np.asarray(w2d, np.float32))


def _bn_avg_matrix(n, c, m):
    """(n*c, n*c): averages rows of the same channel over the N*M batch stats."""
    idx = np.arange(n * c) % c
    return (idx[:, None] == idx[None, :]).astype(np.float32) / float(n * m)


def prepare_params(raw, n_batch):
    h = raw["w1"].shape[0]
    rgb = raw["w1"].shape[1]
    n = n_batch
    assert 1 <= n <= 16, "single-block design targets small batches"
    assert h % 4 == 0, "hidden_dim should be a multiple of 4 for sublane tiling"

    w1 = np.asarray(raw["w1"], np.float32)
    w2 = np.asarray(raw["w2"], np.float32)
    w3 = np.asarray(raw["w3"], np.float32)
    w4 = np.asarray(raw["w4"], np.float32)

    # (Cout, Cin, kh, kw) -> (Cout, (kh, kw, Cin)), then block-diag over batch.
    w1m = np.transpose(w1, (0, 2, 3, 1)).reshape(h, _K * _K * rgb)
    w1bd = _block_diag(w1m, n)                                      # (N*H, N*16*C)

    # Per-tap block-diag weights for layers 2/3: (16, N*Cout, N*Cin).
    w2bd = np.stack([_block_diag(w2[:, :, kh, kw], n)
                     for kh in range(_K) for kw in range(_K)])      # (16, N*2H, N*H)
    w3bd = np.stack([_block_diag(w3[:, :, kh, kw], n)
                     for kh in range(_K) for kw in range(_K)])      # (16, N*4H, N*2H)

    # Layer 4: per-sample tiled weight slab + per-sample row-group summation.
    w4flat = w4[0].reshape(4 * h, _K * _K)                          # cols (h, w)
    w4t = np.tile(w4flat, (n, 1))                                   # (N*4H, 16)
    g = np.zeros((n, n * 4 * h), np.float32)
    for b in range(n):
        g[b, b * 4 * h:(b + 1) * 4 * h] = 1.0

    # Batch-independent per-tap im2col selection matrices (bf16: 0/1 exact).
    t2 = _make_tap_select(16, 16, 8, 8, 2, 1)                       # (16, 256, 64)
    t3 = _make_tap_select(8, 8, 4, 4, 2, 1)                         # (16, 64, 16)

    # Per-layer BatchNorm channel-averaging matrices.
    p2 = _bn_avg_matrix(n, 2 * h, 8 * 8)
    p3 = _bn_avg_matrix(n, 4 * h, 4 * 4)

    return {
        "w1bd": jnp.asarray(w1bd),
        "w2bd": jnp.asarray(w2bd),
        "w3bd": jnp.asarray(w3bd),
        "w4t": jnp.asarray(w4t),
        "g4": jnp.asarray(g),
        "t2": jnp.asarray(t2, jnp.bfloat16),
        "t3": jnp.asarray(t3, jnp.bfloat16),
        "p2": jnp.asarray(p2),
        "p3": jnp.asarray(p3),
    }


def disc_forward(x, kparams):
    n = x.shape[0]
    p1 = _im2col_layer1(x)
    vmem = pl.BlockSpec(memory_space=pltpu.MemorySpace.VMEM)
    out = pl.pallas_call(
        _disc_fused_kernel,
        out_shape=jax.ShapeDtypeStruct((n, 1), jnp.float32),
        in_specs=[vmem] * 10,
        out_specs=vmem,
    )(p1, kparams["w1bd"], kparams["t2"], kparams["w2bd"], kparams["p2"],
      kparams["t3"], kparams["w3bd"], kparams["p3"],
      kparams["w4t"], kparams["g4"])
    return out.reshape(-1)            # matches .view(-1, 1).squeeze(1)


# Pure-JAX reference (same math as the PyTorch module) used as a self-check.
def _reference_forward(x, raw):
    hi = jax.lax.Precision.HIGHEST

    def conv(a, w, stride, pad):
        return jax.lax.conv_general_dilated(
            a, w, (stride, stride), [(pad, pad), (pad, pad)],
            dimension_numbers=("NCHW", "OIHW", "NCHW"), precision=hi)

    def bn(a, eps=1e-5):
        mean = jnp.mean(a, axis=(0, 2, 3), keepdims=True)
        var = jnp.mean(jnp.square(a - mean), axis=(0, 2, 3), keepdims=True)
        return (a - mean) * jax.lax.rsqrt(var + eps)

    def lrelu(a):
        return jnp.where(a >= 0, a, 0.2 * a)

    y = lrelu(conv(x, raw["w1"], 2, 1))
    y = lrelu(bn(conv(y, raw["w2"], 2, 1)))
    y = lrelu(bn(conv(y, raw["w3"], 2, 1)))
    y = jax.nn.sigmoid(conv(y, raw["w4"], 1, 0))
    return y.reshape(-1)


if __name__ == "__main__":
    RGB_CHANNEL, HIDDEN_DIM_DISCR, RESOLUTION, BATCH = 3, 8, 32, 2

    key = jax.random.PRNGKey(0)
    kx, kp = jax.random.split(key)
    x = jax.random.normal(kx, (BATCH, RGB_CHANNEL, RESOLUTION, RESOLUTION),
                          jnp.float32)

    raw = init_params(kp, RGB_CHANNEL, HIDDEN_DIM_DISCR)
    kparams = prepare_params(raw, BATCH)

    out = jax.block_until_ready(jax.jit(disc_forward)(x, kparams))

    assert out.shape == (BATCH,), out.shape
    assert bool(jnp.all((out >= 0.0) & (out <= 1.0)))

    # Activations are bf16-rounded between layers (mixed-precision selection
    # dots), so compare against the f32 reference with a matching tolerance.
    ref = jax.block_until_ready(jax.jit(_reference_forward)(x, raw))
    assert bool(jnp.allclose(out, ref, atol=1e-2, rtol=1e-2)), (out, ref)

    print("KERNEL_OK")
</pallas_src>

<mosaic_0001>
module attributes {stable_mosaic.version = 11 : i64} {
  func.func @_disc_fused_kernel(%arg0: memref<96x256xbf16, #tpu.memory_space<vmem>>, %arg1: memref<16x96xf32, #tpu.memory_space<vmem>>, %arg2: memref<16x256x64xbf16, #tpu.memory_space<vmem>>, %arg3: memref<16x32x16xf32, #tpu.memory_space<vmem>>, %arg4: memref<32x32xf32, #tpu.memory_space<vmem>>, %arg5: memref<16x64x16xbf16, #tpu.memory_space<vmem>>, %arg6: memref<16x64x32xf32, #tpu.memory_space<vmem>>, %arg7: memref<64x64xf32, #tpu.memory_space<vmem>>, %arg8: memref<64x16xf32, #tpu.memory_space<vmem>>, %arg9: memref<2x64xf32, #tpu.memory_space<vmem>>, %arg10: memref<2x1xf32, #tpu.memory_space<vmem>>) attributes {dimension_semantics = [], scalar_prefetch = 0 : i64, scratch_operands = 0 : i64, tpu.core_type = #tpu.core_type<tc>} {
    %c0 = arith.constant 0 : index
    %c0_0 = arith.constant 0 : index
    %0 = vector.load %arg1[%c0, %c0_0] : memref<16x96xf32, #tpu.memory_space<vmem>>, vector<16x96xf32>
    %c0_1 = arith.constant 0 : index
    %c0_2 = arith.constant 0 : index
    %1 = vector.load %arg0[%c0_1, %c0_2] : memref<96x256xbf16, #tpu.memory_space<vmem>>, vector<96x256xbf16>
    %2 = arith.extf %1 : vector<96x256xbf16> to vector<96x256xf32>
    %cst = arith.constant dense<0.000000e+00> : vector<16x256xf32>
    %3 = tpu.matmul %0, %2, %cst {dimension_numbers = #tpu.dot_dimension_numbers<[1], [0], [0], [1], [0, 0, 1, 1], [], []>} : vector<16x96xf32>, vector<96x256xf32>, vector<16x256xf32> -> vector<16x256xf32>
    %cst_3 = arith.constant 0.000000e+00 : f32
    %4 = vector.broadcast %cst_3 : f32 to vector<16x256xf32>
    %5 = arith.cmpf oge, %3, %4 : vector<16x256xf32>
    %cst_4 = arith.constant 2.000000e-01 : f32
    %6 = vector.broadcast %cst_4 : f32 to vector<16x256xf32>
    %7 = arith.mulf %6, %3 : vector<16x256xf32>
    %8 = arith.select %5, %3, %7 : vector<16x256xi1>, vector<16x256xf32>
    %9 = arith.truncf %8 : vector<16x256xf32> to vector<16x256xbf16>
    %cst_5 = arith.constant 0.000000e+00 : f32
    %10 = vector.broadcast %cst_5 : f32 to vector<32x64xf32>
    %c0_6 = arith.constant 0 : index
    %c0_7 = arith.constant 0 : index
    %c0_8 = arith.constant 0 : index
    %11 = vector.load %arg2[%c0_6, %c0_7, %c0_8] : memref<16x256x64xbf16, #tpu.memory_space<vmem>>, vector<1x256x64xbf16>
    %12 = vector.shape_cast %11 : vector<1x256x64xbf16> to vector<256x64xbf16>
    %cst_9 = arith.constant dense<0.000000e+00> : vector<16x64xf32>
    %13 = tpu.matmul %9, %12, %cst_9 {dimension_numbers = #tpu.dot_dimension_numbers<[1], [0], [0], [1], [0, 0, 1, 1], [], []>} : vector<16x256xbf16>, vector<256x64xbf16>, vector<16x64xf32> -> vector<16x64xf32>
    %c0_10 = arith.constant 0 : index
    %c0_11 = arith.constant 0 : index
    %c0_12 = arith.constant 0 : index
    %14 = vector.load %arg3[%c0_10, %c0_11, %c0_12] : memref<16x32x16xf32, #tpu.memory_space<vmem>>, vector<1x32x16xf32>
    %15 = vector.shape_cast %14 : vector<1x32x16xf32> to vector<32x16xf32>
    %cst_13 = arith.constant dense<0.000000e+00> : vector<32x64xf32>
    %16 = tpu.matmul %15, %13, %cst_13 {dimension_numbers = #tpu.dot_dimension_numbers<[1], [0], [0], [1], [0, 0, 1, 1], [], []>} : vector<32x16xf32>, vector<16x64xf32>, vector<32x64xf32> -> vector<32x64xf32>
    %17 = arith.addf %10, %16 : vector<32x64xf32>
    %c1 = arith.constant 1 : index
    %c0_14 = arith.constant 0 : index
    %c0_15 = arith.constant 0 : index
    %18 = vector.load %arg2[%c1, %c0_14, %c0_15] : memref<16x256x64xbf16, #tpu.memory_space<vmem>>, vector<1x256x64xbf16>
    %19 = vector.shape_cast %18 : vector<1x256x64xbf16> to vector<256x64xbf16>
    %cst_16 = arith.constant dense<0.000000e+00> : vector<16x64xf32>
    %20 = tpu.matmul %9, %19, %cst_16 {dimension_numbers = #tpu.dot_dimension_numbers<[1], [0], [0], [1], [0, 0, 1, 1], [], []>} : vector<16x256xbf16>, vector<256x64xbf16>, vector<16x64xf32> -> vector<16x64xf32>
    %c1_17 = arith.constant 1 : index
    %c0_18 = arith.constant 0 : index
    %c0_19 = arith.constant 0 : index
    %21 = vector.load %arg3[%c1_17, %c0_18, %c0_19] : memref<16x32x16xf32, #tpu.memory_space<vmem>>, vector<1x32x16xf32>
    %22 = vector.shape_cast %21 : vector<1x32x16xf32> to vector<32x16xf32>
    %cst_20 = arith.constant dense<0.000000e+00> : vector<32x64xf32>
    %23 = tpu.matmul %22, %20, %cst_20 {dimension_numbers = #tpu.dot_dimension_numbers<[1], [0], [0], [1], [0, 0, 1, 1], [], []>} : vector<32x16xf32>, vector<16x64xf32>, vector<32x64xf32> -> vector<32x64xf32>
    %24 = arith.addf %17, %23 : vector<32x64xf32>
    %c2 = arith.constant 2 : index
    %c0_21 = arith.constant 0 : index
    %c0_22 = arith.constant 0 : index
    %25 = vector.load %arg2[%c2, %c0_21, %c0_22] : memref<16x256x64xbf16, #tpu.memory_space<vmem>>, vector<1x256x64xbf16>
    %26 = vector.shape_cast %25 : vector<1x256x64xbf16> to vector<256x64xbf16>
    %cst_23 = arith.constant dense<0.000000e+00> : vector<16x64xf32>
    %27 = tpu.matmul %9, %26, %cst_23 {dimension_numbers = #tpu.dot_dimension_numbers<[1], [0], [0], [1], [0, 0, 1, 1], [], []>} : vector<16x256xbf16>, vector<256x64xbf16>, vector<16x64xf32> -> vector<16x64xf32>
    %c2_24 = arith.constant 2 : index
    %c0_25 = arith.constant 0 : index
    %c0_26 = arith.constant 0 : index
    %28 = vector.load %arg3[%c2_24, %c0_25, %c0_26] : memref<16x32x16xf32, #tpu.memory_space<vmem>>, vector<1x32x16xf32>
    %29 = vector.shape_cast %28 : vector<1x32x16xf32> to vector<32x16xf32>
    %cst_27 = arith.constant dense<0.000000e+00> : vector<32x64xf32>
    %30 = tpu.matmul %29, %27, %cst_27 {dimension_numbers = #tpu.dot_dimension_numbers<[1], [0], [0], [1], [0, 0, 1, 1], [], []>} : vector<32x16xf32>, vector<16x64xf32>, vector<32x64xf32> -> vector<32x64xf32>
    %31 = arith.addf %24, %30 : vector<32x64xf32>
    %c3 = arith.constant 3 : index
    %c0_28 = arith.constant 0 : index
    %c0_29 = arith.constant 0 : index
    %32 = vector.load %arg2[%c3, %c0_28, %c0_29] : memref<16x256x64xbf16, #tpu.memory_space<vmem>>, vector<1x256x64xbf16>
    %33 = vector.shape_cast %32 : vector<1x256x64xbf16> to vector<256x64xbf16>
    %cst_30 = arith.constant dense<0.000000e+00> : vector<16x64xf32>
    %34 = tpu.matmul %9, %33, %cst_30 {dimension_numbers = #tpu.dot_dimension_numbers<[1], [0], [0], [1], [0, 0, 1, 1], [], []>} : vector<16x256xbf16>, vector<256x64xbf16>, vector<16x64xf32> -> vector<16x64xf32>
    %c3_31 = arith.constant 3 : index
    %c0_32 = arith.constant 0 : index
    %c0_33 = arith.constant 0 : index
    %35 = vector.load %arg3[%c3_31, %c0_32, %c0_33] : memref<16x32x16xf32, #tpu.memory_space<vmem>>, vector<1x32x16xf32>
    %36 = vector.shape_cast %35 : vector<1x32x16xf32> to vector<32x16xf32>
    %cst_34 = arith.constant dense<0.000000e+00> : vector<32x64xf32>
    %37 = tpu.matmul %36, %34, %cst_34 {dimension_numbers = #tpu.dot_dimension_numbers<[1], [0], [0], [1], [0, 0, 1, 1], [], []>} : vector<32x16xf32>, vector<16x64xf32>, vector<32x64xf32> -> vector<32x64xf32>
    %38 = arith.addf %31, %37 : vector<32x64xf32>
    %c4 = arith.constant 4 : index
    %c0_35 = arith.constant 0 : index
    %c0_36 = arith.constant 0 : index
    %39 = vector.load %arg2[%c4, %c0_35, %c0_36] : memref<16x256x64xbf16, #tpu.memory_space<vmem>>, vector<1x256x64xbf16>
    %40 = vector.shape_cast %39 : vector<1x256x64xbf16> to vector<256x64xbf16>
    %cst_37 = arith.constant dense<0.000000e+00> : vector<16x64xf32>
    %41 = tpu.matmul %9, %40, %cst_37 {dimension_numbers = #tpu.dot_dimension_numbers<[1], [0], [0], [1], [0, 0, 1, 1], [], []>} : vector<16x256xbf16>, vector<256x64xbf16>, vector<16x64xf32> -> vector<16x64xf32>
    %c4_38 = arith.constant 4 : index
    %c0_39 = arith.constant 0 : index
    %c0_40 = arith.constant 0 : index
    %42 = vector.load %arg3[%c4_38, %c0_39, %c0_40] : memref<16x32x16xf32, #tpu.memory_space<vmem>>, vector<1x32x16xf32>
    %43 = vector.shape_cast %42 : vector<1x32x16xf32> to vector<32x16xf32>
    %cst_41 = arith.constant dense<0.000000e+00> : vector<32x64xf32>
    %44 = tpu.matmul %43, %41, %cst_41 {dimension_numbers = #tpu.dot_dimension_numbers<[1], [0], [0], [1], [0, 0, 1, 1], [], []>} : vector<32x16xf32>, vector<16x64xf32>, vector<32x64xf32> -> vector<32x64xf32>
    %45 = arith.addf %38, %44 : vector<32x64xf32>
    %c5 = arith.constant 5 : index
    %c0_42 = arith.constant 0 : index
    %c0_43 = arith.constant 0 : index
    %46 = vector.load %arg2[%c5, %c0_42, %c0_43] : memref<16x256x64xbf16, #tpu.memory_space<vmem>>, vector<1x256x64xbf16>
    %47 = vector.shape_cast %46 : vector<1x256x64xbf16> to vector<256x64xbf16>
    %cst_44 = arith.constant dense<0.000000e+00> : vector<16x64xf32>
    %48 = tpu.matmul %9, %47, %cst_44 {dimension_numbers = #tpu.dot_dimension_numbers<[1], [0], [0], [1], [0, 0, 1, 1], [], []>} : vector<16x256xbf16>, vector<256x64xbf16>, vector<16x64xf32> -> vector<16x64xf32>
    %c5_45 = arith.constant 5 : index
    %c0_46 = arith.constant 0 : index
    %c0_47 = arith.constant 0 : index
    %49 = vector.load %arg3[%c5_45, %c0_46, %c0_47] : memref<16x32x16xf32, #tpu.memory_space<vmem>>, vector<1x32x16xf32>
    %50 = vector.shape_cast %49 : vector<1x32x16xf32> to vector<32x16xf32>
    %cst_48 = arith.constant dense<0.000000e+00> : vector<32x64xf32>
    %51 = tpu.matmul %50, %48, %cst_48 {dimension_numbers = #tpu.dot_dimension_numbers<[1], [0], [0], [1], [0, 0, 1, 1], [], []>} : vector<32x16xf32>, vector<16x64xf32>, vector<32x64xf32> -> vector<32x64xf32>
    %52 = arith.addf %45, %51 : vector<32x64xf32>
    %c6 = arith.constant 6 : index
    %c0_49 = arith.constant 0 : index
    %c0_50 = arith.constant 0 : index
    %53 = vector.load %arg2[%c6, %c0_49, %c0_50] : memref<16x256x64xbf16, #tpu.memory_space<vmem>>, vector<1x256x64xbf16>
    %54 = vector.shape_cast %53 : vector<1x256x64xbf16> to vector<256x64xbf16>
    %cst_51 = arith.constant dense<0.000000e+00> : vector<16x64xf32>
    %55 = tpu.matmul %9, %54, %cst_51 {dimension_numbers = #tpu.dot_dimension_numbers<[1], [0], [0], [1], [0, 0, 1, 1], [], []>} : vector<16x256xbf16>, vector<256x64xbf16>, vector<16x64xf32> -> vector<16x64xf32>
    %c6_52 = arith.constant 6 : index
    %c0_53 = arith.constant 0 : index
    %c0_54 = arith.constant 0 : index
    %56 = vector.load %arg3[%c6_52, %c0_53, %c0_54] : memref<16x32x16xf32, #tpu.memory_space<vmem>>, vector<1x32x16xf32>
    %57 = vector.shape_cast %56 : vector<1x32x16xf32> to vector<32x16xf32>
    %cst_55 = arith.constant dense<0.000000e+00> : vector<32x64xf32>
    %58 = tpu.matmul %57, %55, %cst_55 {dimension_numbers = #tpu.dot_dimension_numbers<[1], [0], [0], [1], [0, 0, 1, 1], [], []>} : vector<32x16xf32>, vector<16x64xf32>, vector<32x64xf32> -> vector<32x64xf32>
    %59 = arith.addf %52, %58 : vector<32x64xf32>
    %c7 = arith.constant 7 : index
    %c0_56 = arith.constant 0 : index
    %c0_57 = arith.constant 0 : index
    %60 = vector.load %arg2[%c7, %c0_56, %c0_57] : memref<16x256x64xbf16, #tpu.memory_space<vmem>>, vector<1x256x64xbf16>
    %61 = vector.shape_cast %60 : vector<1x256x64xbf16> to vector<256x64xbf16>
    %cst_58 = arith.constant dense<0.000000e+00> : vector<16x64xf32>
    %62 = tpu.matmul %9, %61, %cst_58 {dimension_numbers = #tpu.dot_dimension_numbers<[1], [0], [0], [1], [0, 0, 1, 1], [], []>} : vector<16x256xbf16>, vector<256x64xbf16>, vector<16x64xf32> -> vector<16x64xf32>
    %c7_59 = arith.constant 7 : index
    %c0_60 = arith.constant 0 : index
    %c0_61 = arith.constant 0 : index
    %63 = vector.load %arg3[%c7_59, %c0_60, %c0_61] : memref<16x32x16xf32, #tpu.memory_space<vmem>>, vector<1x32x16xf32>
    %64 = vector.shape_cast %63 : vector<1x32x16xf32> to vector<32x16xf32>
    %cst_62 = arith.constant dense<0.000000e+00> : vector<32x64xf32>
    %65 = tpu.matmul %64, %62, %cst_62 {dimension_numbers = #tpu.dot_dimension_numbers<[1], [0], [0], [1], [0, 0, 1, 1], [], []>} : vector<32x16xf32>, vector<16x64xf32>, vector<32x64xf32> -> vector<32x64xf32>
    %66 = arith.addf %59, %65 : vector<32x64xf32>
    %c8 = arith.constant 8 : index
    %c0_63 = arith.constant 0 : index
    %c0_64 = arith.constant 0 : index
    %67 = vector.load %arg2[%c8, %c0_63, %c0_64] : memref<16x256x64xbf16, #tpu.memory_space<vmem>>, vector<1x256x64xbf16>
    %68 = vector.shape_cast %67 : vector<1x256x64xbf16> to vector<256x64xbf16>
    %cst_65 = arith.constant dense<0.000000e+00> : vector<16x64xf32>
    %69 = tpu.matmul %9, %68, %cst_65 {dimension_numbers = #tpu.dot_dimension_numbers<[1], [0], [0], [1], [0, 0, 1, 1], [], []>} : vector<16x256xbf16>, vector<256x64xbf16>, vector<16x64xf32> -> vector<16x64xf32>
    %c8_66 = arith.constant 8 : index
    %c0_67 = arith.constant 0 : index
    %c0_68 = arith.constant 0 : index
    %70 = vector.load %arg3[%c8_66, %c0_67, %c0_68] : memref<16x32x16xf32, #tpu.memory_space<vmem>>, vector<1x32x16xf32>
    %71 = vector.shape_cast %70 : vector<1x32x16xf32> to vector<32x16xf32>
    %cst_69 = arith.constant dense<0.000000e+00> : vector<32x64xf32>
    %72 = tpu.matmul %71, %69, %cst_69 {dimension_numbers = #tpu.dot_dimension_numbers<[1], [0], [0], [1], [0, 0, 1, 1], [], []>} : vector<32x16xf32>, vector<16x64xf32>, vector<32x64xf32> -> vector<32x64xf32>
    %73 = arith.addf %66, %72 : vector<32x64xf32>
    %c9 = arith.constant 9 : index
    %c0_70 = arith.constant 0 : index
    %c0_71 = arith.constant 0 : index
    %74 = vector.load %arg2[%c9, %c0_70, %c0_71] : memref<16x256x64xbf16, #tpu.memory_space<vmem>>, vector<1x256x64xbf16>
    %75 = vector.shape_cast %74 : vector<1x256x64xbf16> to vector<256x64xbf16>
    %cst_72 = arith.constant dense<0.000000e+00> : vector<16x64xf32>
    %76 = tpu.matmul %9, %75, %cst_72 {dimension_numbers = #tpu.dot_dimension_numbers<[1], [0], [0], [1], [0, 0, 1, 1], [], []>} : vector<16x256xbf16>, vector<256x64xbf16>, vector<16x64xf32> -> vector<16x64xf32>
    %c9_73 = arith.constant 9 : index
    %c0_74 = arith.constant 0 : index
    %c0_75 = arith.constant 0 : index
    %77 = vector.load %arg3[%c9_73, %c0_74, %c0_75] : memref<16x32x16xf32, #tpu.memory_space<vmem>>, vector<1x32x16xf32>
    %78 = vector.shape_cast %77 : vector<1x32x16xf32> to vector<32x16xf32>
    %cst_76 = arith.constant dense<0.000000e+00> : vector<32x64xf32>
    %79 = tpu.matmul %78, %76, %cst_76 {dimension_numbers = #tpu.dot_dimension_numbers<[1], [0], [0], [1], [0, 0, 1, 1], [], []>} : vector<32x16xf32>, vector<16x64xf32>, vector<32x64xf32> -> vector<32x64xf32>
    %80 = arith.addf %73, %79 : vector<32x64xf32>
    %c10 = arith.constant 10 : index
    %c0_77 = arith.constant 0 : index
    %c0_78 = arith.constant 0 : index
    %81 = vector.load %arg2[%c10, %c0_77, %c0_78] : memref<16x256x64xbf16, #tpu.memory_space<vmem>>, vector<1x256x64xbf16>
    %82 = vector.shape_cast %81 : vector<1x256x64xbf16> to vector<256x64xbf16>
    %cst_79 = arith.constant dense<0.000000e+00> : vector<16x64xf32>
    %83 = tpu.matmul %9, %82, %cst_79 {dimension_numbers = #tpu.dot_dimension_numbers<[1], [0], [0], [1], [0, 0, 1, 1], [], []>} : vector<16x256xbf16>, vector<256x64xbf16>, vector<16x64xf32> -> vector<16x64xf32>
    %c10_80 = arith.constant 10 : index
    %c0_81 = arith.constant 0 : index
    %c0_82 = arith.constant 0 : index
    %84 = vector.load %arg3[%c10_80, %c0_81, %c0_82] : memref<16x32x16xf32, #tpu.memory_space<vmem>>, vector<1x32x16xf32>
    %85 = vector.shape_cast %84 : vector<1x32x16xf32> to vector<32x16xf32>
    %cst_83 = arith.constant dense<0.000000e+00> : vector<32x64xf32>
    %86 = tpu.matmul %85, %83, %cst_83 {dimension_numbers = #tpu.dot_dimension_numbers<[1], [0], [0], [1], [0, 0, 1, 1], [], []>} : vector<32x16xf32>, vector<16x64xf32>, vector<32x64xf32> -> vector<32x64xf32>
    %87 = arith.addf %80, %86 : vector<32x64xf32>
    %c11 = arith.constant 11 : index
    %c0_84 = arith.constant 0 : index
    %c0_85 = arith.constant 0 : index
    %88 = vector.load %arg2[%c11, %c0_84, %c0_85] : memref<16x256x64xbf16, #tpu.memory_space<vmem>>, vector<1x256x64xbf16>
    %89 = vector.shape_cast %88 : vector<1x256x64xbf16> to vector<256x64xbf16>
    %cst_86 = arith.constant dense<0.000000e+00> : vector<16x64xf32>
    %90 = tpu.matmul %9, %89, %cst_86 {dimension_numbers = #tpu.dot_dimension_numbers<[1], [0], [0], [1], [0, 0, 1, 1], [], []>} : vector<16x256xbf16>, vector<256x64xbf16>, vector<16x64xf32> -> vector<16x64xf32>
    %c11_87 = arith.constant 11 : index
    %c0_88 = arith.constant 0 : index
    %c0_89 = arith.constant 0 : index
    %91 = vector.load %arg3[%c11_87, %c0_88, %c0_89] : memref<16x32x16xf32, #tpu.memory_space<vmem>>, vector<1x32x16xf32>
    %92 = vector.shape_cast %91 : vector<1x32x16xf32> to vector<32x16xf32>
    %cst_90 = arith.constant dense<0.000000e+00> : vector<32x64xf32>
    %93 = tpu.matmul %92, %90, %cst_90 {dimension_numbers = #tpu.dot_dimension_numbers<[1], [0], [0], [1], [0, 0, 1, 1], [], []>} : vector<32x16xf32>, vector<16x64xf32>, vector<32x64xf32> -> vector<32x64xf32>
    %94 = arith.addf %87, %93 : vector<32x64xf32>
    %c12 = arith.constant 12 : index
    %c0_91 = arith.constant 0 : index
    %c0_92 = arith.constant 0 : index
    %95 = vector.load %arg2[%c12, %c0_91, %c0_92] : memref<16x256x64xbf16, #tpu.memory_space<vmem>>, vector<1x256x64xbf16>
    %96 = vector.shape_cast %95 : vector<1x256x64xbf16> to vector<256x64xbf16>
    %cst_93 = arith.constant dense<0.000000e+00> : vector<16x64xf32>
    %97 = tpu.matmul %9, %96, %cst_93 {dimension_numbers = #tpu.dot_dimension_numbers<[1], [0], [0], [1], [0, 0, 1, 1], [], []>} : vector<16x256xbf16>, vector<256x64xbf16>, vector<16x64xf32> -> vector<16x64xf32>
    %c12_94 = arith.constant 12 : index
    %c0_95 = arith.constant 0 : index
    %c0_96 = arith.constant 0 : index
    %98 = vector.load %arg3[%c12_94, %c0_95, %c0_96] : memref<16x32x16xf32, #tpu.memory_space<vmem>>, vector<1x32x16xf32>
    %99 = vector.shape_cast %98 : vector<1x32x16xf32> to vector<32x16xf32>
    %cst_97 = arith.constant dense<0.000000e+00> : vector<32x64xf32>
    %100 = tpu.matmul %99, %97, %cst_97 {dimension_numbers = #tpu.dot_dimension_numbers<[1], [0], [0], [1], [0, 0, 1, 1], [], []>} : vector<32x16xf32>, vector<16x64xf32>, vector<32x64xf32> -> vector<32x64xf32>
    %101 = arith.addf %94, %100 : vector<32x64xf32>
    %c13 = arith.constant 13 : index
    %c0_98 = arith.constant 0 : index
    %c0_99 = arith.constant 0 : index
    %102 = vector.load %arg2[%c13, %c0_98, %c0_99] : memref<16x256x64xbf16, #tpu.memory_space<vmem>>, vector<1x256x64xbf16>
    %103 = vector.shape_cast %102 : vector<1x256x64xbf16> to vector<256x64xbf16>
    %cst_100 = arith.constant dense<0.000000e+00> : vector<16x64xf32>
    %104 = tpu.matmul %9, %103, %cst_100 {dimension_numbers = #tpu.dot_dimension_numbers<[1], [0], [0], [1], [0, 0, 1, 1], [], []>} : vector<16x256xbf16>, vector<256x64xbf16>, vector<16x64xf32> -> vector<16x64xf32>
    %c13_101 = arith.constant 13 : index
    %c0_102 = arith.constant 0 : index
    %c0_103 = arith.constant 0 : index
    %105 = vector.load %arg3[%c13_101, %c0_102, %c0_103] : memref<16x32x16xf32, #tpu.memory_space<vmem>>, vector<1x32x16xf32>
    %106 = vector.shape_cast %105 : vector<1x32x16xf32> to vector<32x16xf32>
    %cst_104 = arith.constant dense<0.000000e+00> : vector<32x64xf32>
    %107 = tpu.matmul %106, %104, %cst_104 {dimension_numbers = #tpu.dot_dimension_numbers<[1], [0], [0], [1], [0, 0, 1, 1], [], []>} : vector<32x16xf32>, vector<16x64xf32>, vector<32x64xf32> -> vector<32x64xf32>
    %108 = arith.addf %101, %107 : vector<32x64xf32>
    %c14 = arith.constant 14 : index
    %c0_105 = arith.constant 0 : index
    %c0_106 = arith.constant 0 : index
    %109 = vector.load %arg2[%c14, %c0_105, %c0_106] : memref<16x256x64xbf16, #tpu.memory_space<vmem>>, vector<1x256x64xbf16>
    %110 = vector.shape_cast %109 : vector<1x256x64xbf16> to vector<256x64xbf16>
    %cst_107 = arith.constant dense<0.000000e+00> : vector<16x64xf32>
    %111 = tpu.matmul %9, %110, %cst_107 {dimension_numbers = #tpu.dot_dimension_numbers<[1], [0], [0], [1], [0, 0, 1, 1], [], []>} : vector<16x256xbf16>, vector<256x64xbf16>, vector<16x64xf32> -> vector<16x64xf32>
    %c14_108 = arith.constant 14 : index
    %c0_109 = arith.constant 0 : index
    %c0_110 = arith.constant 0 : index
    %112 = vector.load %arg3[%c14_108, %c0_109, %c0_110] : memref<16x32x16xf32, #tpu.memory_space<vmem>>, vector<1x32x16xf32>
    %113 = vector.shape_cast %112 : vector<1x32x16xf32> to vector<32x16xf32>
    %cst_111 = arith.constant dense<0.000000e+00> : vector<32x64xf32>
    %114 = tpu.matmul %113, %111, %cst_111 {dimension_numbers = #tpu.dot_dimension_numbers<[1], [0], [0], [1], [0, 0, 1, 1], [], []>} : vector<32x16xf32>, vector<16x64xf32>, vector<32x64xf32> -> vector<32x64xf32>
    %115 = arith.addf %108, %114 : vector<32x64xf32>
    %c15 = arith.constant 15 : index
    %c0_112 = arith.constant 0 : index
    %c0_113 = arith.constant 0 : index
    %116 = vector.load %arg2[%c15, %c0_112, %c0_113] : memref<16x256x64xbf16, #tpu.memory_space<vmem>>, vector<1x256x64xbf16>
    %117 = vector.shape_cast %116 : vector<1x256x64xbf16> to vector<256x64xbf16>
    %cst_114 = arith.constant dense<0.000000e+00> : vector<16x64xf32>
    %118 = tpu.matmul %9, %117, %cst_114 {dimension_numbers = #tpu.dot_dimension_numbers<[1], [0], [0], [1], [0, 0, 1, 1], [], []>} : vector<16x256xbf16>, vector<256x64xbf16>, vector<16x64xf32> -> vector<16x64xf32>
    %c15_115 = arith.constant 15 : index
    %c0_116 = arith.constant 0 : index
    %c0_117 = arith.constant 0 : index
    %119 = vector.load %arg3[%c15_115, %c0_116, %c0_117] : memref<16x32x16xf32, #tpu.memory_space<vmem>>, vector<1x32x16xf32>
    %120 = vector.shape_cast %119 : vector<1x32x16xf32> to vector<32x16xf32>
    %cst_118 = arith.constant dense<0.000000e+00> : vector<32x64xf32>
    %121 = tpu.matmul %120, %118, %cst_118 {dimension_numbers = #tpu.dot_dimension_numbers<[1], [0], [0], [1], [0, 0, 1, 1], [], []>} : vector<32x16xf32>, vector<16x64xf32>, vector<32x64xf32> -> vector<32x64xf32>
    %122 = arith.addf %115, %121 : vector<32x64xf32>
    %c0_119 = arith.constant 0 : index
    %c0_120 = arith.constant 0 : index
    %123 = vector.load %arg4[%c0_119, %c0_120] : memref<32x32xf32, #tpu.memory_space<vmem>>, vector<32x32xf32>
    %cst_121 = arith.constant dense<0.000000e+00> : vector<32xf32>
    %124 = vector.multi_reduction <add>, %122, %cst_121 [1] : vector<32x64xf32> to vector<32xf32>
    %125 = vector.shape_cast %124 : vector<32xf32> to vector<32x1xf32>
    %cst_122 = arith.constant dense<0.000000e+00> : vector<32x1xf32>
    %126 = tpu.matmul %123, %125, %cst_122 {dimension_numbers = #tpu.dot_dimension_numbers<[1], [0], [0], [1], [0, 0, 1, 1], [], []>} : vector<32x32xf32>, vector<32x1xf32>, vector<32x1xf32> -> vector<32x1xf32>
    %127 = vector.broadcast %126 : vector<32x1xf32> to vector<32x64xf32>
    %128 = arith.subf %122, %127 : vector<32x64xf32>
    %129 = arith.mulf %128, %128 : vector<32x64xf32>
    %cst_123 = arith.constant dense<0.000000e+00> : vector<32xf32>
    %130 = vector.multi_reduction <add>, %129, %cst_123 [1] : vector<32x64xf32> to vector<32xf32>
    %131 = vector.shape_cast %130 : vector<32xf32> to vector<32x1xf32>
    %cst_124 = arith.constant dense<0.000000e+00> : vector<32x1xf32>
    %132 = tpu.matmul %123, %131, %cst_124 {dimension_numbers = #tpu.dot_dimension_numbers<[1], [0], [0], [1], [0, 0, 1, 1], [], []>} : vector<32x32xf32>, vector<32x1xf32>, vector<32x1xf32> -> vector<32x1xf32>
    %cst_125 = arith.constant 9.99999974E-6 : f32
    %133 = vector.broadcast %cst_125 : f32 to vector<32x1xf32>
    %134 = arith.addf %132, %133 : vector<32x1xf32>
    %135 = math.rsqrt %134 : vector<32x1xf32>
    %136 = vector.broadcast %135 : vector<32x1xf32> to vector<32x64xf32>
    %137 = arith.mulf %128, %136 : vector<32x64xf32>
    %cst_126 = arith.constant 0.000000e+00 : f32
    %138 = vector.broadcast %cst_126 : f32 to vector<32x64xf32>
    %139 = arith.cmpf oge, %137, %138 : vector<32x64xf32>
    %cst_127 = arith.constant 2.000000e-01 : f32
    %140 = vector.broadcast %cst_127 : f32 to vector<32x64xf32>
    %141 = arith.mulf %140, %137 : vector<32x64xf32>
    %142 = arith.select %139, %137, %141 : vector<32x64xi1>, vector<32x64xf32>
    %143 = arith.truncf %142 : vector<32x64xf32> to vector<32x64xbf16>
    %cst_128 = arith.constant 0.000000e+00 : f32
    %144 = vector.broadcast %cst_128 : f32 to vector<64x16xf32>
    %c0_129 = arith.constant 0 : index
    %c0_130 = arith.constant 0 : index
    %c0_131 = arith.constant 0 : index
    %145 = vector.load %arg5[%c0_129, %c0_130, %c0_131] : memref<16x64x16xbf16, #tpu.memory_space<vmem>>, vector<1x64x16xbf16>
    %146 = vector.shape_cast %145 : vector<1x64x16xbf16> to vector<64x16xbf16>
    %cst_132 = arith.constant dense<0.000000e+00> : vector<32x16xf32>
    %147 = tpu.matmul %143, %146, %cst_132 {dimension_numbers = #tpu.dot_dimension_numbers<[1], [0], [0], [1], [0, 0, 1, 1], [], []>} : vector<32x64xbf16>, vector<64x16xbf16>, vector<32x16xf32> -> vector<32x16xf32>
    %c0_133 = arith.constant 0 : index
    %c0_134 = arith.constant 0 : index
    %c0_135 = arith.constant 0 : index
    %148 = vector.load %arg6[%c0_133, %c0_134, %c0_135] : memref<16x64x32xf32, #tpu.memory_space<vmem>>, vector<1x64x32xf32>
    %149 = vector.shape_cast %148 : vector<1x64x32xf32> to vector<64x32xf32>
    %cst_136 = arith.constant dense<0.000000e+00> : vector<64x16xf32>
    %150 = tpu.matmul %149, %147, %cst_136 {dimension_numbers = #tpu.dot_dimension_numbers<[1], [0], [0], [1], [0, 0, 1, 1], [], []>} : vector<64x32xf32>, vector<32x16xf32>, vector<64x16xf32> -> vector<64x16xf32>
    %151 = arith.addf %144, %150 : vector<64x16xf32>
    %c1_137 = arith.constant 1 : index
    %c0_138 = arith.constant 0 : index
    %c0_139 = arith.constant 0 : index
    %152 = vector.load %arg5[%c1_137, %c0_138, %c0_139] : memref<16x64x16xbf16, #tpu.memory_space<vmem>>, vector<1x64x16xbf16>
    %153 = vector.shape_cast %152 : vector<1x64x16xbf16> to vector<64x16xbf16>
    %cst_140 = arith.constant dense<0.000000e+00> : vector<32x16xf32>
    %154 = tpu.matmul %143, %153, %cst_140 {dimension_numbers = #tpu.dot_dimension_numbers<[1], [0], [0], [1], [0, 0, 1, 1], [], []>} : vector<32x64xbf16>, vector<64x16xbf16>, vector<32x16xf32> -> vector<32x16xf32>
    %c1_141 = arith.constant 1 : index
    %c0_142 = arith.constant 0 : index
    %c0_143 = arith.constant 0 : index
    %155 = vector.load %arg6[%c1_141, %c0_142, %c0_143] : memref<16x64x32xf32, #tpu.memory_space<vmem>>, vector<1x64x32xf32>
    %156 = vector.shape_cast %155 : vector<1x64x32xf32> to vector<64x32xf32>
    %cst_144 = arith.constant dense<0.000000e+00> : vector<64x16xf32>
    %157 = tpu.matmul %156, %154, %cst_144 {dimension_numbers = #tpu.dot_dimension_numbers<[1], [0], [0], [1], [0, 0, 1, 1], [], []>} : vector<64x32xf32>, vector<32x16xf32>, vector<64x16xf32> -> vector<64x16xf32>
    %158 = arith.addf %151, %157 : vector<64x16xf32>
    %c2_145 = arith.constant 2 : index
    %c0_146 = arith.constant 0 : index
    %c0_147 = arith.constant 0 : index
    %159 = vector.load %arg5[%c2_145, %c0_146, %c0_147] : memref<16x64x16xbf16, #tpu.memory_space<vmem>>, vector<1x64x16xbf16>
    %160 = vector.shape_cast %159 : vector<1x64x16xbf16> to vector<64x16xbf16>
    %cst_148 = arith.constant dense<0.000000e+00> : vector<32x16xf32>
    %161 = tpu.matmul %143, %160, %cst_148 {dimension_numbers = #tpu.dot_dimension_numbers<[1], [0], [0], [1], [0, 0, 1, 1], [], []>} : vector<32x64xbf16>, vector<64x16xbf16>, vector<32x16xf32> -> vector<32x16xf32>
    %c2_149 = arith.constant 2 : index
    %c0_150 = arith.constant 0 : index
    %c0_151 = arith.constant 0 : index
    %162 = vector.load %arg6[%c2_149, %c0_150, %c0_151] : memref<16x64x32xf32, #tpu.memory_space<vmem>>, vector<1x64x32xf32>
    %163 = vector.shape_cast %162 : vector<1x64x32xf32> to vector<64x32xf32>
    %cst_152 = arith.constant dense<0.000000e+00> : vector<64x16xf32>
    %164 = tpu.matmul %163, %161, %cst_152 {dimension_numbers = #tpu.dot_dimension_numbers<[1], [0], [0], [1], [0, 0, 1, 1], [], []>} : vector<64x32xf32>, vector<32x16xf32>, vector<64x16xf32> -> vector<64x16xf32>
    %165 = arith.addf %158, %164 : vector<64x16xf32>
    %c3_153 = arith.constant 3 : index
    %c0_154 = arith.constant 0 : index
    %c0_155 = arith.constant 0 : index
    %166 = vector.load %arg5[%c3_153, %c0_154, %c0_155] : memref<16x64x16xbf16, #tpu.memory_space<vmem>>, vector<1x64x16xbf16>
    %167 = vector.shape_cast %166 : vector<1x64x16xbf16> to vector<64x16xbf16>
    %cst_156 = arith.constant dense<0.000000e+00> : vector<32x16xf32>
    %168 = tpu.matmul %143, %167, %cst_156 {dimension_numbers = #tpu.dot_dimension_numbers<[1], [0], [0], [1], [0, 0, 1, 1], [], []>} : vector<32x64xbf16>, vector<64x16xbf16>, vector<32x16xf32> -> vector<32x16xf32>
    %c3_157 = arith.constant 3 : index
    %c0_158 = arith.constant 0 : index
    %c0_159 = arith.constant 0 : index
    %169 = vector.load %arg6[%c3_157, %c0_158, %c0_159] : memref<16x64x32xf32, #tpu.memory_space<vmem>>, vector<1x64x32xf32>
    %170 = vector.shape_cast %169 : vector<1x64x32xf32> to vector<64x32xf32>
    %cst_160 = arith.constant dense<0.000000e+00> : vector<64x16xf32>
    %171 = tpu.matmul %170, %168, %cst_160 {dimension_numbers = #tpu.dot_dimension_numbers<[1], [0], [0], [1], [0, 0, 1, 1], [], []>} : vector<64x32xf32>, vector<32x16xf32>, vector<64x16xf32> -> vector<64x16xf32>
    %172 = arith.addf %165, %171 : vector<64x16xf32>
    %c4_161 = arith.constant 4 : index
    %c0_162 = arith.constant 0 : index
    %c0_163 = arith.constant 0 : index
    %173 = vector.load %arg5[%c4_161, %c0_162, %c0_163] : memref<16x64x16xbf16, #tpu.memory_space<vmem>>, vector<1x64x16xbf16>
    %174 = vector.shape_cast %173 : vector<1x64x16xbf16> to vector<64x16xbf16>
    %cst_164 = arith.constant dense<0.000000e+00> : vector<32x16xf32>
    %175 = tpu.matmul %143, %174, %cst_164 {dimension_numbers = #tpu.dot_dimension_numbers<[1], [0], [0], [1], [0, 0, 1, 1], [], []>} : vector<32x64xbf16>, vector<64x16xbf16>, vector<32x16xf32> -> vector<32x16xf32>
    %c4_165 = arith.constant 4 : index
    %c0_166 = arith.constant 0 : index
    %c0_167 = arith.constant 0 : index
    %176 = vector.load %arg6[%c4_165, %c0_166, %c0_167] : memref<16x64x32xf32, #tpu.memory_space<vmem>>, vector<1x64x32xf32>
    %177 = vector.shape_cast %176 : vector<1x64x32xf32> to vector<64x32xf32>
    %cst_168 = arith.constant dense<0.000000e+00> : vector<64x16xf32>
    %178 = tpu.matmul %177, %175, %cst_168 {dimension_numbers = #tpu.dot_dimension_numbers<[1], [0], [0], [1], [0, 0, 1, 1], [], []>} : vector<64x32xf32>, vector<32x16xf32>, vector<64x16xf32> -> vector<64x16xf32>
    %179 = arith.addf %172, %178 : vector<64x16xf32>
    %c5_169 = arith.constant 5 : index
    %c0_170 = arith.constant 0 : index
    %c0_171 = arith.constant 0 : index
    %180 = vector.load %arg5[%c5_169, %c0_170, %c0_171] : memref<16x64x16xbf16, #tpu.memory_space<vmem>>, vector<1x64x16xbf16>
    %181 = vector.shape_cast %180 : vector<1x64x16xbf16> to vector<64x16xbf16>
    %cst_172 = arith.constant dense<0.000000e+00> : vector<32x16xf32>
    %182 = tpu.matmul %143, %181, %cst_172 {dimension_numbers = #tpu.dot_dimension_numbers<[1], [0], [0], [1], [0, 0, 1, 1], [], []>} : vector<32x64xbf16>, vector<64x16xbf16>, vector<32x16xf32> -> vector<32x16xf32>
    %c5_173 = arith.constant 5 : index
    %c0_174 = arith.constant 0 : index
    %c0_175 = arith.constant 0 : index
    %183 = vector.load %arg6[%c5_173, %c0_174, %c0_175] : memref<16x64x32xf32, #tpu.memory_space<vmem>>, vector<1x64x32xf32>
    %184 = vector.shape_cast %183 : vector<1x64x32xf32> to vector<64x32xf32>
    %cst_176 = arith.constant dense<0.000000e+00> : vector<64x16xf32>
    %185 = tpu.matmul %184, %182, %cst_176 {dimension_numbers = #tpu.dot_dimension_numbers<[1], [0], [0], [1], [0, 0, 1, 1], [], []>} : vector<64x32xf32>, vector<32x16xf32>, vector<64x16xf32> -> vector<64x16xf32>
    %186 = arith.addf %179, %185 : vector<64x16xf32>
    %c6_177 = arith.constant 6 : index
    %c0_178 = arith.constant 0 : index
    %c0_179 = arith.constant 0 : index
    %187 = vector.load %arg5[%c6_177, %c0_178, %c0_179] : memref<16x64x16xbf16, #tpu.memory_space<vmem>>, vector<1x64x16xbf16>
    %188 = vector.shape_cast %187 : vector<1x64x16xbf16> to vector<64x16xbf16>
    %cst_180 = arith.constant dense<0.000000e+00> : vector<32x16xf32>
    %189 = tpu.matmul %143, %188, %cst_180 {dimension_numbers = #tpu.dot_dimension_numbers<[1], [0], [0], [1], [0, 0, 1, 1], [], []>} : vector<32x64xbf16>, vector<64x16xbf16>, vector<32x16xf32> -> vector<32x16xf32>
    %c6_181 = arith.constant 6 : index
    %c0_182 = arith.constant 0 : index
    %c0_183 = arith.constant 0 : index
    %190 = vector.load %arg6[%c6_181, %c0_182, %c0_183] : memref<16x64x32xf32, #tpu.memory_space<vmem>>, vector<1x64x32xf32>
    %191 = vector.shape_cast %190 : vector<1x64x32xf32> to vector<64x32xf32>
    %cst_184 = arith.constant dense<0.000000e+00> : vector<64x16xf32>
    %192 = tpu.matmul %191, %189, %cst_184 {dimension_numbers = #tpu.dot_dimension_numbers<[1], [0], [0], [1], [0, 0, 1, 1], [], []>} : vector<64x32xf32>, vector<32x16xf32>, vector<64x16xf32> -> vector<64x16xf32>
    %193 = arith.addf %186, %192 : vector<64x16xf32>
    %c7_185 = arith.constant 7 : index
    %c0_186 = arith.constant 0 : index
    %c0_187 = arith.constant 0 : index
    %194 = vector.load %arg5[%c7_185, %c0_186, %c0_187] : memref<16x64x16xbf16, #tpu.memory_space<vmem>>, vector<1x64x16xbf16>
    %195 = vector.shape_cast %194 : vector<1x64x16xbf16> to vector<64x16xbf16>
    %cst_188 = arith.constant dense<0.000000e+00> : vector<32x16xf32>
    %196 = tpu.matmul %143, %195, %cst_188 {dimension_numbers = #tpu.dot_dimension_numbers<[1], [0], [0], [1], [0, 0, 1, 1], [], []>} : vector<32x64xbf16>, vector<64x16xbf16>, vector<32x16xf32> -> vector<32x16xf32>
    %c7_189 = arith.constant 7 : index
    %c0_190 = arith.constant 0 : index
    %c0_191 = arith.constant 0 : index
    %197 = vector.load %arg6[%c7_189, %c0_190, %c0_191] : memref<16x64x32xf32, #tpu.memory_space<vmem>>, vector<1x64x32xf32>
    %198 = vector.shape_cast %197 : vector<1x64x32xf32> to vector<64x32xf32>
    %cst_192 = arith.constant dense<0.000000e+00> : vector<64x16xf32>
    %199 = tpu.matmul %198, %196, %cst_192 {dimension_numbers = #tpu.dot_dimension_numbers<[1], [0], [0], [1], [0, 0, 1, 1], [], []>} : vector<64x32xf32>, vector<32x16xf32>, vector<64x16xf32> -> vector<64x16xf32>
    %200 = arith.addf %193, %199 : vector<64x16xf32>
    %c8_193 = arith.constant 8 : index
    %c0_194 = arith.constant 0 : index
    %c0_195 = arith.constant 0 : index
    %201 = vector.load %arg5[%c8_193, %c0_194, %c0_195] : memref<16x64x16xbf16, #tpu.memory_space<vmem>>, vector<1x64x16xbf16>
    %202 = vector.shape_cast %201 : vector<1x64x16xbf16> to vector<64x16xbf16>
    %cst_196 = arith.constant dense<0.000000e+00> : vector<32x16xf32>
    %203 = tpu.matmul %143, %202, %cst_196 {dimension_numbers = #tpu.dot_dimension_numbers<[1], [0], [0], [1], [0, 0, 1, 1], [], []>} : vector<32x64xbf16>, vector<64x16xbf16>, vector<32x16xf32> -> vector<32x16xf32>
    %c8_197 = arith.constant 8 : index
    %c0_198 = arith.constant 0 : index
    %c0_199 = arith.constant 0 : index
    %204 = vector.load %arg6[%c8_197, %c0_198, %c0_199] : memref<16x64x32xf32, #tpu.memory_space<vmem>>, vector<1x64x32xf32>
    %205 = vector.shape_cast %204 : vector<1x64x32xf32> to vector<64x32xf32>
    %cst_200 = arith.constant dense<0.000000e+00> : vector<64x16xf32>
    %206 = tpu.matmul %205, %203, %cst_200 {dimension_numbers = #tpu.dot_dimension_numbers<[1], [0], [0], [1], [0, 0, 1, 1], [], []>} : vector<64x32xf32>, vector<32x16xf32>, vector<64x16xf32> -> vector<64x16xf32>
    %207 = arith.addf %200, %206 : vector<64x16xf32>
    %c9_201 = arith.constant 9 : index
    %c0_202 = arith.constant 0 : index
    %c0_203 = arith.constant 0 : index
    %208 = vector.load %arg5[%c9_201, %c0_202, %c0_203] : memref<16x64x16xbf16, #tpu.memory_space<vmem>>, vector<1x64x16xbf16>
    %209 = vector.shape_cast %208 : vector<1x64x16xbf16> to vector<64x16xbf16>
    %cst_204 = arith.constant dense<0.000000e+00> : vector<32x16xf32>
    %210 = tpu.matmul %143, %209, %cst_204 {dimension_numbers = #tpu.dot_dimension_numbers<[1], [0], [0], [1], [0, 0, 1, 1], [], []>} : vector<32x64xbf16>, vector<64x16xbf16>, vector<32x16xf32> -> vector<32x16xf32>
    %c9_205 = arith.constant 9 : index
    %c0_206 = arith.constant 0 : index
    %c0_207 = arith.constant 0 : index
    %211 = vector.load %arg6[%c9_205, %c0_206, %c0_207] : memref<16x64x32xf32, #tpu.memory_space<vmem>>, vector<1x64x32xf32>
    %212 = vector.shape_cast %211 : vector<1x64x32xf32> to vector<64x32xf32>
    %cst_208 = arith.constant dense<0.000000e+00> : vector<64x16xf32>
    %213 = tpu.matmul %212, %210, %cst_208 {dimension_numbers = #tpu.dot_dimension_numbers<[1], [0], [0], [1], [0, 0, 1, 1], [], []>} : vector<64x32xf32>, vector<32x16xf32>, vector<64x16xf32> -> vector<64x16xf32>
    %214 = arith.addf %207, %213 : vector<64x16xf32>
    %c10_209 = arith.constant 10 : index
    %c0_210 = arith.constant 0 : index
    %c0_211 = arith.constant 0 : index
    %215 = vector.load %arg5[%c10_209, %c0_210, %c0_211] : memref<16x64x16xbf16, #tpu.memory_space<vmem>>, vector<1x64x16xbf16>
    %216 = vector.shape_cast %215 : vector<1x64x16xbf16> to vector<64x16xbf16>
    %cst_212 = arith.constant dense<0.000000e+00> : vector<32x16xf32>
    %217 = tpu.matmul %143, %216, %cst_212 {dimension_numbers = #tpu.dot_dimension_numbers<[1], [0], [0], [1], [0, 0, 1, 1], [], []>} : vector<32x64xbf16>, vector<64x16xbf16>, vector<32x16xf32> -> vector<32x16xf32>
    %c10_213 = arith.constant 10 : index
    %c0_214 = arith.constant 0 : index
    %c0_215 = arith.constant 0 : index
    %218 = vector.load %arg6[%c10_213, %c0_214, %c0_215] : memref<16x64x32xf32, #tpu.memory_space<vmem>>, vector<1x64x32xf32>
    %219 = vector.shape_cast %218 : vector<1x64x32xf32> to vector<64x32xf32>
    %cst_216 = arith.constant dense<0.000000e+00> : vector<64x16xf32>
    %220 = tpu.matmul %219, %217, %cst_216 {dimension_numbers = #tpu.dot_dimension_numbers<[1], [0], [0], [1], [0, 0, 1, 1], [], []>} : vector<64x32xf32>, vector<32x16xf32>, vector<64x16xf32> -> vector<64x16xf32>
    %221 = arith.addf %214, %220 : vector<64x16xf32>
    %c11_217 = arith.constant 11 : index
    %c0_218 = arith.constant 0 : index
    %c0_219 = arith.constant 0 : index
    %222 = vector.load %arg5[%c11_217, %c0_218, %c0_219] : memref<16x64x16xbf16, #tpu.memory_space<vmem>>, vector<1x64x16xbf16>
    %223 = vector.shape_cast %222 : vector<1x64x16xbf16> to vector<64x16xbf16>
    %cst_220 = arith.constant dense<0.000000e+00> : vector<32x16xf32>
    %224 = tpu.matmul %143, %223, %cst_220 {dimension_numbers = #tpu.dot_dimension_numbers<[1], [0], [0], [1], [0, 0, 1, 1], [], []>} : vector<32x64xbf16>, vector<64x16xbf16>, vector<32x16xf32> -> vector<32x16xf32>
    %c11_221 = arith.constant 11 : index
    %c0_222 = arith.constant 0 : index
    %c0_223 = arith.constant 0 : index
    %225 = vector.load %arg6[%c11_221, %c0_222, %c0_223] : memref<16x64x32xf32, #tpu.memory_space<vmem>>, vector<1x64x32xf32>
    %226 = vector.shape_cast %225 : vector<1x64x32xf32> to vector<64x32xf32>
    %cst_224 = arith.constant dense<0.000000e+00> : vector<64x16xf32>
    %227 = tpu.matmul %226, %224, %cst_224 {dimension_numbers = #tpu.dot_dimension_numbers<[1], [0], [0], [1], [0, 0, 1, 1], [], []>} : vector<64x32xf32>, vector<32x16xf32>, vector<64x16xf32> -> vector<64x16xf32>
    %228 = arith.addf %221, %227 : vector<64x16xf32>
    %c12_225 = arith.constant 12 : index
    %c0_226 = arith.constant 0 : index
    %c0_227 = arith.constant 0 : index
    %229 = vector.load %arg5[%c12_225, %c0_226, %c0_227] : memref<16x64x16xbf16, #tpu.memory_space<vmem>>, vector<1x64x16xbf16>
    %230 = vector.shape_cast %229 : vector<1x64x16xbf16> to vector<64x16xbf16>
    %cst_228 = arith.constant dense<0.000000e+00> : vector<32x16xf32>
    %231 = tpu.matmul %143, %230, %cst_228 {dimension_numbers = #tpu.dot_dimension_numbers<[1], [0], [0], [1], [0, 0, 1, 1], [], []>} : vector<32x64xbf16>, vector<64x16xbf16>, vector<32x16xf32> -> vector<32x16xf32>
    %c12_229 = arith.constant 12 : index
    %c0_230 = arith.constant 0 : index
    %c0_231 = arith.constant 0 : index
    %232 = vector.load %arg6[%c12_229, %c0_230, %c0_231] : memref<16x64x32xf32, #tpu.memory_space<vmem>>, vector<1x64x32xf32>
    %233 = vector.shape_cast %232 : vector<1x64x32xf32> to vector<64x32xf32>
    %cst_232 = arith.constant dense<0.000000e+00> : vector<64x16xf32>
    %234 = tpu.matmul %233, %231, %cst_232 {dimension_numbers = #tpu.dot_dimension_numbers<[1], [0], [0], [1], [0, 0, 1, 1], [], []>} : vector<64x32xf32>, vector<32x16xf32>, vector<64x16xf32> -> vector<64x16xf32>
    %235 = arith.addf %228, %234 : vector<64x16xf32>
    %c13_233 = arith.constant 13 : index
    %c0_234 = arith.constant 0 : index
    %c0_235 = arith.constant 0 : index
    %236 = vector.load %arg5[%c13_233, %c0_234, %c0_235] : memref<16x64x16xbf16, #tpu.memory_space<vmem>>, vector<1x64x16xbf16>
    %237 = vector.shape_cast %236 : vector<1x64x16xbf16> to vector<64x16xbf16>
    %cst_236 = arith.constant dense<0.000000e+00> : vector<32x16xf32>
    %238 = tpu.matmul %143, %237, %cst_236 {dimension_numbers = #tpu.dot_dimension_numbers<[1], [0], [0], [1], [0, 0, 1, 1], [], []>} : vector<32x64xbf16>, vector<64x16xbf16>, vector<32x16xf32> -> vector<32x16xf32>
    %c13_237 = arith.constant 13 : index
    %c0_238 = arith.constant 0 : index
    %c0_239 = arith.constant 0 : index
    %239 = vector.load %arg6[%c13_237, %c0_238, %c0_239] : memref<16x64x32xf32, #tpu.memory_space<vmem>>, vector<1x64x32xf32>
    %240 = vector.shape_cast %239 : vector<1x64x32xf32> to vector<64x32xf32>
    %cst_240 = arith.constant dense<0.000000e+00> : vector<64x16xf32>
    %241 = tpu.matmul %240, %238, %cst_240 {dimension_numbers = #tpu.dot_dimension_numbers<[1], [0], [0], [1], [0, 0, 1, 1], [], []>} : vector<64x32xf32>, vector<32x16xf32>, vector<64x16xf32> -> vector<64x16xf32>
    %242 = arith.addf %235, %241 : vector<64x16xf32>
    %c14_241 = arith.constant 14 : index
    %c0_242 = arith.constant 0 : index
    %c0_243 = arith.constant 0 : index
    %243 = vector.load %arg5[%c14_241, %c0_242, %c0_243] : memref<16x64x16xbf16, #tpu.memory_space<vmem>>, vector<1x64x16xbf16>
    %244 = vector.shape_cast %243 : vector<1x64x16xbf16> to vector<64x16xbf16>
    %cst_244 = arith.constant dense<0.000000e+00> : vector<32x16xf32>
    %245 = tpu.matmul %143, %244, %cst_244 {dimension_numbers = #tpu.dot_dimension_numbers<[1], [0], [0], [1], [0, 0, 1, 1], [], []>} : vector<32x64xbf16>, vector<64x16xbf16>, vector<32x16xf32> -> vector<32x16xf32>
    %c14_245 = arith.constant 14 : index
    %c0_246 = arith.constant 0 : index
    %c0_247 = arith.constant 0 : index
    %246 = vector.load %arg6[%c14_245, %c0_246, %c0_247] : memref<16x64x32xf32, #tpu.memory_space<vmem>>, vector<1x64x32xf32>
    %247 = vector.shape_cast %246 : vector<1x64x32xf32> to vector<64x32xf32>
    %cst_248 = arith.constant dense<0.000000e+00> : vector<64x16xf32>
    %248 = tpu.matmul %247, %245, %cst_248 {dimension_numbers = #tpu.dot_dimension_numbers<[1], [0], [0], [1], [0, 0, 1, 1], [], []>} : vector<64x32xf32>, vector<32x16xf32>, vector<64x16xf32> -> vector<64x16xf32>
    %249 = arith.addf %242, %248 : vector<64x16xf32>
    %c15_249 = arith.constant 15 : index
    %c0_250 = arith.constant 0 : index
    %c0_251 = arith.constant 0 : index
    %250 = vector.load %arg5[%c15_249, %c0_250, %c0_251] : memref<16x64x16xbf16, #tpu.memory_space<vmem>>, vector<1x64x16xbf16>
    %251 = vector.shape_cast %250 : vector<1x64x16xbf16> to vector<64x16xbf16>
    %cst_252 = arith.constant dense<0.000000e+00> : vector<32x16xf32>
    %252 = tpu.matmul %143, %251, %cst_252 {dimension_numbers = #tpu.dot_dimension_numbers<[1], [0], [0], [1], [0, 0, 1, 1], [], []>} : vector<32x64xbf16>, vector<64x16xbf16>, vector<32x16xf32> -> vector<32x16xf32>
    %c15_253 = arith.constant 15 : index
    %c0_254 = arith.constant 0 : index
    %c0_255 = arith.constant 0 : index
    %253 = vector.load %arg6[%c15_253, %c0_254, %c0_255] : memref<16x64x32xf32, #tpu.memory_space<vmem>>, vector<1x64x32xf32>
    %254 = vector.shape_cast %253 : vector<1x64x32xf32> to vector<64x32xf32>
    %cst_256 = arith.constant dense<0.000000e+00> : vector<64x16xf32>
    %255 = tpu.matmul %254, %252, %cst_256 {dimension_numbers = #tpu.dot_dimension_numbers<[1], [0], [0], [1], [0, 0, 1, 1], [], []>} : vector<64x32xf32>, vector<32x16xf32>, vector<64x16xf32> -> vector<64x16xf32>
    %256 = arith.addf %249, %255 : vector<64x16xf32>
    %c0_257 = arith.constant 0 : index
    %c0_258 = arith.constant 0 : index
    %257 = vector.load %arg7[%c0_257, %c0_258] : memref<64x64xf32, #tpu.memory_space<vmem>>, vector<64x64xf32>
    %cst_259 = arith.constant dense<0.000000e+00> : vector<64xf32>
    %258 = vector.multi_reduction <add>, %256, %cst_259 [1] : vector<64x16xf32> to vector<64xf32>
    %259 = vector.shape_cast %258 : vector<64xf32> to vector<64x1xf32>
    %cst_260 = arith.constant dense<0.000000e+00> : vector<64x1xf32>
    %260 = tpu.matmul %257, %259, %cst_260 {dimension_numbers = #tpu.dot_dimension_numbers<[1], [0], [0], [1], [0, 0, 1, 1], [], []>} : vector<64x64xf32>, vector<64x1xf32>, vector<64x1xf32> -> vector<64x1xf32>
    %261 = vector.broadcast %260 : vector<64x1xf32> to vector<64x16xf32>
    %262 = arith.subf %256, %261 : vector<64x16xf32>
    %263 = arith.mulf %262, %262 : vector<64x16xf32>
    %cst_261 = arith.constant dense<0.000000e+00> : vector<64xf32>
    %264 = vector.multi_reduction <add>, %263, %cst_261 [1] : vector<64x16xf32> to vector<64xf32>
    %265 = vector.shape_cast %264 : vector<64xf32> to vector<64x1xf32>
    %cst_262 = arith.constant dense<0.000000e+00> : vector<64x1xf32>
    %266 = tpu.matmul %257, %265, %cst_262 {dimension_numbers = #tpu.dot_dimension_numbers<[1], [0], [0], [1], [0, 0, 1, 1], [], []>} : vector<64x64xf32>, vector<64x1xf32>, vector<64x1xf32> -> vector<64x1xf32>
    %cst_263 = arith.constant 9.99999974E-6 : f32
    %267 = vector.broadcast %cst_263 : f32 to vector<64x1xf32>
    %268 = arith.addf %266, %267 : vector<64x1xf32>
    %269 = math.rsqrt %268 : vector<64x1xf32>
    %270 = vector.broadcast %269 : vector<64x1xf32> to vector<64x16xf32>
    %271 = arith.mulf %262, %270 : vector<64x16xf32>
    %cst_264 = arith.constant 0.000000e+00 : f32
    %272 = vector.broadcast %cst_264 : f32 to vector<64x16xf32>
    %273 = arith.cmpf oge, %271, %272 : vector<64x16xf32>
    %cst_265 = arith.constant 2.000000e-01 : f32
    %274 = vector.broadcast %cst_265 : f32 to vector<64x16xf32>
    %275 = arith.mulf %274, %271 : vector<64x16xf32>
    %276 = arith.select %273, %271, %275 : vector<64x16xi1>, vector<64x16xf32>
    %c0_266 = arith.constant 0 : index
    %c0_267 = arith.constant 0 : index
    %277 = vector.load %arg8[%c0_266, %c0_267] : memref<64x16xf32, #tpu.memory_space<vmem>>, vector<64x16xf32>
    %278 = arith.mulf %276, %277 : vector<64x16xf32>
    %cst_268 = arith.constant dense<0.000000e+00> : vector<64xf32>
    %279 = vector.multi_reduction <add>, %278, %cst_268 [1] : vector<64x16xf32> to vector<64xf32>
    %280 = vector.shape_cast %279 : vector<64xf32> to vector<64x1xf32>
    %c0_269 = arith.constant 0 : index
    %c0_270 = arith.constant 0 : index
    %281 = vector.load %arg9[%c0_269, %c0_270] : memref<2x64xf32, #tpu.memory_space<vmem>>, vector<2x64xf32>
    %cst_271 = arith.constant dense<0.000000e+00> : vector<2x1xf32>
    %282 = tpu.matmul %281, %280, %cst_271 {dimension_numbers = #tpu.dot_dimension_numbers<[1], [0], [0], [1], [0, 0, 1, 1], [], []>} : vector<2x64xf32>, vector<64x1xf32>, vector<2x1xf32> -> vector<2x1xf32>
    %cst_272 = arith.constant 0.000000e+00 : f32
    %283 = vector.broadcast %cst_272 : f32 to vector<2x1xf32>
    %284 = arith.subf %283, %282 : vector<2x1xf32>
    %285 = math.exp %284 : vector<2x1xf32>
    %cst_273 = arith.constant 1.000000e+00 : f32
    %286 = vector.broadcast %cst_273 : f32 to vector<2x1xf32>
    %287 = arith.addf %286, %285 : vector<2x1xf32>
    %cst_274 = arith.constant 1.000000e+00 : f32
    %288 = vector.broadcast %cst_274 : f32 to vector<2x1xf32>
    %289 = arith.divf %288, %287 : vector<2x1xf32>
    %c0_275 = arith.constant 0 : index
    %c0_276 = arith.constant 0 : index
    %290 = vector.load %arg10[%c0_275, %c0_276] : memref<2x1xf32, #tpu.memory_space<vmem>>, vector<2x1xf32>
    tpu.vector_store %arg10[%c0_275, %c0_276], %289 {strides = array<i32>} : memref<2x1xf32, #tpu.memory_space<vmem>>, vector<2x1xf32>,
    return
  }
}

</mosaic_0001>

<bundles_post_ra>
// kernel: disc_forward.1
= control target key start
LH: loop header
LB: loop body
LE: loop exit
PB: predicated region body
PF: predicated region fallthrough
CT: control target
= control target key end

     0   :  { %v12808_v1 = vmov 0.0   ;;  %vm74_vm0 = vcmask 785408   ;;  %vm520_vm5 = vcmask 130048   ;;  %vm4583_vm6 = vcmask 523264   ;;  %s15125_s0 = inlined_call_operand.vmem [shape: bf16[96,256], index: 0, kind: input, shape index: {}]   ;;  %s15126_s2 = inlined_call_operand.vmem [shape: bf16[16,256,64], index: 2, kind: input, shape index: {}]   ;;  %s15127_s1 = inlined_call_operand.vmem [shape: f32[16,96], index: 1, kind: input, shape index: {}]   ;;  %s15128_s3 = inlined_call_operand.vmem [shape: f32[16,32,16], index: 3, kind: input, shape index: {}]   ;;  %s15129_s4 = inlined_call_operand.vmem [shape: f32[32,32], index: 4, kind: input, shape index: {}]   ;;  %s15130_s5 = inlined_call_operand.vmem [shape: bf16[16,64,16], index: 5, kind: input, shape index: {}]   ;;  %s15131_s6 = inlined_call_operand.vmem [shape: f32[16,64,32], index: 6, kind: input, shape index: {}]   ;;  %s15132_s7 = inlined_call_operand.vmem [shape: f32[64,64], index: 7, kind: input, shape index: {}]   ;;  %s15133_s8 = inlined_call_operand.vmem [shape: f32[64,16], index: 8, kind: input, shape index: {}]   ;;  %s15134_s9 = inlined_call_operand.vmem [shape: f32[2,64], index: 9, kind: input, shape index: {}]   ;;  %s15135_s10 = inlined_call_operand.vmem [shape: f32[2,1], index: 10, kind: output, shape index: {}]  }
   0x1   :  { %v12442_v0 = vld [vmem:[%s15125_s0 + $0x4] ss:$8 sps:$4 sm:$0xff]   ;;  %145 = vmatprep.mubr.f32.mxu0 %v12808_v1  ;;  %v12444_v2 = vld [vmem:[%s15125_s0] ss:$8 sps:$4 sm:$0xff]   ;;  %v12445_v3 = vld [vmem:[%s15125_s0 + $0x14] ss:$8 sps:$4 sm:$0xff]  }
   0x2   :  { %11969 = vmatprep.subr.bf16.mxu0 %v12442_v0  ;;  %v12447_v4 = vld [vmem:[%s15125_s0 + $0x10] ss:$8 sps:$4 sm:$0xff]   ;;  %v12448_v5 = vld [vmem:[%s15125_s0 + $0x24] ss:$8 sps:$4 sm:$0xff]   ;;  %v12450_v6 = vld [vmem:[%s15125_s0 + $0x20] ss:$8 sps:$4 sm:$0xff]  }
   0x3   :  { %11971 = vmatpush1.bf16.msra.mxu0 %v12444_v2  ;;  %v12451_v7 = vld [vmem:[%s15125_s0 + $0x34] ss:$8 sps:$4 sm:$0xff]   ;;  %v12460_v8 = vld [vmem:[%s15126_s2 + $0x40] sm:$0xff]   ;;  %v12453_v9 = vld [vmem:[%s15125_s0 + $0x30] ss:$8 sps:$4 sm:$0xff]   ;;  %vm4596_vm7 = vcmask 261120  }
   0x4   :  { %11973 = vmatprep.subr.bf16.mxu0 %v12445_v3  ;;  %10400 = vmatprep.subr.bf16.mxu1 %v12460_v8  ;;  %v12462_v10 = vld [vmem:[%s15126_s2] sm:$0xff]   ;;  %v12464_v12 = vld [vmem:[%s15126_s2 + $0x48] sm:$0xff]   ;;  %v12457_v15 = vld [vmem:[%s15125_s0 + $0x54] ss:$8 sps:$4 sm:$0xff]  }
   0x5   :  { %v12454_v11 = vld [vmem:[%s15125_s0 + $0x44] ss:$8 sps:$4 sm:$0xff]   ;;  %10401 = vmatpush3.bf16.msra.mxu1 %v12462_v10  ;;  %v12456_v13 = vld [vmem:[%s15125_s0 + $0x40] ss:$8 sps:$4 sm:$0xff]   ;;  %v12468_v16 = vld [vmem:[%s15126_s2 + $0x50] sm:$0xff]  }
   0x6   :  { %10402 = vmatprep.subr.bf16.mxu1 %v12464_v12  ;;  %v12466_v14 = vld [vmem:[%s15126_s2 + $0x8] sm:$0xff]   ;;  %v12459_v17 = vld [vmem:[%s15125_s0 + $0x50] ss:$8 sps:$4 sm:$0xff]   ;;  %v12461_v19 = vld [vmem:[%s15126_s2 + $0xc0] sm:$0xff]  }
   0x7   :  { %11975 = vmatpush1.bf16.msra.mxu0 %v12447_v4  ;;  %v12470_v18 = vld [vmem:[%s15126_s2 + $0x10] sm:$0xff]   ;;  %v36_v20 = vld [vmem:[%s15127_s1] sm:$0xff]  ;;  %v12472_v21 = vld [vmem:[%s15126_s2 + $0x58] sm:$0xff]  }
   0x8   :  { %11977 = vmatprep.subr.bf16.mxu0 %v12448_v5  ;;  %v12463_v22 = vld [vmem:[%s15126_s2 + $0x80] sm:$0xff]   ;;  %v12474_v23 = vld [vmem:[%s15126_s2 + $0x18] sm:$0xff]   ;;  %v12465_v24 = vld [vmem:[%s15126_s2 + $0xc8] sm:$0xff]  }
   0x9   :  { %10403 = vmatpush3.bf16.msra.mxu1 %v12466_v14  ;;  %v37_v25 = vld [vmem:[%s15127_s1 + $0x8] sm:$0xff]  ;;  %v12476_v26 = vld [vmem:[%s15126_s2 + $0x60] sm:$0xff]   ;;  %v12469_v29 = vld [vmem:[%s15126_s2 + $0xd0] sm:$0xff]  }
   0xa   :  { %10404 = vmatprep.subr.bf16.mxu1 %v12468_v16  ;;  %v12467_v27 = vld [vmem:[%s15126_s2 + $0x88] sm:$0xff]   ;;  %v12478_v28 = vld [vmem:[%s15126_s2 + $0x20] sm:$0xff]   ;;  %v12471_v30 = vld [vmem:[%s15126_s2 + $0x90] sm:$0xff]  }
   0xb   :  { %11979 = vmatpush1.bf16.msra.mxu0 %v12450_v6  ;;  %v12473_v31 = vld [vmem:[%s15126_s2 + $0xd8] sm:$0xff]   ;;  %v12477_v33 = vld [vmem:[%s15126_s2 + $0xe0] sm:$0xff]   ;;  %v12480_v35 = vld [vmem:[%s15126_s2 + $0x68] sm:$0xff]  }
   0xc   :  { %11981 = vmatprep.subr.bf16.mxu0 %v12451_v7  ;;  %v12475_v32 = vld [vmem:[%s15126_s2 + $0x98] sm:$0xff]   ;;  %v12479_v34 = vld [vmem:[%s15126_s2 + $0xa0] sm:$0xff]   ;;  %v12481_v36 = vld [vmem:[%s15126_s2 + $0xe8] sm:$0xff]  }
   0xd   :  { %10405 = vmatpush3.bf16.msra.mxu1 %v12470_v18  ;;  %v12482_v37 = vld [vmem:[%s15126_s2 + $0x28] sm:$0xff]   ;;  %v12484_v39 = vld [vmem:[%s15126_s2 + $0x70] sm:$0xff]   ;;  %v12488_v43 = vld [vmem:[%s15126_s2 + $0x78] sm:$0xff]  }
   0xe   :  { %10406 = vmatprep.subr.bf16.mxu1 %v12472_v21  ;;  %v12483_v38 = vld [vmem:[%s15126_s2 + $0xa8] sm:$0xff]   ;;  %v12485_v40 = vld [vmem:[%s15126_s2 + $0xf0] sm:$0xff]   ;;  %v12489_v44 = vld [vmem:[%s15126_s2 + $0xf8] sm:$0xff]  }
   0xf   :  { %11983 = vmatpush1.bf16.msra.mxu0 %v12453_v9  ;;  %v12486_v41 = vld [vmem:[%s15126_s2 + $0x30] sm:$0xff]   ;;  %v12490_v45 = vld [vmem:[%s15126_s2 + $0x38] sm:$0xff]   ;;  %v9115_v61 = vld [vmem:[%s15128_s3 + $0x20] sm:$0xff] }
  0x10   :  { %11985 = vmatprep.subr.bf16.mxu0 %v12454_v11  ;;  %v12487_v42 = vld [vmem:[%s15126_s2 + $0xb0] sm:$0xff]   ;;  %v12491_v46 = vld [vmem:[%s15126_s2 + $0xb8] sm:$0xff]   ;;  %v341_v62 = vld [vmem:[%s15128_s3] sm:$0xff] }
  0x11   :  { %10407 = vmatpush3.bf16.msra.mxu1 %v12474_v23  ;;  %v12492_v14 = vld [vmem:[%s15126_s2 + $0x140] sm:$0xff]   ;;  %v9116_v16 = vld [vmem:[%s15128_s3 + $0x28] sm:$0xff]  ;;  %v343_v21 = vld [vmem:[%s15128_s3 + $0x10] sm:$0xff] }
  0x12   :  { %10408 = vmatprep.subr.bf16.mxu1 %v12476_v26  ;;  %v12494_v18 = vld [vmem:[%s15126_s2 + $0x100] sm:$0xff]   ;;  %v12497_v23 = vld [vmem:[%s15126_s2 + $0x1c8] sm:$0xff]  }
  0x13   :  { %11987 = vmatpush1.bf16.msra.mxu0 %v12456_v13  ;;  %v12498_v26 = vld [vmem:[%s15126_s2 + $0x108] sm:$0xff]  }
  0x14   :  { %11989 = vmatprep.subr.bf16.mxu0 %v12457_v15  ;;  %v12493_v15 = vld [vmem:[%s15126_s2 + $0x1c0] sm:$0xff]  }
  0x15   :  { %10409 = vmatpush3.bf16.msra.mxu1 %v12478_v28  ;;  %v12500_v28 = vld [vmem:[%s15126_s2 + $0x150] sm:$0xff]  }
  0x16   :  { %10410 = vmatprep.subr.bf16.mxu1 %v12480_v35  ;;  %v12507_v35 = vld [vmem:[%s15126_s2 + $0x198] sm:$0xff]  }
  0x17   :  { %11991 = vmatpush1.bf16.msra.mxu0 %v12459_v17  ;;  %v342_v17 = vld [vmem:[%s15128_s3 + $0x8] sm:$0xff] }
  0x18   :  { %10422 = vmatprep.subr.bf16.mxu0 %v12461_v19  ;;  %v12495_v19 = vld [vmem:[%s15126_s2 + $0x180] sm:$0xff]  }
  0x19   :  { %10411 = vmatpush3.bf16.msra.mxu1 %v12482_v37  ;;  %v12509_v37 = vld [vmem:[%s15126_s2 + $0x1e0] sm:$0xff]  }
  0x1a   :  { %9049 = vmatmul.mubr.msk.f32.vlgmr.msra.gmra.mrb[0].mxu0 %vm74_vm0, %v36_v20  ;;  %10412 = vmatprep.subr.bf16.mxu1 %v12484_v39  ;;  %v9117_v20 = vld [vmem:[%s15128_s3 + $0x30] sm:$0xff]  ;;  %v12511_v39 = vld [vmem:[%s15126_s2 + $0x1a0] sm:$0xff]  }
  0x1b   :  { %151 = vmatprep.mubr.f32.mxu0 %v12808_v1  ;;  %10423 = vmatpush3.bf16.msra.mxu0 %v12463_v22  ;;  %v12496_v22 = vld [vmem:[%s15126_s2 + $0x148] sm:$0xff]  }
  0x1c   :  { %10424 = vmatprep.subr.bf16.mxu0 %v12465_v24  ;;  %v9118_v24 = vld [vmem:[%s15128_s3 + $0x38] sm:$0xff] }
  0x1d   :  { %10413 = vmatpush3.bf16.msra.mxu1 %v12486_v41  ;;  %v12513_v41 = vld [vmem:[%s15126_s2 + $0x1e8] sm:$0xff]  }
  0x1e   :  { %9050 = vmatmul.mubr.msk.f32.gmra.mrb[2].mxu0 %vm74_vm0, %v37_v25  ;;  %10414 = vmatprep.subr.bf16.mxu1 %v12488_v43  ;;  %v344_v25 = vld [vmem:[%s15128_s3 + $0x18] sm:$0xff]  ;;  %v12515_v43 = vld [vmem:[%s15126_s2 + $0x1a8] sm:$0xff]  }
  0x1f   :  { %10425 = vmatpush3.bf16.msra.mxu0 %v12467_v27  ;;  %v12499_v27 = vld [vmem:[%s15126_s2 + $0x188] sm:$0xff]  }
  0x20   :  { %10426 = vmatprep.subr.bf16.mxu0 %v12469_v29  ;;  %v12501_v29 = vld [vmem:[%s15126_s2 + $0x1d0] sm:$0xff]  }
  0x21   :  { %10415 = vmatpush3.bf16.msra.mxu1 %v12490_v45  ;;  %v12517_v45 = vld [vmem:[%s15126_s2 + $0x1f0] sm:$0xff]  }
  0x23   :  { %10427 = vmatpush3.bf16.msra.mxu0 %v12471_v30  ;;  %v12502_v30 = vld [vmem:[%s15126_s2 + $0x110] sm:$0xff]  }
  0x24   :  { %10428 = vmatprep.subr.bf16.mxu0 %v12473_v31  ;;  %v12503_v31 = vld [vmem:[%s15126_s2 + $0x190] sm:$0xff]  }
  0x27   :  { %10429 = vmatpush3.bf16.msra.mxu0 %v12475_v32  ;;  %v12504_v32 = vld [vmem:[%s15126_s2 + $0x158] sm:$0xff]  }
  0x28   :  { %10430 = vmatprep.subr.bf16.mxu0 %v12477_v33  ;;  %v12505_v33 = vld [vmem:[%s15126_s2 + $0x1d8] sm:$0xff]  }
  0x2b   :  { %10431 = vmatpush3.bf16.msra.mxu0 %v12479_v34  ;;  %v12506_v34 = vld [vmem:[%s15126_s2 + $0x118] sm:$0xff]  }
  0x2c   :  { %10432 = vmatprep.subr.bf16.mxu0 %v12481_v36  ;;  %v12508_v36 = vld [vmem:[%s15126_s2 + $0x160] sm:$0xff]  }
  0x2f   :  { %10433 = vmatpush3.bf16.msra.mxu0 %v12483_v38  ;;  %v12510_v38 = vld [vmem:[%s15126_s2 + $0x120] sm:$0xff]  }
  0x30   :  { %10434 = vmatprep.subr.bf16.mxu0 %v12485_v40  ;;  %v12512_v40 = vld [vmem:[%s15126_s2 + $0x168] sm:$0xff]  }
  0x33   :  { %10435 = vmatpush3.bf16.msra.mxu0 %v12487_v42  ;;  %v12514_v42 = vld [vmem:[%s15126_s2 + $0x128] sm:$0xff]  }
  0x34   :  { %10436 = vmatprep.subr.bf16.mxu0 %v12489_v44  ;;  %v12516_v44 = vld [vmem:[%s15126_s2 + $0x170] sm:$0xff]  }
  0x37   :  { %10437 = vmatpush3.bf16.msra.mxu0 %v12491_v46  ;;  %v12518_v46 = vld [vmem:[%s15126_s2 + $0x130] sm:$0xff]  }
  0xed   :  { %v147_v47 = vpop.f32.mrb[0].mxu0 }
  0xee   :  { %v149_v48 = vpop.f32.mrb[1].mxu0  ;;  %v162_v49 = vmul.f32 0.2, %v147_v47  ;;  %vm158_vm1 = vcmp.ge.f32.partialorder %v147_v47, 0.0 }
  0xef   :  { %v163_v50 = vmul.f32 0.2, %v149_v48  ;;  %vm159_vm2 = vcmp.ge.f32.partialorder %v149_v48, 0.0 }
  0xf0   :  { %v166_v55 = vsel %vm158_vm1, %v147_v47, %v162_v49  ;;  %v12519_v47 = vld [vmem:[%s15126_s2 + $0x1b0] sm:$0xff]   ;;  %v12521_v49 = vld [vmem:[%s15126_s2 + $0x1f8] sm:$0xff]  }
  0xf1   :  { %v153_v51 = vpop.f32.mrb[2].mxu0  ;;  %v167_v57 = vsel %vm159_vm2, %v149_v48, %v163_v50  ;;  %v12520_v48 = vld [vmem:[%s15126_s2 + $0x178] sm:$0xff]  }
  0xf2   :  { %vm160_vm3 = vcmp.ge.f32.partialorder %v153_v51, 0.0  ;;  %v164_v52 = vmul.f32 0.2, %v153_v51  ;;  %v155_v53 = vpop.f32.mrb[3].mxu0  ;;  %v12522_v50 = vld [vmem:[%s15126_s2 + $0x138] sm:$0xff]  }
  0xf3   :  { %vm161_vm4 = vcmp.ge.f32.partialorder %v155_v53, 0.0  ;;  %v165_v54 = vmul.f32 0.2, %v155_v53 }
  0xf4   :  { %v168_v56 = vsel %vm160_vm3, %v153_v51, %v164_v52  ;;  %v12523_v51 = vld [vmem:[%s15126_s2 + $0x1b8] sm:$0xff]   ;;  %v12524_v52 = vld [vmem:[%s15126_s2 + $0x240] sm:$0xff]  }
  0xf5   :  { %v13009_v58 = vpack.c.bf16 %v168_v56, %v166_v55  ;;  %v169_v59 = vsel %vm161_vm4, %v155_v53, %v165_v54  ;;  %v12525_v53 = vld [vmem:[%s15126_s2 + $0x200] sm:$0xff]   ;;  %v12526_v54 = vld [vmem:[%s15126_s2 + $0x248] sm:$0xff]   ;;  %v12528_v56 = vld [vmem:[%s15126_s2 + $0x250] sm:$0xff]   ;;  %vm12811_vm4 = vmmov 0  }
  0xf6   :  { %v13011_v60 = vpack.c.bf16 %v169_v59, %v167_v57  ;;  %v12527_v55 = vld [vmem:[%s15126_s2 + $0x208] sm:$0xff]   ;;  %v12529_v57 = vld [vmem:[%s15126_s2 + $0x210] sm:$0xff]   ;;  %v12530_v59 = vld [vmem:[%s15126_s2 + $0x258] sm:$0xff]  }
  0xf8   :  { %332 = vmatprep.mubr.bf16.mxu1 %v13011_v60  ;;  %506 = vmatprep.mubr.bf16.mxu0 %v13011_v60 }
  0xf9   :  { %333 = vmatmul.mubr.bf16.vlgmr.msra.gmra.mrb[0].mxu1 %v13009_v58  ;;  %507 = vmatmul.mubr.bf16.vlgmr.msra.gmra.mrb[4].mxu0 %v13009_v58 }
  0xfa   :  { %11197 = vmatprep.mubr.msk.f32.mxu0 %vm520_vm5, %v9115_v61  ;;  %11207 = vmatprep.mubr.msk.f32.mxu1 %vm520_vm5, %v341_v62  ;;  %v12531_v61 = vld [vmem:[%s15126_s2 + $0x218] sm:$0xff]   ;;  %v12532_v62 = vld [vmem:[%s15126_s2 + $0x260] sm:$0xff]  }
 0x1cc   :  { %v10416_v63 = vpop.f32.mrb[0].mxu1  ;;  %v10438_v0 = vpop.f32.mrb[4].mxu0 }
 0x1cd   :  { %v10417_v2 = vpop.f32.mrb[1].mxu1  ;;  %v10439_v3 = vpop.f32.mrb[5].mxu0 }
 0x1ce   :  { %v10418_v4 = vadd.f32 %v10417_v2, %v10416_v63  ;;  %v10440_v5 = vadd.f32 %v10439_v3, %v10438_v0  ;;  %v10419_v6 = vpop.f32.mrb[2].mxu1  ;;  %v10441_v7 = vpop.f32.mrb[6].mxu0  ;;  %v12533_v63 = vld [vmem:[%s15126_s2 + $0x220] sm:$0xff]   ;;  %v12534_v0 = vld [vmem:[%s15126_s2 + $0x268] sm:$0xff]   ;;  %v12536_v3 = vld [vmem:[%s15126_s2 + $0x270] sm:$0xff]  }
 0x1cf   :  { %v10420_v8 = vpop.f32.mrb[3].mxu1  ;;  %v10442_v9 = vpop.f32.mrb[7].mxu0  ;;  %v12535_v2 = vld [vmem:[%s15126_s2 + $0x228] sm:$0xff]  }
 0x1d0   :  { %v10421_v10 = vadd.f32 %v10420_v8, %v10419_v6  ;;  %v10443_v11 = vadd.f32 %v10442_v9, %v10441_v7  ;;  %v12539_v6 = vld [vmem:[%s15126_s2 + $0x238] sm:$0xff]   ;;  %v12540_v7 = vld [vmem:[%s15126_s2 + $0x340] sm:$0xff]   ;;  %v12542_v9 = vld [vmem:[%s15126_s2 + $0x348] sm:$0xff]  }
 0x1d1   :  { %v12541_v8 = vld [vmem:[%s15126_s2 + $0x300] sm:$0xff]  }
 0x1d2   :  { %v11996_v12 = vpack.c.bf16 %v10421_v10, %v10418_v4  ;;  %v11992_v13 = vpack.c.bf16 %v10443_v11, %v10440_v5  ;;  %v12537_v4 = vld [vmem:[%s15126_s2 + $0x230] sm:$0xff]   ;;  %v12538_v5 = vld [vmem:[%s15126_s2 + $0x278] sm:$0xff]   ;;  %v12543_v10 = vld [vmem:[%s15126_s2 + $0x308] sm:$0xff]  }
 0x1d3   :  { %v12544_v11 = vld [vmem:[%s15126_s2 + $0x350] sm:$0xff]  }
 0x1d4   :  { %11993 = vmatprep.subr.bf16.mxu0 %v11992_v13  ;;  %11997 = vmatprep.subr.bf16.mxu1 %v11996_v12 }
 0x1d5   :  { %11995 = vmatpush3.bf16.msra.mxu0 %v11992_v13  ;;  %11999 = vmatpush3.bf16.msra.mxu1 %v11996_v12  ;;  %v12545_v12 = vld [vmem:[%s15126_s2 + $0x310] sm:$0xff]   ;;  %v12546_v13 = vld [vmem:[%s15126_s2 + $0x358] sm:$0xff]  }
 0x1d6   :  { %10456 = vmatprep.subr.bf16.mxu1 %v12492_v14  ;;  %10484 = vmatprep.subr.bf16.mxu0 %v12493_v15  ;;  %v12547_v14 = vld [vmem:[%s15126_s2 + $0x318] sm:$0xff]   ;;  %v12548_v15 = vld [vmem:[%s15126_s2 + $0x360] sm:$0xff]  }
 0x1d8   :  { %11198 = vmatmul.mubr.msk.f32.vlgmr.msra.gmra.mrb[8].mxu0 %vm520_vm5, %v9116_v16  ;;  %11208 = vmatmul.mubr.msk.f32.vlgmr.msra.gmra.mrb[4].mxu1 %vm520_vm5, %v342_v17  ;;  %v12549_v16 = vld [vmem:[%s15126_s2 + $0x320] sm:$0xff]   ;;  %v12550_v17 = vld [vmem:[%s15126_s2 + $0x368] sm:$0xff]  }
 0x1d9   :  { %10457 = vmatpush3.bf16.msra.mxu1 %v12494_v18  ;;  %10485 = vmatpush3.bf16.msra.mxu0 %v12495_v19  ;;  %v12551_v18 = vld [vmem:[%s15126_s2 + $0x328] sm:$0xff]   ;;  %v12552_v19 = vld [vmem:[%s15126_s2 + $0x370] sm:$0xff]  }
 0x1da   :  { %11200 = vmatprep.mubr.msk.f32.mxu0 %vm520_vm5, %v9117_v20  ;;  %11210 = vmatprep.mubr.msk.f32.mxu1 %vm520_vm5, %v343_v21  ;;  %v12553_v20 = vld [vmem:[%s15126_s2 + $0x330] sm:$0xff]   ;;  %v12554_v21 = vld [vmem:[%s15126_s2 + $0x378] sm:$0xff]  }
 0x1db   :  { %10458 = vmatprep.subr.bf16.mxu1 %v12496_v22  ;;  %10486 = vmatprep.subr.bf16.mxu0 %v12497_v23  ;;  %v12555_v22 = vld [vmem:[%s15126_s2 + $0x338] sm:$0xff]   ;;  %v12556_v23 = vld [vmem:[%s15126_s2 + $0x3c0] sm:$0xff]  }
 0x1dc   :  { %11201 = vmatmul.mubr.msk.f32.gmra.mrb[10].mxu0 %vm520_vm5, %v9118_v24  ;;  %11211 = vmatmul.mubr.msk.f32.gmra.mrb[6].mxu1 %vm520_vm5, %v344_v25  ;;  %v12557_v24 = vld [vmem:[%s15126_s2 + $0x380] sm:$0xff]   ;;  %v12558_v25 = vld [vmem:[%s15126_s2 + $0x3c8] sm:$0xff]  }
 0x1dd   :  { %10459 = vmatpush3.bf16.msra.mxu1 %v12498_v26  ;;  %876 = vmatprep.mubr.bf16.mxu1 %v13011_v60  ;;  %v12559_v26 = vld [vmem:[%s15126_s2 + $0x388] sm:$0xff]  }
 0x1de   :  { %10487 = vmatpush3.bf16.msra.mxu0 %v12499_v27  ;;  %1152 = vmatprep.mubr.bf16.mxu0 %v13011_v60  ;;  %v12560_v27 = vld [vmem:[%s15126_s2 + $0x3d0] sm:$0xff]  }
 0x1df   :  { %10460 = vmatprep.subr.bf16.mxu1 %v12500_v28  ;;  %10488 = vmatprep.subr.bf16.mxu0 %v12501_v29  ;;  %v12561_v28 = vld [vmem:[%s15126_s2 + $0x390] sm:$0xff]   ;;  %v12562_v29 = vld [vmem:[%s15126_s2 + $0x3d8] sm:$0xff]  }
 0x1e1   :  { %10461 = vmatpush3.bf16.msra.mxu1 %v12502_v30  ;;  %v12563_v30 = vld [vmem:[%s15126_s2 + $0x398] sm:$0xff]  }
 0x1e2   :  { %10489 = vmatpush3.bf16.msra.mxu0 %v12503_v31  ;;  %10462 = vmatprep.subr.bf16.mxu1 %v12504_v32  ;;  %v12564_v31 = vld [vmem:[%s15126_s2 + $0x3e0] sm:$0xff]  }
 0x1e3   :  { %10490 = vmatprep.subr.bf16.mxu0 %v12505_v33  ;;  %v12565_v32 = vld [vmem:[%s15126_s2 + $0x3a0] sm:$0xff]   ;;  %v12566_v33 = vld [vmem:[%s15126_s2 + $0x3e8] sm:$0xff]  }
 0x1e5   :  { %10463 = vmatpush3.bf16.msra.mxu1 %v12506_v34  ;;  %v12567_v34 = vld [vmem:[%s15126_s2 + $0x3a8] sm:$0xff]  }
 0x1e6   :  { %10491 = vmatpush3.bf16.msra.mxu0 %v12507_v35  ;;  %10464 = vmatprep.subr.bf16.mxu1 %v12508_v36  ;;  %v12568_v35 = vld [vmem:[%s15126_s2 + $0x3f0] sm:$0xff]  }
 0x1e7   :  { %10492 = vmatprep.subr.bf16.mxu0 %v12509_v37  ;;  %v12569_v36 = vld [vmem:[%s15126_s2 + $0x3b0] sm:$0xff]   ;;  %v12570_v37 = vld [vmem:[%s15126_s2 + $0x3f8] sm:$0xff]  }
 0x1e9   :  { %10465 = vmatpush3.bf16.msra.mxu1 %v12510_v38  ;;  %v12571_v38 = vld [vmem:[%s15126_s2 + $0x3b8] sm:$0xff]  }
 0x1ea   :  { %10493 = vmatpush3.bf16.msra.mxu0 %v12511_v39  ;;  %10466 = vmatprep.subr.bf16.mxu1 %v12512_v40  ;;  %v12572_v39 = vld [vmem:[%s15126_s2 + $0x4c0] sm:$0xff]  }
 0x1eb   :  { %10494 = vmatprep.subr.bf16.mxu0 %v12513_v41  ;;  %v12573_v40 = vld [vmem:[%s15126_s2 + $0x480] sm:$0xff]  }
 0x1ec   :  { %v9175_v41 = vld [vmem:[%s15128_s3 + $0x40] sm:$0xff] }
 0x1ed   :  { %10467 = vmatpush3.bf16.msra.mxu1 %v12514_v42  ;;  %v12574_v42 = vld [vmem:[%s15126_s2 + $0x4c8] sm:$0xff]  }
 0x1ee   :  { %10495 = vmatpush3.bf16.msra.mxu0 %v12515_v43  ;;  %10468 = vmatprep.subr.bf16.mxu1 %v12516_v44  ;;  %v12575_v43 = vld [vmem:[%s15126_s2 + $0x488] sm:$0xff]   ;;  %v12576_v44 = vld [vmem:[%s15126_s2 + $0x4d0] sm:$0xff]  }
 0x1ef   :  { %10496 = vmatprep.subr.bf16.mxu0 %v12517_v45  ;;  %v12577_v45 = vld [vmem:[%s15126_s2 + $0x490] sm:$0xff]  }
 0x1f1   :  { %10469 = vmatpush3.bf16.msra.mxu1 %v12518_v46  ;;  %v12578_v46 = vld [vmem:[%s15126_s2 + $0x4d8] sm:$0xff]  }
 0x1f2   :  { %10497 = vmatpush3.bf16.msra.mxu0 %v12519_v47  ;;  %10470 = vmatprep.subr.bf16.mxu1 %v12520_v48  ;;  %v12579_v47 = vld [vmem:[%s15126_s2 + $0x498] sm:$0xff]   ;;  %v12580_v48 = vld [vmem:[%s15126_s2 + $0x4e0] sm:$0xff]  }
 0x1f3   :  { %10498 = vmatprep.subr.bf16.mxu0 %v12521_v49  ;;  %v12581_v49 = vld [vmem:[%s15126_s2 + $0x4a0] sm:$0xff]  }
 0x1f5   :  { %10471 = vmatpush3.bf16.msra.mxu1 %v12522_v50  ;;  %v12582_v50 = vld [vmem:[%s15126_s2 + $0x4e8] sm:$0xff]  }
 0x1f6   :  { %10499 = vmatpush3.bf16.msra.mxu0 %v12523_v51  ;;  %v12583_v51 = vld [vmem:[%s15126_s2 + $0x4a8] sm:$0xff]  }
 0x1f7   :  { %10512 = vmatprep.subr.bf16.mxu0 %v12524_v52  ;;  %v12584_v52 = vld [vmem:[%s15126_s2 + $0x4f0] sm:$0xff]  }
 0x1f8   :  { %877 = vmatmul.mubr.bf16.vlgmr.msra.gmra.mrb[8].mxu1 %v13009_v58 }
 0x1f9   :  { %1153 = vmatmul.mubr.bf16.vlgmr.msra.gmra.mrb[12].mxu0 %v13009_v58  ;;  %11217 = vmatprep.mubr.msk.f32.mxu1 %vm520_vm5, %v9175_v41  ;;  %v12630_v41 = vld [vmem:[%s15126_s2 + $0x768] sm:$0xff]  }
 0x1fa   :  { %10513 = vmatpush3.bf16.msra.mxu0 %v12525_v53  ;;  %1428 = vmatprep.mubr.bf16.mxu0 %v13011_v60  ;;  %v12585_v53 = vld [vmem:[%s15126_s2 + $0x4b0] sm:$0xff]  }
 0x1fb   :  { %10514 = vmatprep.subr.bf16.mxu0 %v12526_v54  ;;  %v12586_v54 = vld [vmem:[%s15126_s2 + $0x4f8] sm:$0xff]  }
 0x1fe   :  { %10515 = vmatpush3.bf16.msra.mxu0 %v12527_v55  ;;  %v12587_v55 = vld [vmem:[%s15126_s2 + $0x4b8] sm:$0xff]  }
 0x1ff   :  { %10516 = vmatprep.subr.bf16.mxu0 %v12528_v56  ;;  %v12588_v56 = vld [vmem:[%s15126_s2 + $0x5c0] sm:$0xff]  }
 0x202   :  { %10517 = vmatpush3.bf16.msra.mxu0 %v12529_v57  ;;  %v12589_v57 = vld [vmem:[%s15126_s2 + $0x580] sm:$0xff]  }
 0x203   :  { %10518 = vmatprep.subr.bf16.mxu0 %v12530_v59  ;;  %v12590_v59 = vld [vmem:[%s15126_s2 + $0x5c8] sm:$0xff]  }
 0x206   :  { %10519 = vmatpush3.bf16.msra.mxu0 %v12531_v61  ;;  %v12591_v61 = vld [vmem:[%s15126_s2 + $0x588] sm:$0xff]  }
 0x207   :  { %10520 = vmatprep.subr.bf16.mxu0 %v12532_v62  ;;  %v12592_v62 = vld [vmem:[%s15126_s2 + $0x5d0] sm:$0xff]  }
 0x20a   :  { %10521 = vmatpush3.bf16.msra.mxu0 %v12533_v63  ;;  %v12593_v63 = vld [vmem:[%s15126_s2 + $0x590] sm:$0xff]  }
 0x20b   :  { %10522 = vmatprep.subr.bf16.mxu0 %v12534_v0  ;;  %v12594_v0 = vld [vmem:[%s15126_s2 + $0x5d8] sm:$0xff]  }
 0x20e   :  { %10523 = vmatpush3.bf16.msra.mxu0 %v12535_v2  ;;  %v12595_v2 = vld [vmem:[%s15126_s2 + $0x598] sm:$0xff]  }
 0x20f   :  { %10524 = vmatprep.subr.bf16.mxu0 %v12536_v3  ;;  %v12596_v3 = vld [vmem:[%s15126_s2 + $0x5e0] sm:$0xff]  }
 0x212   :  { %10525 = vmatpush3.bf16.msra.mxu0 %v12537_v4  ;;  %v12597_v4 = vld [vmem:[%s15126_s2 + $0x5a0] sm:$0xff]  }
 0x213   :  { %10526 = vmatprep.subr.bf16.mxu0 %v12538_v5  ;;  %v12598_v5 = vld [vmem:[%s15126_s2 + $0x5e8] sm:$0xff]  }
 0x216   :  { %10527 = vmatpush3.bf16.msra.mxu0 %v12539_v6  ;;  %v12599_v6 = vld [vmem:[%s15126_s2 + $0x5a8] sm:$0xff]  }
 0x217   :  { %10568 = vmatprep.subr.bf16.mxu0 %v12540_v7  ;;  %v12600_v7 = vld [vmem:[%s15126_s2 + $0x5f0] sm:$0xff]  }
 0x219   :  { %1429 = vmatmul.mubr.bf16.vlgmr.msra.gmra.mrb[16].mxu0 %v13009_v58 }
 0x21a   :  { %10569 = vmatpush3.bf16.msra.mxu0 %v12541_v8  ;;  %1980 = vmatprep.mubr.bf16.mxu0 %v13011_v60  ;;  %v12601_v8 = vld [vmem:[%s15126_s2 + $0x5b0] sm:$0xff]  }
 0x21b   :  { %10570 = vmatprep.subr.bf16.mxu0 %v12542_v9  ;;  %v12602_v9 = vld [vmem:[%s15126_s2 + $0x5f8] sm:$0xff]  }
 0x21e   :  { %10571 = vmatpush3.bf16.msra.mxu0 %v12543_v10  ;;  %v12603_v10 = vld [vmem:[%s15126_s2 + $0x5b8] sm:$0xff]  }
 0x21f   :  { %10572 = vmatprep.subr.bf16.mxu0 %v12544_v11  ;;  %v12604_v11 = vld [vmem:[%s15126_s2 + $0x640] sm:$0xff]  }
 0x222   :  { %10573 = vmatpush3.bf16.msra.mxu0 %v12545_v12  ;;  %v12605_v12 = vld [vmem:[%s15126_s2 + $0x600] sm:$0xff]  }
 0x223   :  { %10574 = vmatprep.subr.bf16.mxu0 %v12546_v13  ;;  %v12606_v13 = vld [vmem:[%s15126_s2 + $0x648] sm:$0xff]  }
 0x226   :  { %10575 = vmatpush3.bf16.msra.mxu0 %v12547_v14  ;;  %v12607_v14 = vld [vmem:[%s15126_s2 + $0x608] sm:$0xff]  }
 0x227   :  { %10576 = vmatprep.subr.bf16.mxu0 %v12548_v15  ;;  %v12608_v15 = vld [vmem:[%s15126_s2 + $0x650] sm:$0xff]  }
 0x22a   :  { %10577 = vmatpush3.bf16.msra.mxu0 %v12549_v16  ;;  %v12609_v16 = vld [vmem:[%s15126_s2 + $0x610] sm:$0xff]  }
 0x22b   :  { %10578 = vmatprep.subr.bf16.mxu0 %v12550_v17  ;;  %v12610_v17 = vld [vmem:[%s15126_s2 + $0x658] sm:$0xff]  }
 0x22e   :  { %10579 = vmatpush3.bf16.msra.mxu0 %v12551_v18  ;;  %v12611_v18 = vld [vmem:[%s15126_s2 + $0x618] sm:$0xff]  }
 0x22f   :  { %10580 = vmatprep.subr.bf16.mxu0 %v12552_v19  ;;  %v12612_v19 = vld [vmem:[%s15126_s2 + $0x660] sm:$0xff]  }
 0x232   :  { %10581 = vmatpush3.bf16.msra.mxu0 %v12553_v20  ;;  %v12613_v20 = vld [vmem:[%s15126_s2 + $0x620] sm:$0xff]  }
 0x233   :  { %10582 = vmatprep.subr.bf16.mxu0 %v12554_v21  ;;  %v12614_v21 = vld [vmem:[%s15126_s2 + $0x668] sm:$0xff]  }
 0x236   :  { %10583 = vmatpush3.bf16.msra.mxu0 %v12555_v22  ;;  %v12615_v22 = vld [vmem:[%s15126_s2 + $0x628] sm:$0xff]  }
 0x237   :  { %10596 = vmatprep.subr.bf16.mxu0 %v12556_v23 }
 0x239   :  { %1981 = vmatmul.mubr.bf16.vlgmr.msra.gmra.mrb[20].mxu0 %v13009_v58 }
 0x23a   :  { %10597 = vmatpush3.bf16.msra.mxu0 %v12557_v24  ;;  %2256 = vmatprep.mubr.bf16.mxu0 %v13011_v60  ;;  %v12616_v24 = vld [vmem:[%s15126_s2 + $0x670] sm:$0xff]  }
 0x23b   :  { %10598 = vmatprep.subr.bf16.mxu0 %v12558_v25 }
 0x23e   :  { %10599 = vmatpush3.bf16.msra.mxu0 %v12559_v26  ;;  %v12617_v26 = vld [vmem:[%s15126_s2 + $0x630] sm:$0xff]  }
 0x23f   :  { %10600 = vmatprep.subr.bf16.mxu0 %v12560_v27  ;;  %v12618_v27 = vld [vmem:[%s15126_s2 + $0x678] sm:$0xff]  }
 0x242   :  { %10601 = vmatpush3.bf16.msra.mxu0 %v12561_v28 }
 0x243   :  { %10602 = vmatprep.subr.bf16.mxu0 %v12562_v29 }
 0x246   :  { %10603 = vmatpush3.bf16.msra.mxu0 %v12563_v30  ;;  %v12619_v30 = vld [vmem:[%s15126_s2 + $0x638] sm:$0xff]  }
 0x247   :  { %10604 = vmatprep.subr.bf16.mxu0 %v12564_v31  ;;  %v12620_v31 = vld [vmem:[%s15126_s2 + $0x740] sm:$0xff]  }
 0x24a   :  { %10605 = vmatpush3.bf16.msra.mxu0 %v12565_v32  ;;  %v12621_v32 = vld [vmem:[%s15126_s2 + $0x700] sm:$0xff]  }
 0x24b   :  { %10606 = vmatprep.subr.bf16.mxu0 %v12566_v33  ;;  %v12622_v33 = vld [vmem:[%s15126_s2 + $0x748] sm:$0xff]  }
 0x24e   :  { %10607 = vmatpush3.bf16.msra.mxu0 %v12567_v34  ;;  %v12623_v34 = vld [vmem:[%s15126_s2 + $0x708] sm:$0xff]  }
 0x24f   :  { %10608 = vmatprep.subr.bf16.mxu0 %v12568_v35  ;;  %v12624_v35 = vld [vmem:[%s15126_s2 + $0x750] sm:$0xff]  }
 0x252   :  { %10609 = vmatpush3.bf16.msra.mxu0 %v12569_v36  ;;  %v12625_v36 = vld [vmem:[%s15126_s2 + $0x710] sm:$0xff]  }
 0x253   :  { %10610 = vmatprep.subr.bf16.mxu0 %v12570_v37  ;;  %v12626_v37 = vld [vmem:[%s15126_s2 + $0x758] sm:$0xff]  }
 0x256   :  { %10611 = vmatpush3.bf16.msra.mxu0 %v12571_v38  ;;  %v12627_v38 = vld [vmem:[%s15126_s2 + $0x718] sm:$0xff]  }
 0x257   :  { %10652 = vmatprep.subr.bf16.mxu0 %v12572_v39  ;;  %v12628_v39 = vld [vmem:[%s15126_s2 + $0x760] sm:$0xff]  }
 0x259   :  { %2257 = vmatmul.mubr.bf16.vlgmr.msra.gmra.mrb[24].mxu0 %v13009_v58 }
 0x25a   :  { %10653 = vmatpush3.bf16.msra.mxu0 %v12573_v40  ;;  %2808 = vmatprep.mubr.bf16.mxu0 %v13011_v60  ;;  %v12629_v40 = vld [vmem:[%s15126_s2 + $0x720] sm:$0xff]  }
 0x25b   :  { %10654 = vmatprep.subr.bf16.mxu0 %v12574_v42  ;;  %v12631_v42 = vld [vmem:[%s15126_s2 + $0x728] sm:$0xff]  }
 0x25e   :  { %10655 = vmatpush3.bf16.msra.mxu0 %v12575_v43 }
 0x25f   :  { %10656 = vmatprep.subr.bf16.mxu0 %v12576_v44  ;;  %v12632_v44 = vld [vmem:[%s15126_s2 + $0x770] sm:$0xff]  }
 0x262   :  { %10657 = vmatpush3.bf16.msra.mxu0 %v12577_v45 }
 0x263   :  { %10658 = vmatprep.subr.bf16.mxu0 %v12578_v46 }
 0x266   :  { %10659 = vmatpush3.bf16.msra.mxu0 %v12579_v47 }
 0x267   :  { %10660 = vmatprep.subr.bf16.mxu0 %v12580_v48 }
 0x26a   :  { %10661 = vmatpush3.bf16.msra.mxu0 %v12581_v49 }
 0x26b   :  { %10662 = vmatprep.subr.bf16.mxu0 %v12582_v50 }
 0x26e   :  { %10663 = vmatpush3.bf16.msra.mxu0 %v12583_v51 }
 0x26f   :  { %10664 = vmatprep.subr.bf16.mxu0 %v12584_v52 }
 0x272   :  { %10665 = vmatpush3.bf16.msra.mxu0 %v12585_v53  ;;  %v12633_v53 = vld [vmem:[%s15126_s2 + $0x730] sm:$0xff]  }
 0x273   :  { %10666 = vmatprep.subr.bf16.mxu0 %v12586_v54 }
 0x276   :  { %10667 = vmatpush3.bf16.msra.mxu0 %v12587_v55 }
 0x277   :  { %10708 = vmatprep.subr.bf16.mxu0 %v12588_v56  ;;  %v12634_v56 = vld [vmem:[%s15126_s2 + $0x778] sm:$0xff]  }
 0x279   :  { %2809 = vmatmul.mubr.bf16.vlgmr.msra.gmra.mrb[28].mxu0 %v13009_v58 }
 0x27a   :  { %10709 = vmatpush3.bf16.msra.mxu0 %v12589_v57  ;;  %3360 = vmatprep.mubr.bf16.mxu0 %v13011_v60 }
 0x27b   :  { %10710 = vmatprep.subr.bf16.mxu0 %v12590_v59 }
 0x27e   :  { %10711 = vmatpush3.bf16.msra.mxu0 %v12591_v61 }
 0x27f   :  { %10712 = vmatprep.subr.bf16.mxu0 %v12592_v62  ;;  %v12635_v62 = vld [vmem:[%s15126_s2 + $0x738] sm:$0xff]  }
 0x282   :  { %10713 = vmatpush3.bf16.msra.mxu0 %v12593_v63  ;;  %v12636_v63 = vld [vmem:[%s15126_s2 + $0x7c0] sm:$0xff]  }
 0x283   :  { %10714 = vmatprep.subr.bf16.mxu0 %v12594_v0  ;;  %v9176_v0 = vld [vmem:[%s15128_s3 + $0x48] sm:$0xff] }
 0x286   :  { %10715 = vmatpush3.bf16.msra.mxu0 %v12595_v2  ;;  %v9177_v2 = vld [vmem:[%s15128_s3 + $0x50] sm:$0xff] }
 0x287   :  { %10716 = vmatprep.subr.bf16.mxu0 %v12596_v3  ;;  %v12637_v3 = vld [vmem:[%s15126_s2 + $0x780] sm:$0xff]  }
 0x28a   :  { %10717 = vmatpush3.bf16.msra.mxu0 %v12597_v4  ;;  %v12638_v4 = vld [vmem:[%s15126_s2 + $0x7c8] sm:$0xff]  }
 0x28b   :  { %10718 = vmatprep.subr.bf16.mxu0 %v12598_v5  ;;  %v9178_v5 = vld [vmem:[%s15128_s3 + $0x58] sm:$0xff] }
 0x28e   :  { %10719 = vmatpush3.bf16.msra.mxu0 %v12599_v6  ;;  %v9231_v6 = vld [vmem:[%s15128_s3 + $0x60] sm:$0xff] }
 0x28f   :  { %10720 = vmatprep.subr.bf16.mxu0 %v12600_v7  ;;  %v12639_v7 = vld [vmem:[%s15126_s2 + $0x788] sm:$0xff]  }
 0x292   :  { %10721 = vmatpush3.bf16.msra.mxu0 %v12601_v8  ;;  %v12640_v8 = vld [vmem:[%s15126_s2 + $0x7d0] sm:$0xff]  }
 0x293   :  { %10722 = vmatprep.subr.bf16.mxu0 %v12602_v9  ;;  %v9232_v9 = vld [vmem:[%s15128_s3 + $0x68] sm:$0xff] }
 0x296   :  { %10723 = vmatpush3.bf16.msra.mxu0 %v12603_v10  ;;  %v9233_v10 = vld [vmem:[%s15128_s3 + $0x70] sm:$0xff] }
 0x297   :  { %10736 = vmatprep.subr.bf16.mxu0 %v12604_v11  ;;  %v12641_v11 = vld [vmem:[%s15126_s2 + $0x790] sm:$0xff]  }
 0x299   :  { %3361 = vmatmul.mubr.bf16.vlgmr.msra.gmra.mrb[32].mxu0 %v13009_v58 }
 0x29a   :  { %10737 = vmatpush3.bf16.msra.mxu0 %v12605_v12  ;;  %3636 = vmatprep.mubr.bf16.mxu0 %v13011_v60  ;;  %v12642_v12 = vld [vmem:[%s15126_s2 + $0x7d8] sm:$0xff]  }
 0x29b   :  { %10738 = vmatprep.subr.bf16.mxu0 %v12606_v13  ;;  %v9234_v13 = vld [vmem:[%s15128_s3 + $0x78] sm:$0xff] }
 0x29e   :  { %10739 = vmatpush3.bf16.msra.mxu0 %v12607_v14  ;;  %v9287_v14 = vld [vmem:[%s15128_s3 + $0x80] sm:$0xff] }
 0x29f   :  { %10740 = vmatprep.subr.bf16.mxu0 %v12608_v15  ;;  %v12643_v15 = vld [vmem:[%s15126_s2 + $0x798] sm:$0xff]  }
 0x2a2   :  { %10741 = vmatpush3.bf16.msra.mxu0 %v12609_v16  ;;  %v12644_v16 = vld [vmem:[%s15126_s2 + $0x7e0] sm:$0xff]  }
 0x2a3   :  { %10742 = vmatprep.subr.bf16.mxu0 %v12610_v17  ;;  %v12645_v17 = vld [vmem:[%s15126_s2 + $0x7a0] sm:$0xff]  }
 0x2a6   :  { %10743 = vmatpush3.bf16.msra.mxu0 %v12611_v18  ;;  %v12646_v18 = vld [vmem:[%s15126_s2 + $0x7e8] sm:$0xff]  }
 0x2a7   :  { %10744 = vmatprep.subr.bf16.mxu0 %v12612_v19  ;;  %v12647_v19 = vld [vmem:[%s15126_s2 + $0x7a8] sm:$0xff]  }
 0x2aa   :  { %10745 = vmatpush3.bf16.msra.mxu0 %v12613_v20  ;;  %v12648_v20 = vld [vmem:[%s15126_s2 + $0x7f0] sm:$0xff]  }
 0x2ab   :  { %v13440_v23 = vpop.f32.mrb[8].mxu0  ;;  %10746 = vmatprep.subr.bf16.mxu0 %v12614_v21 }
 0x2ac   :  { %v13445_v25 = vpop.f32.mrb[9].mxu0 }
 0x2ae   :  { %10747 = vmatpush3.bf16.msra.mxu0 %v12615_v22 }
 0x2af   :  { %10748 = vmatprep.subr.bf16.mxu0 %v12616_v24  ;;  %v13453_v28 = vpop.f32.mrb[10].mxu0 }
 0x2b0   :  { %v13455_v29 = vpop.f32.mrb[11].mxu0 }
 0x2b2   :  { %10749 = vmatpush3.bf16.msra.mxu0 %v12617_v26 }
 0x2b3   :  { %10750 = vmatprep.subr.bf16.mxu0 %v12618_v27  ;;  %v12649_v27 = vld [vmem:[%s15126_s2 + $0x7b0] sm:$0xff]  }
 0x2b6   :  { %10751 = vmatpush3.bf16.msra.mxu0 %v12619_v30 }
 0x2b7   :  { %10792 = vmatprep.subr.bf16.mxu0 %v12620_v31  ;;  %v12650_v31 = vld [vmem:[%s15126_s2 + $0x7f8] sm:$0xff]  }
 0x2b9   :  { %3637 = vmatmul.mubr.bf16.vlgmr.msra.gmra.mrb[36].mxu0 %v13009_v58 }
 0x2ba   :  { %10793 = vmatpush3.bf16.msra.mxu0 %v12621_v32  ;;  %4188 = vmatprep.mubr.bf16.mxu0 %v13011_v60 }
 0x2bb   :  { %10794 = vmatprep.subr.bf16.mxu0 %v12622_v33 }
 0x2be   :  { %10795 = vmatpush3.bf16.msra.mxu0 %v12623_v34  ;;  %v12651_v34 = vld [vmem:[%s15126_s2 + $0x7b8] sm:$0xff]  }
 0x2bf   :  { %10796 = vmatprep.subr.bf16.mxu0 %v12624_v35  ;;  %v12652_v35 = vld [vmem:[%s15126_s2 + $0x2c0] sm:$0xff]  }
 0x2c2   :  { %10797 = vmatpush3.bf16.msra.mxu0 %v12625_v36  ;;  %v9288_v36 = vld [vmem:[%s15128_s3 + $0x88] sm:$0xff] }
 0x2c3   :  { %10798 = vmatprep.subr.bf16.mxu0 %v12626_v37  ;;  %v12653_v37 = vld [vmem:[%s15126_s2 + $0x280] sm:$0xff]  }
 0x2c6   :  { %10799 = vmatpush3.bf16.msra.mxu0 %v12627_v38  ;;  %v12654_v38 = vld [vmem:[%s15126_s2 + $0x2c8] sm:$0xff]  }
 0x2c7   :  { %10800 = vmatprep.subr.bf16.mxu0 %v12628_v39  ;;  %v9289_v39 = vld [vmem:[%s15128_s3 + $0x90] sm:$0xff] }
 0x2ca   :  { %10801 = vmatpush3.bf16.msra.mxu0 %v12629_v40  ;;  %v9290_v40 = vld [vmem:[%s15128_s3 + $0x98] sm:$0xff] }
 0x2cb   :  { %v10472_v43 = vpop.f32.mrb[8].mxu1  ;;  %10802 = vmatprep.subr.bf16.mxu0 %v12630_v41  ;;  %v12655_v41 = vld [vmem:[%s15126_s2 + $0x288] sm:$0xff]  }
 0x2cc   :  { %v10500_v45 = vpop.f32.mrb[12].mxu0  ;;  %v10473_v46 = vpop.f32.mrb[9].mxu1 }
 0x2cd   :  { %v10474_v47 = vadd.f32 %v10473_v46, %v10472_v43  ;;  %v10501_v48 = vpop.f32.mrb[13].mxu0  ;;  %v10475_v49 = vpop.f32.mrb[10].mxu1  ;;  %v12657_v43 = vld [vmem:[%s15126_s2 + $0x290] sm:$0xff]   ;;  %v12660_v46 = vld [vmem:[%s15126_s2 + $0x2e0] sm:$0xff]  }
 0x2ce   :  { %v10502_v50 = vadd.f32 %v10501_v48, %v10500_v45  ;;  %v10503_v51 = vpop.f32.mrb[14].mxu0  ;;  %10803 = vmatpush3.bf16.msra.mxu0 %v12631_v42  ;;  %v10476_v52 = vpop.f32.mrb[11].mxu1  ;;  %v12656_v42 = vld [vmem:[%s15126_s2 + $0x2d0] sm:$0xff]   ;;  %v12659_v45 = vld [vmem:[%s15126_s2 + $0x298] sm:$0xff]   ;;  %v12662_v48 = vld [vmem:[%s15126_s2 + $0x2e8] sm:$0xff]  }
 0x2cf   :  { %v10477_v54 = vadd.f32 %v10476_v52, %v10475_v49  ;;  %v10504_v55 = vpop.f32.mrb[15].mxu0  ;;  %10804 = vmatprep.subr.bf16.mxu0 %v12632_v44  ;;  %v12658_v44 = vld [vmem:[%s15126_s2 + $0x2d8] sm:$0xff]   ;;  %v12663_v49 = vld [vmem:[%s15126_s2 + $0x2a8] sm:$0xff]  }
 0x2d0   :  { %v10505_v57 = vadd.f32 %v10504_v55, %v10503_v51 }
 0x2d1   :  { %v12000_v59 = vpack.c.bf16 %v10477_v54, %v10474_v47  ;;  %v12661_v47 = vld [vmem:[%s15126_s2 + $0x2a0] sm:$0xff]  }
 0x2d2   :  { %v12004_v61 = vpack.c.bf16 %v10505_v57, %v10502_v50  ;;  %10805 = vmatpush3.bf16.msra.mxu0 %v12633_v53  ;;  %v12664_v50 = vld [vmem:[%s15126_s2 + $0x2f0] sm:$0xff]  }
 0x2d3   :  { %12001 = vmatprep.subr.bf16.mxu1 %v12000_v59  ;;  %10806 = vmatprep.subr.bf16.mxu0 %v12634_v56  ;;  %v12665_v53 = vld [vmem:[%s15126_s2 + $0x2b0] sm:$0xff]   ;;  %v12666_v56 = vld [vmem:[%s15126_s2 + $0x2f8] sm:$0xff]  }
 0x2d4   :  { %12003 = vmatpush3.bf16.msra.mxu1 %v12000_v59 }
 0x2d5   :  { %12005 = vmatprep.subr.bf16.mxu1 %v12004_v61 }
 0x2d6   :  { %10807 = vmatpush3.bf16.msra.mxu0 %v12635_v62 }
 0x2d7   :  { %11218 = vmatmul.mubr.msk.f32.vlgmr.msra.gmra.mrb[4].mxu1 %vm520_vm5, %v9176_v0  ;;  %10820 = vmatprep.subr.bf16.mxu0 %v12636_v63 }
 0x2d8   :  { %12007 = vmatpush3.bf16.msra.mxu1 %v12004_v61  ;;  %11220 = vmatprep.mubr.msk.f32.mxu1 %vm520_vm5, %v9177_v2  ;;  %v12667_v61 = vld [vmem:[%s15126_s2 + $0x2b8] sm:$0xff]  }
 0x2d9   :  { %4189 = vmatmul.mubr.bf16.vlgmr.msra.gmra.mrb[40].mxu0 %v13009_v58 }
 0x2da   :  { %10821 = vmatpush3.bf16.msra.mxu0 %v12637_v3  ;;  %4464 = vmatprep.mubr.bf16.mxu0 %v13011_v60 }
 0x2db   :  { %10822 = vmatprep.subr.bf16.mxu0 %v12638_v4  ;;  %11221 = vmatmul.mubr.msk.f32.gmra.mrb[6].mxu1 %vm520_vm5, %v9178_v5 }
 0x2dc   :  { %11227 = vmatprep.mubr.msk.f32.mxu1 %vm520_vm5, %v9231_v6 }
 0x2de   :  { %10823 = vmatpush3.bf16.msra.mxu0 %v12639_v7 }
 0x2df   :  { %10824 = vmatprep.subr.bf16.mxu0 %v12640_v8  ;;  %11228 = vmatmul.mubr.msk.f32.vlgmr.msra.gmra.mrb[4].mxu1 %vm520_vm5, %v9232_v9 }
 0x2e0   :  { %11230 = vmatprep.mubr.msk.f32.mxu1 %vm520_vm5, %v9233_v10 }
 0x2e2   :  { %10825 = vmatpush3.bf16.msra.mxu0 %v12641_v11 }
 0x2e3   :  { %10826 = vmatprep.subr.bf16.mxu0 %v12642_v12  ;;  %11231 = vmatmul.mubr.msk.f32.gmra.mrb[6].mxu1 %vm520_vm5, %v9234_v13 }
 0x2e4   :  { %11237 = vmatprep.mubr.msk.f32.mxu1 %vm520_vm5, %v9287_v14 }
 0x2e6   :  { %10827 = vmatpush3.bf16.msra.mxu0 %v12643_v15 }
 0x2e7   :  { %10828 = vmatprep.subr.bf16.mxu0 %v12644_v16 }
 0x2ea   :  { %10829 = vmatpush3.bf16.msra.mxu0 %v12645_v17 }
 0x2eb   :  { %10830 = vmatprep.subr.bf16.mxu0 %v12646_v18 }
 0x2ec   :  { %v10528_v21 = vpop.f32.mrb[16].mxu0 }
 0x2ed   :  { %v10529_v22 = vpop.f32.mrb[17].mxu0 }
 0x2ee   :  { %v10530_v24 = vadd.f32 %v10529_v22, %v10528_v21  ;;  %v10531_v26 = vpop.f32.mrb[18].mxu0  ;;  %10831 = vmatpush3.bf16.msra.mxu0 %v12647_v19  ;;  %v9343_v21 = vld [vmem:[%s15128_s3 + $0xa0] sm:$0xff] }
 0x2ef   :  { %v10532_v30 = vpop.f32.mrb[19].mxu0  ;;  %10832 = vmatprep.subr.bf16.mxu0 %v12648_v20 }
 0x2f0   :  { %v10533_v32 = vadd.f32 %v10532_v30, %v10531_v26 }
 0x2f2   :  { %v12008_v33 = vpack.c.bf16 %v10533_v32, %v10530_v24  ;;  %10833 = vmatpush3.bf16.msra.mxu0 %v12649_v27 }
 0x2f3   :  { %10834 = vmatprep.subr.bf16.mxu0 %v12650_v31 }
 0x2f4   :  { %12009 = vmatprep.subr.bf16.mxu1 %v12008_v33 }
 0x2f5   :  { %12011 = vmatpush3.bf16.msra.mxu1 %v12008_v33 }
 0x2f6   :  { %10835 = vmatpush3.bf16.msra.mxu0 %v12651_v34  ;;  %10540 = vmatprep.subr.bf16.mxu1 %v12652_v35 }
 0x2f8   :  { %11238 = vmatmul.mubr.msk.f32.vlgmr.msra.gmra.mrb[4].mxu1 %vm520_vm5, %v9288_v36 }
 0x2f9   :  { %10541 = vmatpush3.bf16.msra.mxu1 %v12653_v37  ;;  %4465 = vmatmul.mubr.bf16.vlgmr.msra.gmra.mrb[44].mxu0 %v13009_v58 }
 0x2fa   :  { %11240 = vmatprep.mubr.msk.f32.mxu1 %vm520_vm5, %v9289_v39  ;;  %10542 = vmatprep.subr.bf16.mxu1 %v12654_v38 }
 0x2fc   :  { %11241 = vmatmul.mubr.msk.f32.gmra.mrb[6].mxu1 %vm520_vm5, %v9290_v40 }
 0x2fd   :  { %10543 = vmatpush3.bf16.msra.mxu1 %v12655_v41  ;;  %1704 = vmatprep.mubr.bf16.mxu1 %v13011_v60 }
 0x2fe   :  { %10544 = vmatprep.subr.bf16.mxu1 %v12656_v42 }
 0x301   :  { %10545 = vmatpush3.bf16.msra.mxu1 %v12657_v43 }
 0x302   :  { %10546 = vmatprep.subr.bf16.mxu1 %v12658_v44 }
 0x305   :  { %10547 = vmatpush3.bf16.msra.mxu1 %v12659_v45 }
 0x306   :  { %10548 = vmatprep.subr.bf16.mxu1 %v12660_v46 }
 0x309   :  { %10549 = vmatpush3.bf16.msra.mxu1 %v12661_v47 }
 0x30a   :  { %10550 = vmatprep.subr.bf16.mxu1 %v12662_v48 }
 0x30c   :  { %v10584_v51 = vpop.f32.mrb[20].mxu0 }
 0x30d   :  { %10551 = vmatpush3.bf16.msra.mxu1 %v12663_v49  ;;  %v10585_v52 = vpop.f32.mrb[21].mxu0 }
 0x30e   :  { %v10586_v54 = vadd.f32 %v10585_v52, %v10584_v51  ;;  %v10587_v55 = vpop.f32.mrb[22].mxu0  ;;  %10552 = vmatprep.subr.bf16.mxu1 %v12664_v50 }
 0x30f   :  { %v10588_v57 = vpop.f32.mrb[23].mxu0 }
 0x310   :  { %v10589_v59 = vadd.f32 %v10588_v57, %v10587_v55  ;;  %v9345_v55 = vld [vmem:[%s15128_s3 + $0xb0] sm:$0xff]  ;;  %v9399_v57 = vld [vmem:[%s15128_s3 + $0xc0] sm:$0xff] }
 0x311   :  { %10553 = vmatpush3.bf16.msra.mxu1 %v12665_v53 }
 0x312   :  { %v12016_v62 = vpack.c.bf16 %v10589_v59, %v10586_v54  ;;  %10554 = vmatprep.subr.bf16.mxu1 %v12666_v56  ;;  %v9344_v54 = vld [vmem:[%s15128_s3 + $0xa8] sm:$0xff]  ;;  %v9346_v56 = vld [vmem:[%s15128_s3 + $0xb8] sm:$0xff] }
 0x313   :  { %v9400_v59 = vld [vmem:[%s15128_s3 + $0xc8] sm:$0xff] }
 0x315   :  { %10555 = vmatpush3.bf16.msra.mxu1 %v12667_v61  ;;  %v9401_v61 = vld [vmem:[%s15128_s3 + $0xd0] sm:$0xff] }
 0x318   :  { %1705 = vmatmul.mubr.bf16.vlgmr.msra.gmra.mrb[12].mxu1 %v13009_v58 }
 0x319   :  { %11247 = vmatprep.mubr.msk.f32.mxu1 %vm520_vm5, %v9343_v21  ;;  %v12683_v21 = vld [vmem:[%s15126_s2 + $0x438] sm:$0xff]  }
 0x32c   :  { %v10612_v63 = vpop.f32.mrb[24].mxu0 }
 0x32d   :  { %v10613_v0 = vpop.f32.mrb[25].mxu0 }
 0x32e   :  { %v10614_v2 = vadd.f32 %v10613_v0, %v10612_v63  ;;  %v10615_v3 = vpop.f32.mrb[26].mxu0  ;;  %v9402_v63 = vld [vmem:[%s15128_s3 + $0xd8] sm:$0xff]  ;;  %v9455_v0 = vld [vmem:[%s15128_s3 + $0xe0] sm:$0xff] }
 0x32f   :  { %v10616_v4 = vpop.f32.mrb[27].mxu0 }
 0x330   :  { %v10617_v5 = vadd.f32 %v10616_v4, %v10615_v3  ;;  %v12669_v3 = vld [vmem:[%s15126_s2 + $0x400] sm:$0xff]   ;;  %v9457_v4 = vld [vmem:[%s15128_s3 + $0xf0] sm:$0xff] }
 0x332   :  { %v12020_v6 = vpack.c.bf16 %v10617_v5, %v10614_v2  ;;  %v9456_v2 = vld [vmem:[%s15128_s3 + $0xe8] sm:$0xff] }
 0x333   :  { %v12670_v5 = vld [vmem:[%s15126_s2 + $0x448] sm:$0xff]  }
 0x34c   :  { %v10668_v7 = vpop.f32.mrb[28].mxu0 }
 0x34d   :  { %v10669_v8 = vpop.f32.mrb[29].mxu0 }
 0x34e   :  { %v10670_v9 = vadd.f32 %v10669_v8, %v10668_v7  ;;  %v10671_v10 = vpop.f32.mrb[30].mxu0  ;;  %v12671_v7 = vld [vmem:[%s15126_s2 + $0x408] sm:$0xff]   ;;  %v12672_v8 = vld [vmem:[%s15126_s2 + $0x450] sm:$0xff]  }
 0x34f   :  { %v10672_v11 = vpop.f32.mrb[31].mxu0 }
 0x350   :  { %v10673_v12 = vadd.f32 %v10672_v11, %v10671_v10  ;;  %v12674_v10 = vld [vmem:[%s15126_s2 + $0x458] sm:$0xff]  }
 0x351   :  { %v12675_v11 = vld [vmem:[%s15126_s2 + $0x418] sm:$0xff]  }
 0x352   :  { %v13655_v13 = vpack.c.bf16 %v10673_v12, %v10670_v9  ;;  %v12673_v9 = vld [vmem:[%s15126_s2 + $0x410] sm:$0xff]   ;;  %v12676_v12 = vld [vmem:[%s15126_s2 + $0x460] sm:$0xff]  }
 0x36c   :  { %v10724_v14 = vpop.f32.mrb[32].mxu0 }
 0x36d   :  { %v10725_v15 = vpop.f32.mrb[33].mxu0 }
 0x36e   :  { %v10726_v16 = vadd.f32 %v10725_v15, %v10724_v14  ;;  %v10727_v17 = vpop.f32.mrb[34].mxu0  ;;  %v12677_v14 = vld [vmem:[%s15126_s2 + $0x420] sm:$0xff]   ;;  %v12678_v15 = vld [vmem:[%s15126_s2 + $0x468] sm:$0xff]  }
 0x36f   :  { %v10728_v18 = vpop.f32.mrb[35].mxu0 }
 0x370   :  { %v10729_v19 = vadd.f32 %v10728_v18, %v10727_v17  ;;  %v12680_v17 = vld [vmem:[%s15126_s2 + $0x470] sm:$0xff]  }
 0x371   :  { %v12681_v18 = vld [vmem:[%s15126_s2 + $0x430] sm:$0xff]  }
 0x372   :  { %v13657_v20 = vpack.c.bf16 %v10729_v19, %v10726_v16  ;;  %v12679_v16 = vld [vmem:[%s15126_s2 + $0x428] sm:$0xff]   ;;  %v12682_v19 = vld [vmem:[%s15126_s2 + $0x478] sm:$0xff]  }
 0x38c   :  { %v10752_v22 = vpop.f32.mrb[36].mxu0 }
 0x38d   :  { %v10753_v24 = vpop.f32.mrb[37].mxu0 }
 0x38e   :  { %v10754_v26 = vadd.f32 %v10753_v24, %v10752_v22  ;;  %v10755_v27 = vpop.f32.mrb[38].mxu0  ;;  %v9511_v22 = vld [vmem:[%s15128_s3 + $0x100] sm:$0xff] }
 0x38f   :  { %v10756_v30 = vpop.f32.mrb[39].mxu0 }
 0x390   :  { %v10757_v31 = vadd.f32 %v10756_v30, %v10755_v27 }
 0x392   :  { %v13663_v32 = vpack.c.bf16 %v10757_v31, %v10754_v26 }
 0x3ac   :  { %v10808_v33 = vpop.f32.mrb[40].mxu0 }
 0x3ad   :  { %v10809_v34 = vpop.f32.mrb[41].mxu0 }
 0x3ae   :  { %v10810_v35 = vadd.f32 %v10809_v34, %v10808_v33  ;;  %v10811_v36 = vpop.f32.mrb[42].mxu0 }
 0x3af   :  { %v10812_v37 = vpop.f32.mrb[43].mxu0 }
 0x3b0   :  { %v10813_v38 = vadd.f32 %v10812_v37, %v10811_v36  ;;  %v9513_v36 = vld [vmem:[%s15128_s3 + $0x110] sm:$0xff]  ;;  %v12684_v37 = vld [vmem:[%s15126_s2 + $0x540] sm:$0xff]  }
 0x3b2   :  { %v13665_v39 = vpack.c.bf16 %v10813_v38, %v10810_v35  ;;  %v9512_v35 = vld [vmem:[%s15128_s3 + $0x108] sm:$0xff]  ;;  %v9514_v38 = vld [vmem:[%s15128_s3 + $0x118] sm:$0xff] }
 0x3cc   :  { %v10836_v40 = vpop.f32.mrb[44].mxu0 }
 0x3cd   :  { %v10837_v41 = vpop.f32.mrb[45].mxu0 }
 0x3ce   :  { %v10838_v42 = vadd.f32 %v10837_v41, %v10836_v40  ;;  %v10839_v43 = vpop.f32.mrb[46].mxu0  ;;  %v9567_v40 = vld [vmem:[%s15128_s3 + $0x120] sm:$0xff]  ;;  %v9568_v41 = vld [vmem:[%s15128_s3 + $0x128] sm:$0xff] }
 0x3cf   :  { %v10840_v44 = vpop.f32.mrb[47].mxu0 }
 0x3d0   :  { %v10841_v45 = vadd.f32 %v10840_v44, %v10839_v43  ;;  %v12686_v43 = vld [vmem:[%s15126_s2 + $0x548] sm:$0xff]   ;;  %v9570_v44 = vld [vmem:[%s15128_s3 + $0x138] sm:$0xff] }
 0x3d2   :  { %v13667_v46 = vpack.c.bf16 %v10841_v45, %v10838_v42  ;;  %v9569_v42 = vld [vmem:[%s15128_s3 + $0x130] sm:$0xff]  ;;  %v12687_v45 = vld [vmem:[%s15126_s2 + $0x508] sm:$0xff]  }
 0x3eb   :  { %v10556_v47 = vpop.f32.mrb[12].mxu1 }
 0x3ec   :  { %v10557_v48 = vpop.f32.mrb[13].mxu1 }
 0x3ed   :  { %v10558_v49 = vadd.f32 %v10557_v48, %v10556_v47  ;;  %v10559_v50 = vpop.f32.mrb[14].mxu1  ;;  %v12688_v47 = vld [vmem:[%s15126_s2 + $0x550] sm:$0xff]  }
 0x3ee   :  { %v10560_v51 = vpop.f32.mrb[15].mxu1  ;;  %v12689_v48 = vld [vmem:[%s15126_s2 + $0x510] sm:$0xff]  }
 0x3ef   :  { %v10561_v52 = vadd.f32 %v10560_v51, %v10559_v50  ;;  %v12691_v50 = vld [vmem:[%s15126_s2 + $0x518] sm:$0xff]   ;;  %v12692_v51 = vld [vmem:[%s15126_s2 + $0x560] sm:$0xff]  }
 0x3f1   :  { %v12012_v53 = vpack.c.bf16 %v10561_v52, %v10558_v49  ;;  %v12690_v49 = vld [vmem:[%s15126_s2 + $0x558] sm:$0xff]   ;;  %v12693_v52 = vld [vmem:[%s15126_s2 + $0x520] sm:$0xff]  }
 0x3f3   :  { %12013 = vmatprep.subr.bf16.mxu1 %v12012_v53 }
 0x3f4   :  { %12015 = vmatpush3.bf16.msra.mxu1 %v12012_v53  ;;  %v12694_v53 = vld [vmem:[%s15126_s2 + $0x568] sm:$0xff]  }
 0x3f5   :  { %12017 = vmatprep.subr.bf16.mxu1 %v12016_v62 }
 0x3f7   :  { %11248 = vmatmul.mubr.msk.f32.vlgmr.msra.gmra.mrb[4].mxu1 %vm520_vm5, %v9344_v54  ;;  %v12695_v54 = vld [vmem:[%s15126_s2 + $0x528] sm:$0xff]  }
 0x3f8   :  { %12019 = vmatpush3.bf16.msra.mxu1 %v12016_v62  ;;  %11250 = vmatprep.mubr.msk.f32.mxu1 %vm520_vm5, %v9345_v55  ;;  %v12668_v62 = vld [vmem:[%s15126_s2 + $0x440] sm:$0xff]   ;;  %v12696_v55 = vld [vmem:[%s15126_s2 + $0x570] sm:$0xff]  }
 0x3f9   :  { %12021 = vmatprep.subr.bf16.mxu1 %v12020_v6 }
 0x3fb   :  { %11251 = vmatmul.mubr.msk.f32.gmra.mrb[6].mxu1 %vm520_vm5, %v9346_v56  ;;  %v12697_v56 = vld [vmem:[%s15126_s2 + $0x530] sm:$0xff]  }
 0x3fc   :  { %11257 = vmatprep.mubr.msk.f32.mxu1 %vm520_vm5, %v9399_v57  ;;  %v12698_v57 = vld [vmem:[%s15126_s2 + $0x578] sm:$0xff]  }
 0x3ff   :  { %11258 = vmatmul.mubr.msk.f32.vlgmr.msra.gmra.mrb[4].mxu1 %vm520_vm5, %v9400_v59  ;;  %v12699_v59 = vld [vmem:[%s15126_s2 + $0x538] sm:$0xff]  }
 0x400   :  { %12023 = vmatpush3.bf16.msra.mxu1 %v12020_v6  ;;  %11260 = vmatprep.mubr.msk.f32.mxu1 %vm520_vm5, %v9401_v61  ;;  %v9458_v6 = vld [vmem:[%s15128_s3 + $0xf8] sm:$0xff]  ;;  %v9623_v61 = vld [vmem:[%s15128_s3 + $0x140] sm:$0xff] }
 0x401   :  { %10624 = vmatprep.subr.bf16.mxu1 %v12668_v62 }
 0x403   :  { %11261 = vmatmul.mubr.msk.f32.gmra.mrb[6].mxu1 %vm520_vm5, %v9402_v63 }
 0x404   :  { %11267 = vmatprep.mubr.msk.f32.mxu1 %vm520_vm5, %v9455_v0 }
 0x407   :  { %11268 = vmatmul.mubr.msk.f32.vlgmr.msra.gmra.mrb[4].mxu1 %vm520_vm5, %v9456_v2 }
 0x408   :  { %10625 = vmatpush3.bf16.msra.mxu1 %v12669_v3  ;;  %11270 = vmatprep.mubr.msk.f32.mxu1 %vm520_vm5, %v9457_v4 }
 0x409   :  { %10626 = vmatprep.subr.bf16.mxu1 %v12670_v5 }
 0x40b   :  { %11271 = vmatmul.mubr.msk.f32.gmra.mrb[6].mxu1 %vm520_vm5, %v9458_v6  ;;  %v9624_v6 = vld [vmem:[%s15128_s3 + $0x148] sm:$0xff] }
 0x40c   :  { %10627 = vmatpush3.bf16.msra.mxu1 %v12671_v7  ;;  %2532 = vmatprep.mubr.bf16.mxu1 %v13011_v60  ;;  %v9625_v7 = vld [vmem:[%s15128_s3 + $0x150] sm:$0xff] }
 0x40d   :  { %10628 = vmatprep.subr.bf16.mxu1 %v12672_v8  ;;  %v9626_v8 = vld [vmem:[%s15128_s3 + $0x158] sm:$0xff] }
 0x410   :  { %10629 = vmatpush3.bf16.msra.mxu1 %v12673_v9  ;;  %v9679_v9 = vld [vmem:[%s15128_s3 + $0x160] sm:$0xff] }
 0x411   :  { %10630 = vmatprep.subr.bf16.mxu1 %v12674_v10  ;;  %v9681_v10 = vld [vmem:[%s15128_s3 + $0x170] sm:$0xff] }
 0x414   :  { %10631 = vmatpush3.bf16.msra.mxu1 %v12675_v11  ;;  %v12700_v11 = vld [vmem:[%s15126_s2 + $0x6c0] sm:$0xff]  }
 0x415   :  { %10632 = vmatprep.subr.bf16.mxu1 %v12676_v12  ;;  %v9682_v12 = vld [vmem:[%s15128_s3 + $0x178] sm:$0xff] }
 0x418   :  { %10633 = vmatpush3.bf16.msra.mxu1 %v12677_v14  ;;  %v9735_v14 = vld [vmem:[%s15128_s3 + $0x180] sm:$0xff] }
 0x419   :  { %10634 = vmatprep.subr.bf16.mxu1 %v12678_v15  ;;  %v9736_v15 = vld [vmem:[%s15128_s3 + $0x188] sm:$0xff] }
 0x41c   :  { %10635 = vmatpush3.bf16.msra.mxu1 %v12679_v16  ;;  %v9737_v16 = vld [vmem:[%s15128_s3 + $0x190] sm:$0xff] }
 0x41d   :  { %10636 = vmatprep.subr.bf16.mxu1 %v12680_v17  ;;  %v12702_v17 = vld [vmem:[%s15126_s2 + $0x6c8] sm:$0xff]  }
 0x420   :  { %10637 = vmatpush3.bf16.msra.mxu1 %v12681_v18  ;;  %v9738_v18 = vld [vmem:[%s15128_s3 + $0x198] sm:$0xff] }
 0x421   :  { %10638 = vmatprep.subr.bf16.mxu1 %v12682_v19  ;;  %v12703_v19 = vld [vmem:[%s15126_s2 + $0x688] sm:$0xff]  }
 0x424   :  { %10639 = vmatpush3.bf16.msra.mxu1 %v12683_v21  ;;  %v12704_v21 = vld [vmem:[%s15126_s2 + $0x6d0] sm:$0xff]  }
 0x427   :  { %2533 = vmatmul.mubr.bf16.vlgmr.msra.gmra.mrb[16].mxu1 %v13009_v58 }
 0x428   :  { %11277 = vmatprep.mubr.msk.f32.mxu1 %vm520_vm5, %v9511_v22  ;;  %v12705_v22 = vld [vmem:[%s15126_s2 + $0x690] sm:$0xff]  }
 0x4fa   :  { %v10640_v24 = vpop.f32.mrb[16].mxu1 }
 0x4fb   :  { %v10641_v26 = vpop.f32.mrb[17].mxu1 }
 0x4fc   :  { %v10642_v27 = vadd.f32 %v10641_v26, %v10640_v24  ;;  %v10643_v30 = vpop.f32.mrb[18].mxu1  ;;  %v12706_v24 = vld [vmem:[%s15126_s2 + $0x6d8] sm:$0xff]  }
 0x4fd   :  { %v10644_v31 = vpop.f32.mrb[19].mxu1  ;;  %v12707_v26 = vld [vmem:[%s15126_s2 + $0x698] sm:$0xff]  }
 0x4fe   :  { %v10645_v33 = vadd.f32 %v10644_v31, %v10643_v30  ;;  %v12710_v30 = vld [vmem:[%s15126_s2 + $0x6e8] sm:$0xff]  }
 0x4ff   :  { %v12711_v31 = vld [vmem:[%s15126_s2 + $0x6a8] sm:$0xff]  }
 0x500   :  { %v12024_v34 = vpack.c.bf16 %v10645_v33, %v10642_v27  ;;  %v12708_v27 = vld [vmem:[%s15126_s2 + $0x6e0] sm:$0xff]   ;;  %v12712_v33 = vld [vmem:[%s15126_s2 + $0x6f0] sm:$0xff]  }
 0x502   :  { %12025 = vmatprep.subr.bf16.mxu1 %v12024_v34 }
 0x503   :  { %12027 = vmatpush3.bf16.msra.mxu1 %v12024_v34  ;;  %v12713_v34 = vld [vmem:[%s15126_s2 + $0x6b0] sm:$0xff]  }
 0x504   :  { %12029 = vmatprep.subr.bf16.mxu1 %v13655_v13 }
 0x506   :  { %11278 = vmatmul.mubr.msk.f32.vlgmr.msra.gmra.mrb[4].mxu1 %vm520_vm5, %v9512_v35  ;;  %v12714_v35 = vld [vmem:[%s15126_s2 + $0x6f8] sm:$0xff]  }
 0x507   :  { %12031 = vmatpush3.bf16.msra.mxu1 %v13655_v13  ;;  %11280 = vmatprep.mubr.msk.f32.mxu1 %vm520_vm5, %v9513_v36  ;;  %v12685_v13 = vld [vmem:[%s15126_s2 + $0x500] sm:$0xff]   ;;  %v12715_v36 = vld [vmem:[%s15126_s2 + $0x6b8] sm:$0xff]  }
 0x508   :  { %10680 = vmatprep.subr.bf16.mxu1 %v12684_v37  ;;  %v9791_v37 = vld [vmem:[%s15128_s3 + $0x1a0] sm:$0xff] }
 0x50a   :  { %11281 = vmatmul.mubr.msk.f32.gmra.mrb[6].mxu1 %vm520_vm5, %v9514_v38 }
 0x50b   :  { %11287 = vmatprep.mubr.msk.f32.mxu1 %vm520_vm5, %v9567_v40 }
 0x50e   :  { %11288 = vmatmul.mubr.msk.f32.vlgmr.msra.gmra.mrb[4].mxu1 %vm520_vm5, %v9568_v41 }
 0x50f   :  { %10681 = vmatpush3.bf16.msra.mxu1 %v12685_v13  ;;  %11290 = vmatprep.mubr.msk.f32.mxu1 %vm520_vm5, %v9569_v42 }
 0x510   :  { %10682 = vmatprep.subr.bf16.mxu1 %v12686_v43 }
 0x512   :  { %11291 = vmatmul.mubr.msk.f32.gmra.mrb[6].mxu1 %vm520_vm5, %v9570_v44 }
 0x513   :  { %10683 = vmatpush3.bf16.msra.mxu1 %v12687_v45  ;;  %3084 = vmatprep.mubr.bf16.mxu1 %v13011_v60  ;;  %v9792_v45 = vld [vmem:[%s15128_s3 + $0x1a8] sm:$0xff] }
 0x514   :  { %10684 = vmatprep.subr.bf16.mxu1 %v12688_v47  ;;  %v9794_v47 = vld [vmem:[%s15128_s3 + $0x1b8] sm:$0xff] }
 0x517   :  { %10685 = vmatpush3.bf16.msra.mxu1 %v12689_v48  ;;  %v9847_v48 = vld [vmem:[%s15128_s3 + $0x1c0] sm:$0xff] }
 0x518   :  { %10686 = vmatprep.subr.bf16.mxu1 %v12690_v49  ;;  %v9849_v49 = vld [vmem:[%s15128_s3 + $0x1d0] sm:$0xff] }
 0x51b   :  { %10687 = vmatpush3.bf16.msra.mxu1 %v12691_v50  ;;  %v9850_v50 = vld [vmem:[%s15128_s3 + $0x1d8] sm:$0xff] }
 0x51c   :  { %10688 = vmatprep.subr.bf16.mxu1 %v12692_v51  ;;  %v9903_v51 = vld [vmem:[%s15128_s3 + $0x1e0] sm:$0xff] }
 0x51f   :  { %10689 = vmatpush3.bf16.msra.mxu1 %v12693_v52  ;;  %v9904_v52 = vld [vmem:[%s15128_s3 + $0x1e8] sm:$0xff] }
 0x520   :  { %10690 = vmatprep.subr.bf16.mxu1 %v12694_v53  ;;  %v9906_v53 = vld [vmem:[%s15128_s3 + $0x1f8] sm:$0xff] }
 0x523   :  { %10691 = vmatpush3.bf16.msra.mxu1 %v12695_v54 }
 0x524   :  { %10692 = vmatprep.subr.bf16.mxu1 %v12696_v55 }
 0x527   :  { %10693 = vmatpush3.bf16.msra.mxu1 %v12697_v56 }
 0x528   :  { %10694 = vmatprep.subr.bf16.mxu1 %v12698_v57 }
 0x52b   :  { %10695 = vmatpush3.bf16.msra.mxu1 %v12699_v59 }
 0x52e   :  { %3085 = vmatmul.mubr.bf16.vlgmr.msra.gmra.mrb[20].mxu1 %v13009_v58 }
 0x52f   :  { %11297 = vmatprep.mubr.msk.f32.mxu1 %vm520_vm5, %v9623_v61 }
 0x601   :  { %v10696_v62 = vpop.f32.mrb[20].mxu1 }
 0x602   :  { %v10697_v63 = vpop.f32.mrb[21].mxu1 }
 0x603   :  { %v10698_v0 = vadd.f32 %v10697_v63, %v10696_v62  ;;  %v10699_v2 = vpop.f32.mrb[22].mxu1 }
 0x604   :  { %v10700_v3 = vpop.f32.mrb[23].mxu1 }
 0x605   :  { %v10701_v4 = vadd.f32 %v10700_v3, %v10699_v2 }
 0x607   :  { %v12032_v5 = vpack.c.bf16 %v10701_v4, %v10698_v0 }
 0x609   :  { %12033 = vmatprep.subr.bf16.mxu1 %v12032_v5 }
 0x60a   :  { %12035 = vmatpush3.bf16.msra.mxu1 %v12032_v5 }
 0x60b   :  { %12037 = vmatprep.subr.bf16.mxu1 %v13657_v20 }
 0x60d   :  { %11298 = vmatmul.mubr.msk.f32.vlgmr.msra.gmra.mrb[4].mxu1 %vm520_vm5, %v9624_v6 }
 0x60e   :  { %12039 = vmatpush3.bf16.msra.mxu1 %v13657_v20  ;;  %11300 = vmatprep.mubr.msk.f32.mxu1 %vm520_vm5, %v9625_v7  ;;  %v9680_v20 = vld [vmem:[%s15128_s3 + $0x168] sm:$0xff] }
 0x60f   :  { %12041 = vmatprep.subr.bf16.mxu1 %v13663_v32 }
 0x611   :  { %11301 = vmatmul.mubr.msk.f32.gmra.mrb[6].mxu1 %vm520_vm5, %v9626_v8 }
 0x612   :  { %11307 = vmatprep.mubr.msk.f32.mxu1 %vm520_vm5, %v9679_v9  ;;  %v4580_v9 = vld [vmem:[%s15129_s4 + $0x8] sm:$0xff] }
 0x615   :  { %11308 = vmatmul.mubr.msk.f32.vlgmr.msra.gmra.mrb[4].mxu1 %vm520_vm5, %v9680_v20  ;;  %v4581_v20 = vld [vmem:[%s15129_s4 + $0x10] sm:$0xff] }
 0x616   :  { %12043 = vmatpush3.bf16.msra.mxu1 %v13663_v32  ;;  %11310 = vmatprep.mubr.msk.f32.mxu1 %vm520_vm5, %v9681_v10  ;;  %v12701_v32 = vld [vmem:[%s15126_s2 + $0x680] sm:$0xff]   ;;  %v4582_v10 = vld [vmem:[%s15129_s4 + $0x18] sm:$0xff] }
 0x617   :  { %10764 = vmatprep.subr.bf16.mxu1 %v12700_v11 }
 0x619   :  { %11311 = vmatmul.mubr.msk.f32.gmra.mrb[6].mxu1 %vm520_vm5, %v9682_v12 }
 0x61a   :  { %11317 = vmatprep.mubr.msk.f32.mxu1 %vm520_vm5, %v9735_v14 }
 0x61d   :  { %11318 = vmatmul.mubr.msk.f32.vlgmr.msra.gmra.mrb[4].mxu1 %vm520_vm5, %v9736_v15 }
 0x61e   :  { %10765 = vmatpush3.bf16.msra.mxu1 %v12701_v32  ;;  %11320 = vmatprep.mubr.msk.f32.mxu1 %vm520_vm5, %v9737_v16 }
 0x61f   :  { %10766 = vmatprep.subr.bf16.mxu1 %v12702_v17 }
 0x621   :  { %11321 = vmatmul.mubr.msk.f32.gmra.mrb[6].mxu1 %vm520_vm5, %v9738_v18 }
 0x622   :  { %10767 = vmatpush3.bf16.msra.mxu1 %v12703_v19  ;;  %3912 = vmatprep.mubr.bf16.mxu1 %v13011_v60  ;;  %v12709_v60 = vld [vmem:[%s15126_s2 + $0x6a0] sm:$0xff]  }
 0x623   :  { %10768 = vmatprep.subr.bf16.mxu1 %v12704_v21 }
 0x626   :  { %10769 = vmatpush3.bf16.msra.mxu1 %v12705_v22 }
 0x627   :  { %10770 = vmatprep.subr.bf16.mxu1 %v12706_v24 }
 0x62a   :  { %10771 = vmatpush3.bf16.msra.mxu1 %v12707_v26 }
 0x62b   :  { %10772 = vmatprep.subr.bf16.mxu1 %v12708_v27 }
 0x62e   :  { %10773 = vmatpush3.bf16.msra.mxu1 %v12709_v60 }
 0x62f   :  { %10774 = vmatprep.subr.bf16.mxu1 %v12710_v30 }
 0x632   :  { %10775 = vmatpush3.bf16.msra.mxu1 %v12711_v31 }
 0x633   :  { %10776 = vmatprep.subr.bf16.mxu1 %v12712_v33 }
 0x636   :  { %10777 = vmatpush3.bf16.msra.mxu1 %v12713_v34 }
 0x637   :  { %10778 = vmatprep.subr.bf16.mxu1 %v12714_v35 }
 0x63a   :  { %10779 = vmatpush3.bf16.msra.mxu1 %v12715_v36 }
 0x63d   :  { %3913 = vmatmul.mubr.bf16.vlgmr.msra.gmra.mrb[24].mxu1 %v13009_v58  ;;  %v9793_v58 = vld [vmem:[%s15128_s3 + $0x1b0] sm:$0xff] }
 0x63e   :  { %11327 = vmatprep.mubr.msk.f32.mxu1 %vm520_vm5, %v9791_v37 }
 0x710   :  { %v10780_v38 = vpop.f32.mrb[24].mxu1 }
 0x711   :  { %v10781_v40 = vpop.f32.mrb[25].mxu1 }
 0x712   :  { %v10782_v41 = vadd.f32 %v10781_v40, %v10780_v38  ;;  %v10783_v13 = vpop.f32.mrb[26].mxu1 }
 0x713   :  { %v10784_v42 = vpop.f32.mrb[27].mxu1 }
 0x714   :  { %v10785_v43 = vadd.f32 %v10784_v42, %v10783_v13  ;;  %v12716_v42 = vld [vmem:[%s15130_s5 + $0x20] sm:$0xff]  }
 0x715   :  { %11393 = vmatprep.subr.bf16.mxu0 %v12716_v42 }
 0x716   :  { %v12044_v44 = vpack.c.bf16 %v10785_v43, %v10782_v41  ;;  %11394 = vmatpush3.bf16.msra.mxu0 %v12716_v42  ;;  %v12749_v42 = vld [vmem:[%s15130_s5 + $0x128] sm:$0xff]  }
 0x718   :  { %12045 = vmatprep.subr.bf16.mxu1 %v12044_v44 }
 0x719   :  { %12047 = vmatpush3.bf16.msra.mxu1 %v12044_v44 }
 0x71a   :  { %12049 = vmatprep.subr.bf16.mxu1 %v13665_v39 }
 0x71c   :  { %11328 = vmatmul.mubr.msk.f32.vlgmr.msra.gmra.mrb[4].mxu1 %vm520_vm5, %v9792_v45 }
 0x71d   :  { %12051 = vmatpush3.bf16.msra.mxu1 %v13665_v39  ;;  %11330 = vmatprep.mubr.msk.f32.mxu1 %vm520_vm5, %v9793_v58  ;;  %v9848_v39 = vld [vmem:[%s15128_s3 + $0x1c8] sm:$0xff] }
 0x71e   :  { %12053 = vmatprep.subr.bf16.mxu1 %v13667_v46 }
 0x720   :  { %11331 = vmatmul.mubr.msk.f32.gmra.mrb[6].mxu1 %vm520_vm5, %v9794_v47 }
 0x721   :  { %11337 = vmatprep.mubr.msk.f32.mxu1 %vm520_vm5, %v9847_v48 }
 0x724   :  { %11338 = vmatmul.mubr.msk.f32.vlgmr.msra.gmra.mrb[4].mxu1 %vm520_vm5, %v9848_v39 }
 0x725   :  { %12055 = vmatpush3.bf16.msra.mxu1 %v13667_v46  ;;  %11340 = vmatprep.mubr.msk.f32.mxu1 %vm520_vm5, %v9849_v49  ;;  %v9905_v46 = vld [vmem:[%s15128_s3 + $0x1f0] sm:$0xff] }
 0x728   :  { %11341 = vmatmul.mubr.msk.f32.gmra.mrb[6].mxu1 %vm520_vm5, %v9850_v50 }
 0x729   :  { %11347 = vmatprep.mubr.msk.f32.mxu1 %vm520_vm5, %v9903_v51  ;;  %v12717_v51 = vld [vmem:[%s15130_s5] sm:$0xff]  }
 0x72c   :  { %11348 = vmatmul.mubr.msk.f32.vlgmr.msra.gmra.mrb[4].mxu1 %vm520_vm5, %v9904_v52 }
 0x72d   :  { %11350 = vmatprep.mubr.msk.f32.mxu1 %vm520_vm5, %v9905_v46  ;;  %v12718_v46 = vld [vmem:[%s15130_s5 + $0x28] sm:$0xff]  }
 0x72e   :  { %11395 = vmatprep.subr.bf16.mxu0 %v12718_v46 }
 0x72f   :  { %11396 = vmatpush3.bf16.msra.mxu0 %v12718_v46  ;;  %v12760_v46 = vld [vmem:[%s15130_s5 + $0x180] sm:$0xff]  }
 0x730   :  { %11351 = vmatmul.mubr.msk.f32.gmra.mrb[6].mxu1 %vm520_vm5, %v9906_v53  ;;  %v12719_v53 = vld [vmem:[%s15130_s5 + $0x8] sm:$0xff]  }
 0x7ff   :  { %v11349_v54 = vpop.f32.mrb[4].mxu1 }
 0x800   :  { %v12244_v55 = vadd.f32 %v11349_v54, %v13440_v23  ;;  %v4556_v56 = vpop.f32.mrb[5].mxu1 }
 0x801   :  { %v12245_v57 = vadd.f32 %v4556_v56, %v13445_v25  ;;  %v4579_v25 = vld [vmem:[%s15129_s4] sm:$0xff]  ;;  %v12721_v56 = vld [vmem:[%s15130_s5 + $0x10] sm:$0xff]  }
 0x802   :  { %v4587_v2 = vsel %vm4583_vm6, %v12244_v55, 0.0  ;;  %11361 = vmatprep.mubr.msk.f32.mxu1 %vm4596_vm7, %v4579_v25 }
 0x803   :  { %v11352_v59 = vpop.f32.mrb[6].mxu1  ;;  %v4584_v61 = vsel %vm4583_vm6, %v12245_v57, 0.0 }
 0x804   :  { %v12246_v62 = vadd.f32 %v11352_v59, %v13453_v28  ;;  %4585 = vadd.xlane.f32.xlu0 %v4584_v61  ;;  %v4566_v63 = vpop.f32.mrb[7].mxu1  ;;  %v12809_v28 = vmov 0   ;;  %v12722_v59 = vld [vmem:[%s15130_s5 + $0x38] sm:$0xff]  }
 0x805   :  { %v12247_v0 = vadd.f32 %v4566_v63, %v13455_v29  ;;  %12441 = vset.pattern.permute.xlu1 %v12809_v28  ;;  %12440 = vset.pattern.permute.xlu0 %v12809_v28  ;;  %v12723_v61 = vld [vmem:[%s15130_s5 + $0x18] sm:$0xff]  }
 0x806   :  { %v4593_v23 = vsel %vm4583_vm6, %v12246_v62, 0.0 }
 0x807   :  { %v4590_v3 = vsel %vm4583_vm6, %v12247_v0, 0.0 }
 0x808   :  { %4588 = vadd.xlane.f32.xlu0 %v4587_v2  ;;  %4591 = vadd.xlane.f32.xlu1 %v4590_v3 }
 0x80c   :  { %4594 = vadd.xlane.f32.xlu1 %v4593_v23 }
 0x891   :  { %v4586_v29 = vpop.xlane.xlu0 %4585 }
 0x895   :  { %v4589_v4 = vpop.xlane.xlu0 %4588  ;;  %v4592_v5 = vpop.xlane.xlu1 %4591 }
 0x896   :  { %v12056_v6 = vpack.c.bf16 %v4589_v4, %v4586_v29 }
 0x898   :  { %12057 = vmatprep.subr.bf16.mxu1 %v12056_v6 }
 0x899   :  { %12059 = vmatpush3.bf16.msra.mxu1 %v12056_v6  ;;  %v4595_v7 = vpop.xlane.xlu1 %4594 }
 0x89a   :  { %v12060_v8 = vpack.c.bf16 %v4595_v7, %v4592_v5 }
 0x89c   :  { %12061 = vmatprep.subr.bf16.mxu1 %v12060_v8 }
 0x89d   :  { %12063 = vmatpush3.bf16.msra.mxu1 %v12060_v8 }
 0x8a0   :  { %11362 = vmatmul.mubr.msk.f32.vlgmr.msra.gmra.mrb[28].mxu1 %vm4596_vm7, %v4580_v9 }
 0x8a1   :  { %11364 = vmatprep.mubr.msk.f32.mxu1 %vm4596_vm7, %v4581_v20 }
 0x8a4   :  { %11365 = vmatmul.mubr.msk.f32.gmra.mrb[30].mxu1 %vm4596_vm7, %v4582_v10 }
 0x8a5   :  { %11375 = vmatprep.mubr.msk.f32.mxu1 %vm4596_vm7, %v4579_v25 }
 0x973   :  { %v11363_v11 = vpop.f32.mrb[28].mxu1 }
 0x974   :  { %4701 = vperm.xlu1 %12441, %v11363_v11   ;;  %v4675_v12 = vpop.f32.mrb[29].mxu1 }
 0x975   :  { %4696 = vperm.xlu0 %12440, %v4675_v12  }
 0x977   :  { %v11366_v14 = vpop.f32.mrb[30].mxu1 }
 0x978   :  { %v4685_v15 = vpop.f32.mrb[31].mxu1 }
 0x979   :  { %4706 = vperm.xlu1 %12441, %v4685_v15   ;;  %v12726_v15 = vld [vmem:[%s15130_s5 + $0x70] sm:$0xff]  }
 0x97d   :  { %4711 = vperm.xlu1 %12441, %v11366_v14   ;;  %v12725_v14 = vld [vmem:[%s15130_s5 + $0x68] sm:$0xff]  }
 0x9f3   :  { %v4702_v32 = vpop.permute.xlu1 %4701 }
 0x9f4   :  { %v14026_v16 = vsub.f32 %v12244_v55, %v4702_v32  ;;  %v4697_v17 = vpop.permute.xlu0 %4696  ;;  %v12720_v55 = vld [vmem:[%s15130_s5 + $0x30] sm:$0xff]   ;;  %v12727_v32 = vld [vmem:[%s15130_s5 + $0x78] sm:$0xff]  }
 0x9f5   :  { %v14028_v18 = vsub.f32 %v12245_v57, %v4697_v17  ;;  %11397 = vmatprep.subr.bf16.mxu0 %v12720_v55  ;;  %v12729_v17 = vld [vmem:[%s15130_s5 + $0x88] sm:$0xff]  }
 0x9f6   :  { %v4719_v19 = vmul.f32 %v14026_v16, %v14026_v16  ;;  %11398 = vmatpush3.bf16.msra.mxu0 %v12720_v55  ;;  %v12763_v55 = vld [vmem:[%s15130_s5 + $0x198] sm:$0xff]  }
 0x9f7   :  { %v4718_v21 = vmul.f32 %v14028_v18, %v14028_v18  ;;  %11399 = vmatprep.subr.bf16.mxu0 %v12722_v59 }
 0x9f8   :  { %v4707_v22 = vpop.permute.xlu1 %4706  ;;  %v4725_v24 = vsel %vm4583_vm6, %v4719_v19, 0.0  ;;  %v12731_v19 = vld [vmem:[%s15130_s5 + $0x98] sm:$0xff]  }
 0x9f9   :  { %v14035_v26 = vsub.f32 %v12247_v0, %v4707_v22  ;;  %4726 = vadd.xlane.f32.xlu0 %v4725_v24  ;;  %v4722_v27 = vsel %vm4583_vm6, %v4718_v21, 0.0  ;;  %v12732_v21 = vld [vmem:[%s15130_s5 + $0xa0] sm:$0xff]   ;;  %v12733_v22 = vld [vmem:[%s15130_s5 + $0xa8] sm:$0xff]   ;;  %v12734_v24 = vld [vmem:[%s15130_s5 + $0xb0] sm:$0xff]  }
 0x9fa   :  { %4723 = vadd.xlane.f32.xlu1 %v4722_v27  ;;  %11400 = vmatpush3.bf16.msra.mxu0 %v12722_v59  ;;  %v12736_v27 = vld [vmem:[%s15130_s5 + $0xc0] sm:$0xff]   ;;  %v12766_v59 = vld [vmem:[%s15130_s5 + $0x1b0] sm:$0xff]  }
 0x9fb   :  { %v4720_v60 = vmul.f32 %v14035_v26, %v14035_v26 }
 0x9fc   :  { %v4712_v30 = vpop.permute.xlu1 %4711 }
 0x9fd   :  { %v14040_v31 = vsub.f32 %v12246_v62, %v4712_v30  ;;  %v4728_v33 = vsel %vm4583_vm6, %v4720_v60, 0.0  ;;  %v12724_v62 = vld [vmem:[%s15130_s5 + $0x60] sm:$0xff]   ;;  %v12737_v60 = vld [vmem:[%s15130_s5 + $0xc8] sm:$0xff]   ;;  %v12738_v30 = vld [vmem:[%s15130_s5 + $0xd0] sm:$0xff]  }
 0x9fe   :  { %4729 = vadd.xlane.f32.xlu1 %v4728_v33  ;;  %11477 = vmatprep.subr.bf16.mxu0 %v12724_v62  ;;  %v12740_v33 = vld [vmem:[%s15130_s5 + $0xe0] sm:$0xff]  }
 0x9ff   :  { %v4721_v34 = vmul.f32 %v14040_v31, %v14040_v31 }
 0xa01   :  { %v4731_v35 = vsel %vm4583_vm6, %v4721_v34, 0.0  ;;  %v12741_v34 = vld [vmem:[%s15130_s5 + $0xe8] sm:$0xff]  }
 0xa02   :  { %4732 = vadd.xlane.f32.xlu1 %v4731_v35  ;;  %v12742_v35 = vld [vmem:[%s15130_s5 + $0xf0] sm:$0xff]  }
 0xa86   :  { %v4727_v36 = vpop.xlane.xlu0 %4726 }
 0xa87   :  { %v4724_v37 = vpop.xlane.xlu1 %4723 }
 0xa88   :  { %v12064_v38 = vpack.c.bf16 %v4727_v36, %v4724_v37  ;;  %v12743_v36 = vld [vmem:[%s15130_s5 + $0xf8] sm:$0xff]   ;;  %v12744_v37 = vld [vmem:[%s15130_s5 + $0x100] sm:$0xff]  }
 0xa8a   :  { %12065 = vmatprep.subr.bf16.mxu1 %v12064_v38 }
 0xa8b   :  { %12067 = vmatpush3.bf16.msra.mxu1 %v12064_v38  ;;  %v4730_v40 = vpop.xlane.xlu1 %4729  ;;  %v12745_v38 = vld [vmem:[%s15130_s5 + $0x108] sm:$0xff]  }
 0xa8f   :  { %v4733_v41 = vpop.xlane.xlu1 %4732 }
 0xa90   :  { %v12068_v13 = vpack.c.bf16 %v4733_v41, %v4730_v40  ;;  %v12746_v40 = vld [vmem:[%s15130_s5 + $0x110] sm:$0xff]   ;;  %v12747_v41 = vld [vmem:[%s15130_s5 + $0x118] sm:$0xff]  }
 0xa92   :  { %12069 = vmatprep.subr.bf16.mxu1 %v12068_v13 }
 0xa93   :  { %12071 = vmatpush3.bf16.msra.mxu1 %v12068_v13  ;;  %v12748_v13 = vld [vmem:[%s15130_s5 + $0x120] sm:$0xff]  }
 0xa94   :  { %11381 = vmatprep.subr.bf16.mxu1 %v12717_v51 }
 0xa96   :  { %11376 = vmatmul.mubr.msk.f32.vlgmr.msra.gmra.mrb[32].mxu1 %vm4596_vm7, %v4580_v9 }
 0xa97   :  { %11378 = vmatprep.mubr.msk.f32.mxu1 %vm4596_vm7, %v4581_v20  ;;  %11382 = vmatpush3.bf16.msra.mxu1 %v12717_v51  ;;  %v12758_v51 = vld [vmem:[%s15130_s5 + $0x170] sm:$0xff]  }
 0xa98   :  { %11383 = vmatprep.subr.bf16.mxu1 %v12719_v53 }
 0xa9a   :  { %11379 = vmatmul.mubr.msk.f32.gmra.mrb[34].mxu1 %vm4596_vm7, %v4582_v10 }
 0xa9b   :  { %11384 = vmatpush3.bf16.msra.mxu1 %v12719_v53  ;;  %v12761_v53 = vld [vmem:[%s15130_s5 + $0x188] sm:$0xff]  }
 0xa9c   :  { %11385 = vmatprep.subr.bf16.mxu1 %v12721_v56 }
 0xa9f   :  { %11386 = vmatpush3.bf16.msra.mxu1 %v12721_v56  ;;  %v12764_v56 = vld [vmem:[%s15130_s5 + $0x1a0] sm:$0xff]  }
 0xaa0   :  { %11387 = vmatprep.subr.bf16.mxu1 %v12723_v61 }
 0xaa3   :  { %11388 = vmatpush3.bf16.msra.mxu1 %v12723_v61  ;;  %v12767_v61 = vld [vmem:[%s15130_s5 + $0x1b8] sm:$0xff]  }
 0xb69   :  { %v11377_v43 = vpop.f32.mrb[32].mxu1 }
 0xb6a   :  { %v4806_v44 = vadd.f32 1e-05, %v11377_v43  ;;  %v4800_v45 = vpop.f32.mrb[33].mxu1  ;;  %v9939_v43 = vld [vmem:[%s15131_s6 + $0x40] sm:$0xff] }
 0xb6b   :  { %v4801_v58 = vadd.f32 1e-05, %v4800_v45  ;;  %v12751_v45 = vld [vmem:[%s15130_s5 + $0x138] sm:$0xff]  }
 0xb6c   :  { %12780 = vrsqrt.f32 %v4806_v44  ;;  %v12750_v44 = vld [vmem:[%s15130_s5 + $0x130] sm:$0xff]  }
 0xb6d   :  { %12782 = vrsqrt.f32 %v4801_v58  ;;  %v11380_v47 = vpop.f32.mrb[34].mxu1  ;;  %v12752_v58 = vld [vmem:[%s15130_s5 + $0x140] sm:$0xff]  }
 0xb6e   :  { %v4810_v48 = vpop.f32.mrb[35].mxu1  ;;  %v4816_v49 = vadd.f32 1e-05, %v11380_v47  ;;  %v12753_v47 = vld [vmem:[%s15130_s5 + $0x148] sm:$0xff]  }
 0xb6f   :  { %v4811_v39 = vadd.f32 1e-05, %v4810_v48  ;;  %v12754_v48 = vld [vmem:[%s15130_s5 + $0x150] sm:$0xff]  }
 0xb71   :  { %12784 = vrsqrt.f32 %v4811_v39  ;;  %v12755_v39 = vld [vmem:[%s15130_s5 + $0x158] sm:$0xff]  }
 0xb72   :  { %12786 = vrsqrt.f32 %v4816_v49  ;;  %v12756_v49 = vld [vmem:[%s15130_s5 + $0x160] sm:$0xff]  }
 0xb76   :  { %v12781_v50 = vpop.eup %12780 }
 0xb77   :  { %v12783_v52 = vpop.eup %12782  ;;  %4830 = vperm.xlu0 %12440, %v12781_v50   ;;  %v12757_v50 = vld [vmem:[%s15130_s5 + $0x168] sm:$0xff]  }
 0xb78   :  { %4825 = vperm.xlu1 %12441, %v12783_v52   ;;  %v12759_v52 = vld [vmem:[%s15130_s5 + $0x178] sm:$0xff]  }
 0xb7b   :  { %v12785_v54 = vpop.eup %12784 }
 0xb7c   :  { %4835 = vperm.xlu1 %12441, %v12785_v54   ;;  %v12787_v57 = vpop.eup %12786  ;;  %v12762_v54 = vld [vmem:[%s15130_s5 + $0x190] sm:$0xff]  }
 0xb80   :  { %4840 = vperm.xlu1 %12441, %v12787_v57   ;;  %v12765_v57 = vld [vmem:[%s15130_s5 + $0x1a8] sm:$0xff]  }
 0xbf6   :  { %v4831_v63 = vpop.permute.xlu0 %4830 }
 0xbf7   :  { %v4844_v0 = vmul.f32 %v4831_v63, %v14026_v16  ;;  %v4826_v2 = vpop.permute.xlu1 %4825  ;;  %v12728_v16 = vld [vmem:[%s15130_s5 + $0x80] sm:$0xff]   ;;  %v12769_v63 = vld [vmem:[%s15130_s5 + $0x1c8] sm:$0xff]  }
 0xbf8   :  { %v4843_v3 = vmul.f32 %v4826_v2, %v14028_v18  ;;  %v12730_v18 = vld [vmem:[%s15130_s5 + $0x90] sm:$0xff]   ;;  %v12771_v2 = vld [vmem:[%s15130_s5 + $0x1d8] sm:$0xff]  }
 0xbf9   :  { %vm4848_vm8 = vcmp.ge.f32.partialorder %v4844_v0, 0.0  ;;  %v4852_v23 = vmul.f32 0.2, %v4844_v0 }
 0xbfa   :  { %vm4847_vm9 = vcmp.ge.f32.partialorder %v4843_v3, 0.0  ;;  %v4851_v25 = vmul.f32 0.2, %v4843_v3 }
 0xbfb   :  { %v4856_v28 = vsel %vm4848_vm8, %v4844_v0, %v4852_v23  ;;  %v4836_v29 = vpop.permute.xlu1 %4835  ;;  %v12770_v0 = vld [vmem:[%s15130_s5 + $0x1d0] sm:$0xff]   ;;  %v12773_v23 = vld [vmem:[%s15130_s5 + $0x1e8] sm:$0xff]  }
 0xbfc   :  { %v4855_v4 = vsel %vm4847_vm9, %v4843_v3, %v4851_v25  ;;  %v4845_v5 = vmul.f32 %v4836_v29, %v14035_v26  ;;  %v12735_v26 = vld [vmem:[%s15130_s5 + $0xb8] sm:$0xff]   ;;  %v12772_v3 = vld [vmem:[%s15130_s5 + $0x1e0] sm:$0xff]   ;;  %v12774_v25 = vld [vmem:[%s15130_s5 + $0x1f0] sm:$0xff]  }
 0xbfd   :  { %v14079_v6 = vpack.c.bf16 %v4856_v28, %v4855_v4  ;;  %v12775_v28 = vld [vmem:[%s15130_s5 + $0x1f8] sm:$0xff]  }
 0xbfe   :  { %v4853_v8 = vmul.f32 0.2, %v4845_v5  ;;  %vm4849_vm10 = vcmp.ge.f32.partialorder %v4845_v5, 0.0 }
 0xbff   :  { %11389 = vmatprep.mubr.msk.bf16.mxu1 %vm4583_vm6, %v14079_v6  ;;  %11401 = vmatprep.mubr.msk.bf16.mxu0 %vm4583_vm6, %v14079_v6  ;;  %v4841_v7 = vpop.permute.xlu1 %4840 }
 0xc00   :  { %v4846_v9 = vmul.f32 %v4841_v7, %v14040_v31  ;;  %v4857_v10 = vsel %vm4849_vm10, %v4845_v5, %v4853_v8  ;;  %v12739_v31 = vld [vmem:[%s15130_s5 + $0xd8] sm:$0xff]  }
 0xc02   :  { %vm4850_vm11 = vcmp.ge.f32.partialorder %v4846_v9, 0.0  ;;  %v4854_v20 = vmul.f32 0.2, %v4846_v9 }
 0xc04   :  { %v4858_v11 = vsel %vm4850_vm11, %v4846_v9, %v4854_v20 }
 0xc05   :  { %v14086_v12 = vpack.c.bf16 %v4858_v11, %v4857_v10 }
 0xc07   :  { %11390 = vmatmul.mubr.msk.bf16.vlgmr.msra.gmra.mrb[36].mxu1 %vm4583_vm6, %v14086_v12  ;;  %11402 = vmatmul.mubr.msk.bf16.vlgmr.msra.gmra.mrb[48].mxu0 %vm4583_vm6, %v14086_v12 }
 0xc08   :  { %11478 = vmatpush3.bf16.msra.mxu0 %v12724_v62  ;;  %11485 = vmatprep.mubr.msk.bf16.mxu0 %vm4583_vm6, %v14079_v6  ;;  %v12768_v62 = vld [vmem:[%s15130_s5 + $0x1c0] sm:$0xff]  }
 0xc09   :  { %11479 = vmatprep.subr.bf16.mxu0 %v12725_v14  ;;  %11413 = vmatprep.mubr.msk.f32.mxu1 %vm4596_vm7, %v9939_v43 }
 0xc0c   :  { %11480 = vmatpush3.bf16.msra.mxu0 %v12725_v14 }
 0xc0d   :  { %11481 = vmatprep.subr.bf16.mxu0 %v12726_v15 }
 0xc10   :  { %11482 = vmatpush3.bf16.msra.mxu0 %v12726_v15 }
 0xc11   :  { %11483 = vmatprep.subr.bf16.mxu0 %v12727_v32 }
 0xc14   :  { %11484 = vmatpush3.bf16.msra.mxu0 %v12727_v32 }
 0xc15   :  { %11509 = vmatprep.subr.bf16.mxu0 %v12728_v16 }
 0xc17   :  { %11486 = vmatmul.mubr.msk.bf16.vlgmr.msra.gmra.mrb[52].mxu0 %vm4583_vm6, %v14086_v12 }
 0xc18   :  { %11510 = vmatpush3.bf16.msra.mxu0 %v12728_v16  ;;  %11517 = vmatprep.mubr.msk.bf16.mxu0 %vm4583_vm6, %v14079_v6  ;;  %v9940_v16 = vld [vmem:[%s15131_s6 + $0x48] sm:$0xff] }
 0xc19   :  { %11511 = vmatprep.subr.bf16.mxu0 %v12729_v17 }
 0xc1c   :  { %11512 = vmatpush3.bf16.msra.mxu0 %v12729_v17  ;;  %v9941_v17 = vld [vmem:[%s15131_s6 + $0x50] sm:$0xff] }
 0xc1d   :  { %11513 = vmatprep.subr.bf16.mxu0 %v12730_v18 }
 0xc20   :  { %11514 = vmatpush3.bf16.msra.mxu0 %v12730_v18  ;;  %v9942_v18 = vld [vmem:[%s15131_s6 + $0x58] sm:$0xff] }
 0xc21   :  { %11515 = vmatprep.subr.bf16.mxu0 %v12731_v19 }
 0xc24   :  { %11516 = vmatpush3.bf16.msra.mxu0 %v12731_v19 }
 0xc25   :  { %11541 = vmatprep.subr.bf16.mxu0 %v12732_v21 }
 0xc27   :  { %11518 = vmatmul.mubr.msk.bf16.vlgmr.msra.gmra.mrb[56].mxu0 %vm4583_vm6, %v14086_v12 }
 0xc28   :  { %11542 = vmatpush3.bf16.msra.mxu0 %v12732_v21  ;;  %11549 = vmatprep.mubr.msk.bf16.mxu0 %vm4583_vm6, %v14079_v6  ;;  %v9943_v21 = vld [vmem:[%s15131_s6 + $0x60] sm:$0xff] }
 0xc29   :  { %11543 = vmatprep.subr.bf16.mxu0 %v12733_v22 }
 0xc2c   :  { %11544 = vmatpush3.bf16.msra.mxu0 %v12733_v22  ;;  %v12776_v22 = vld [vmem:[%s15130_s5 + $0x40] sm:$0xff]  }
 0xc2d   :  { %11545 = vmatprep.subr.bf16.mxu0 %v12734_v24 }
 0xc30   :  { %11546 = vmatpush3.bf16.msra.mxu0 %v12734_v24 }
 0xc31   :  { %11547 = vmatprep.subr.bf16.mxu0 %v12735_v26 }
 0xc34   :  { %11548 = vmatpush3.bf16.msra.mxu0 %v12735_v26 }
 0xc35   :  { %11573 = vmatprep.subr.bf16.mxu0 %v12736_v27 }
 0xc37   :  { %11550 = vmatmul.mubr.msk.bf16.vlgmr.msra.gmra.mrb[60].mxu0 %vm4583_vm6, %v14086_v12 }
 0xc38   :  { %11574 = vmatpush3.bf16.msra.mxu0 %v12736_v27  ;;  %11581 = vmatprep.mubr.msk.bf16.mxu0 %vm4583_vm6, %v14079_v6 }
 0xc39   :  { %11575 = vmatprep.subr.bf16.mxu0 %v12737_v60 }
 0xc3c   :  { %11576 = vmatpush3.bf16.msra.mxu0 %v12737_v60 }
 0xc3d   :  { %11577 = vmatprep.subr.bf16.mxu0 %v12738_v30 }
 0xc40   :  { %11578 = vmatpush3.bf16.msra.mxu0 %v12738_v30  ;;  %v9944_v30 = vld [vmem:[%s15131_s6 + $0x68] sm:$0xff] }
 0xc41   :  { %11579 = vmatprep.subr.bf16.mxu0 %v12739_v31 }
 0xc44   :  { %11580 = vmatpush3.bf16.msra.mxu0 %v12739_v31 }
 0xc45   :  { %11605 = vmatprep.subr.bf16.mxu0 %v12740_v33 }
 0xc47   :  { %11582 = vmatmul.mubr.msk.bf16.vlgmr.msra.gmra.mrb[64].mxu0 %vm4583_vm6, %v14086_v12 }
 0xc48   :  { %11606 = vmatpush3.bf16.msra.mxu0 %v12740_v33  ;;  %11613 = vmatprep.mubr.msk.bf16.mxu0 %vm4583_vm6, %v14079_v6  ;;  %v9945_v33 = vld [vmem:[%s15131_s6 + $0x70] sm:$0xff] }
 0xc49   :  { %11607 = vmatprep.subr.bf16.mxu0 %v12741_v34 }
 0xc4c   :  { %11608 = vmatpush3.bf16.msra.mxu0 %v12741_v34  ;;  %v9946_v34 = vld [vmem:[%s15131_s6 + $0x78] sm:$0xff] }
 0xc4d   :  { %11609 = vmatprep.subr.bf16.mxu0 %v12742_v35 }
 0xc50   :  { %11610 = vmatpush3.bf16.msra.mxu0 %v12742_v35  ;;  %v4948_v35 = vld [vmem:[%s15131_s6] sm:$0xff] }
 0xc51   :  { %11611 = vmatprep.subr.bf16.mxu0 %v12743_v36 }
 0xc54   :  { %11612 = vmatpush3.bf16.msra.mxu0 %v12743_v36  ;;  %v4949_v36 = vld [vmem:[%s15131_s6 + $0x8] sm:$0xff] }
 0xc55   :  { %11637 = vmatprep.subr.bf16.mxu0 %v12744_v37 }
 0xc57   :  { %11614 = vmatmul.mubr.msk.bf16.vlgmr.msra.gmra.mrb[68].mxu0 %vm4583_vm6, %v14086_v12 }
 0xc58   :  { %11638 = vmatpush3.bf16.msra.mxu0 %v12744_v37  ;;  %11645 = vmatprep.mubr.msk.bf16.mxu0 %vm4583_vm6, %v14079_v6  ;;  %v4950_v37 = vld [vmem:[%s15131_s6 + $0x10] sm:$0xff] }
 0xc59   :  { %11639 = vmatprep.subr.bf16.mxu0 %v12745_v38 }
 0xc5c   :  { %11640 = vmatpush3.bf16.msra.mxu0 %v12745_v38  ;;  %v12777_v38 = vld [vmem:[%s15130_s5 + $0x48] sm:$0xff]  }
 0xc5d   :  { %11641 = vmatprep.subr.bf16.mxu0 %v12746_v40 }
 0xc60   :  { %11642 = vmatpush3.bf16.msra.mxu0 %v12746_v40  ;;  %v4951_v40 = vld [vmem:[%s15131_s6 + $0x18] sm:$0xff] }
 0xc61   :  { %11643 = vmatprep.subr.bf16.mxu0 %v12747_v41 }
 0xc64   :  { %11644 = vmatpush3.bf16.msra.mxu0 %v12747_v41 }
 0xc65   :  { %11669 = vmatprep.subr.bf16.mxu0 %v12748_v13 }
 0xc67   :  { %11646 = vmatmul.mubr.msk.bf16.vlgmr.msra.gmra.mrb[72].mxu0 %vm4583_vm6, %v14086_v12 }
 0xc68   :  { %11670 = vmatpush3.bf16.msra.mxu0 %v12748_v13  ;;  %11677 = vmatprep.mubr.msk.bf16.mxu0 %vm4583_vm6, %v14079_v6  ;;  %v4952_v13 = vld [vmem:[%s15131_s6 + $0x20] sm:$0xff] }
 0xc69   :  { %11671 = vmatprep.subr.bf16.mxu0 %v12749_v42 }
 0xc6c   :  { %11672 = vmatpush3.bf16.msra.mxu0 %v12749_v42  ;;  %v12778_v42 = vld [vmem:[%s15130_s5 + $0x50] sm:$0xff]  }
 0xc6d   :  { %11673 = vmatprep.subr.bf16.mxu0 %v12750_v44 }
 0xc70   :  { %11674 = vmatpush3.bf16.msra.mxu0 %v12750_v44 }
 0xc71   :  { %11675 = vmatprep.subr.bf16.mxu0 %v12751_v45 }
 0xc74   :  { %11676 = vmatpush3.bf16.msra.mxu0 %v12751_v45 }
 0xc75   :  { %11701 = vmatprep.subr.bf16.mxu0 %v12752_v58 }
 0xc77   :  { %11678 = vmatmul.mubr.msk.bf16.vlgmr.msra.gmra.mrb[76].mxu0 %vm4583_vm6, %v14086_v12 }
 0xc78   :  { %11702 = vmatpush3.bf16.msra.mxu0 %v12752_v58  ;;  %11709 = vmatprep.mubr.msk.bf16.mxu0 %vm4583_vm6, %v14079_v6 }
 0xc79   :  { %11703 = vmatprep.subr.bf16.mxu0 %v12753_v47 }
 0xc7c   :  { %11704 = vmatpush3.bf16.msra.mxu0 %v12753_v47  ;;  %v4953_v47 = vld [vmem:[%s15131_s6 + $0x28] sm:$0xff] }
 0xc7d   :  { %11705 = vmatprep.subr.bf16.mxu0 %v12754_v48 }
 0xc80   :  { %11706 = vmatpush3.bf16.msra.mxu0 %v12754_v48 }
 0xc81   :  { %11707 = vmatprep.subr.bf16.mxu0 %v12755_v39 }
 0xc84   :  { %11708 = vmatpush3.bf16.msra.mxu0 %v12755_v39  ;;  %v4954_v39 = vld [vmem:[%s15131_s6 + $0x30] sm:$0xff] }
 0xc85   :  { %11733 = vmatprep.subr.bf16.mxu0 %v12756_v49 }
 0xc87   :  { %11710 = vmatmul.mubr.msk.bf16.vlgmr.msra.gmra.mrb[80].mxu0 %vm4583_vm6, %v14086_v12 }
 0xc88   :  { %11734 = vmatpush3.bf16.msra.mxu0 %v12756_v49  ;;  %11741 = vmatprep.mubr.msk.bf16.mxu0 %vm4583_vm6, %v14079_v6  ;;  %v12779_v49 = vld [vmem:[%s15130_s5 + $0x58] sm:$0xff]  }
 0xc89   :  { %11735 = vmatprep.subr.bf16.mxu0 %v12757_v50 }
 0xc8c   :  { %11736 = vmatpush3.bf16.msra.mxu0 %v12757_v50  ;;  %v4955_v50 = vld [vmem:[%s15131_s6 + $0x38] sm:$0xff] }
 0xc8d   :  { %11737 = vmatprep.subr.bf16.mxu0 %v12758_v51 }
 0xc90   :  { %11738 = vmatpush3.bf16.msra.mxu0 %v12758_v51 }
 0xc91   :  { %11739 = vmatprep.subr.bf16.mxu0 %v12759_v52 }
 0xc94   :  { %11740 = vmatpush3.bf16.msra.mxu0 %v12759_v52 }
 0xc95   :  { %11765 = vmatprep.subr.bf16.mxu0 %v12760_v46 }
 0xc97   :  { %11742 = vmatmul.mubr.msk.bf16.vlgmr.msra.gmra.mrb[84].mxu0 %vm4583_vm6, %v14086_v12 }
 0xc98   :  { %11766 = vmatpush3.bf16.msra.mxu0 %v12760_v46  ;;  %11773 = vmatprep.mubr.msk.bf16.mxu0 %vm4583_vm6, %v14079_v6 }
 0xc99   :  { %11767 = vmatprep.subr.bf16.mxu0 %v12761_v53 }
 0xc9c   :  { %11768 = vmatpush3.bf16.msra.mxu0 %v12761_v53 }
 0xc9d   :  { %11769 = vmatprep.subr.bf16.mxu0 %v12762_v54 }
 0xca0   :  { %11770 = vmatpush3.bf16.msra.mxu0 %v12762_v54 }
 0xca1   :  { %11771 = vmatprep.subr.bf16.mxu0 %v12763_v55 }
 0xca4   :  { %11772 = vmatpush3.bf16.msra.mxu0 %v12763_v55 }
 0xca5   :  { %11797 = vmatprep.subr.bf16.mxu0 %v12764_v56 }
 0xca7   :  { %11774 = vmatmul.mubr.msk.bf16.vlgmr.msra.gmra.mrb[88].mxu0 %vm4583_vm6, %v14086_v12 }
 0xca8   :  { %11798 = vmatpush3.bf16.msra.mxu0 %v12764_v56  ;;  %11805 = vmatprep.mubr.msk.bf16.mxu0 %vm4583_vm6, %v14079_v6 }
 0xca9   :  { %11799 = vmatprep.subr.bf16.mxu0 %v12765_v57 }
 0xcac   :  { %11800 = vmatpush3.bf16.msra.mxu0 %v12765_v57 }
 0xcad   :  { %11801 = vmatprep.subr.bf16.mxu0 %v12766_v59 }
 0xcb0   :  { %11802 = vmatpush3.bf16.msra.mxu0 %v12766_v59 }
 0xcb1   :  { %11803 = vmatprep.subr.bf16.mxu0 %v12767_v61 }
 0xcb4   :  { %11804 = vmatpush3.bf16.msra.mxu0 %v12767_v61 }
 0xcb5   :  { %11829 = vmatprep.subr.bf16.mxu0 %v12768_v62 }
 0xcb7   :  { %11806 = vmatmul.mubr.msk.bf16.vlgmr.msra.gmra.mrb[92].mxu0 %vm4583_vm6, %v14086_v12 }
 0xcb8   :  { %11830 = vmatpush3.bf16.msra.mxu0 %v12768_v62  ;;  %11837 = vmatprep.mubr.msk.bf16.mxu0 %vm4583_vm6, %v14079_v6 }
 0xcb9   :  { %11831 = vmatprep.subr.bf16.mxu0 %v12769_v63 }
 0xcbc   :  { %11832 = vmatpush3.bf16.msra.mxu0 %v12769_v63 }
 0xcbd   :  { %11833 = vmatprep.subr.bf16.mxu0 %v12770_v0 }
 0xcc0   :  { %11834 = vmatpush3.bf16.msra.mxu0 %v12770_v0 }
 0xcc1   :  { %11835 = vmatprep.subr.bf16.mxu0 %v12771_v2 }
 0xcc4   :  { %11836 = vmatpush3.bf16.msra.mxu0 %v12771_v2 }
 0xcc5   :  { %11861 = vmatprep.subr.bf16.mxu0 %v12772_v3 }
 0xcc7   :  { %11838 = vmatmul.mubr.msk.bf16.vlgmr.msra.gmra.mrb[96].mxu0 %vm4583_vm6, %v14086_v12 }
 0xcc8   :  { %11862 = vmatpush3.bf16.msra.mxu0 %v12772_v3  ;;  %11869 = vmatprep.mubr.msk.bf16.mxu0 %vm4583_vm6, %v14079_v6 }
 0xcc9   :  { %11863 = vmatprep.subr.bf16.mxu0 %v12773_v23 }
 0xccc   :  { %11864 = vmatpush3.bf16.msra.mxu0 %v12773_v23 }
 0xccd   :  { %11865 = vmatprep.subr.bf16.mxu0 %v12774_v25 }
 0xcd0   :  { %11866 = vmatpush3.bf16.msra.mxu0 %v12774_v25 }
 0xcd1   :  { %11867 = vmatprep.subr.bf16.mxu0 %v12775_v28 }
 0xcd4   :  { %11868 = vmatpush3.bf16.msra.mxu0 %v12775_v28 }
 0xcd7   :  { %11870 = vmatmul.mubr.msk.bf16.vlgmr.msra.gmra.mrb[100].mxu0 %vm4583_vm6, %v14086_v12 }
 0xcda   :  { %v11391_v29 = vpop.f32.mrb[36].mxu1  ;;  %v11403_v4 = vpop.f32.mrb[48].mxu0 }
 0xcdb   :  { %v4933_v5 = vpop.f32.mrb[37].mxu1  ;;  %v5023_v7 = vpop.f32.mrb[49].mxu0 }
 0xcdc   :  { %v11392_v8 = vpop.f32.mrb[38].mxu1  ;;  %v11404_v9 = vpop.f32.mrb[50].mxu0 }
 0xcdd   :  { %v12084_v20 = vpack.c.bf16 %v11392_v8, %v11391_v29  ;;  %v12076_v10 = vpack.c.bf16 %v11404_v9, %v11403_v4  ;;  %v4936_v11 = vpop.f32.mrb[39].mxu1  ;;  %v5026_v14 = vpop.f32.mrb[51].mxu0 }
 0xcde   :  { %v12080_v15 = vpack.c.bf16 %v4936_v11, %v4933_v5  ;;  %v12072_v32 = vpack.c.bf16 %v5026_v14, %v5023_v7 }
 0xce0   :  { %12073 = vmatprep.subr.bf16.mxu1 %v12072_v32 }
 0xce1   :  { %12075 = vmatpush3.bf16.msra.mxu1 %v12072_v32 }
 0xce2   :  { %12077 = vmatprep.subr.bf16.mxu1 %v12076_v10 }
 0xce5   :  { %12079 = vmatpush3.bf16.msra.mxu1 %v12076_v10 }
 0xce6   :  { %12081 = vmatprep.subr.bf16.mxu1 %v12080_v15 }
 0xce8   :  { %11414 = vmatmul.mubr.msk.f32.vlgmr.msra.gmra.mrb[40].mxu1 %vm4596_vm7, %v9940_v16 }
 0xce9   :  { %12083 = vmatpush3.bf16.msra.mxu1 %v12080_v15  ;;  %11416 = vmatprep.mubr.msk.f32.mxu1 %vm4596_vm7, %v9941_v17 }
 0xcea   :  { %v11487_v19 = vpop.f32.mrb[52].mxu0  ;;  %12085 = vmatprep.subr.bf16.mxu1 %v12084_v20 }
 0xceb   :  { %v5600_v24 = vpop.f32.mrb[53].mxu0 }
 0xcec   :  { %v11488_v26 = vpop.f32.mrb[54].mxu0  ;;  %11417 = vmatmul.mubr.msk.f32.gmra.mrb[42].mxu1 %vm4596_vm7, %v9942_v18 }
 0xced   :  { %v14319_v27 = vpack.c.bf16 %v11488_v26, %v11487_v19  ;;  %v5603_v60 = vpop.f32.mrb[55].mxu0  ;;  %12087 = vmatpush3.bf16.msra.mxu1 %v12084_v20  ;;  %11419 = vmatprep.mubr.msk.f32.mxu1 %vm4596_vm7, %v9943_v21  ;;  %v9977_v21 = vld [vmem:[%s15131_s6 + $0x80] sm:$0xff] }
 0xcee   :  { %v14325_v31 = vpack.c.bf16 %v5603_v60, %v5600_v24  ;;  %11445 = vmatprep.subr.bf16.mxu1 %v12776_v22 }
 0xcf0   :  { %11420 = vmatmul.mubr.msk.f32.gmra.mrb[44].mxu1 %vm4596_vm7, %v9944_v30 }
 0xcf1   :  { %11422 = vmatprep.mubr.msk.f32.mxu1 %vm4596_vm7, %v9945_v33 }
 0xcf4   :  { %11423 = vmatmul.mubr.msk.f32.gmra.mrb[46].mxu1 %vm4596_vm7, %v9946_v34 }
 0xcf5   :  { %11433 = vmatprep.mubr.msk.f32.mxu1 %vm4596_vm7, %v4948_v35 }
 0xcf8   :  { %11434 = vmatmul.mubr.msk.f32.vlgmr.msra.gmra.mrb[40].mxu1 %vm4596_vm7, %v4949_v36 }
 0xcf9   :  { %11446 = vmatpush3.bf16.msra.mxu1 %v12776_v22  ;;  %11436 = vmatprep.mubr.msk.f32.mxu1 %vm4596_vm7, %v4950_v37 }
 0xcfa   :  { %v11519_v41 = vpop.f32.mrb[56].mxu0  ;;  %11447 = vmatprep.subr.bf16.mxu1 %v12777_v38 }
 0xcfb   :  { %v5828_v43 = vpop.f32.mrb[57].mxu0 }
 0xcfc   :  { %v11520_v44 = vpop.f32.mrb[58].mxu0  ;;  %11437 = vmatmul.mubr.msk.f32.gmra.mrb[42].mxu1 %vm4596_vm7, %v4951_v40 }
 0xcfd   :  { %v14361_v45 = vpack.c.bf16 %v11520_v44, %v11519_v41  ;;  %v5831_v58 = vpop.f32.mrb[59].mxu0  ;;  %11448 = vmatpush3.bf16.msra.mxu1 %v12777_v38  ;;  %11439 = vmatprep.mubr.msk.f32.mxu1 %vm4596_vm7, %v4952_v13 }
 0xcfe   :  { %v14367_v48 = vpack.c.bf16 %v5831_v58, %v5828_v43  ;;  %11449 = vmatprep.subr.bf16.mxu1 %v12778_v42 }
 0xd00   :  { %11440 = vmatmul.mubr.msk.f32.gmra.mrb[44].mxu1 %vm4596_vm7, %v4953_v47 }
 0xd01   :  { %11450 = vmatpush3.bf16.msra.mxu1 %v12778_v42  ;;  %11442 = vmatprep.mubr.msk.f32.mxu1 %vm4596_vm7, %v4954_v39 }
 0xd02   :  { %11451 = vmatprep.subr.bf16.mxu1 %v12779_v49 }
 0xd04   :  { %11443 = vmatmul.mubr.msk.f32.gmra.mrb[46].mxu1 %vm4596_vm7, %v4955_v50 }
 0xd05   :  { %11452 = vmatpush3.bf16.msra.mxu1 %v12779_v49  ;;  %11453 = vmatprep.mubr.msk.bf16.mxu1 %vm4583_vm6, %v14079_v6 }
 0xd08   :  { %11454 = vmatmul.mubr.msk.bf16.vlgmr.msra.gmra.mrb[48].mxu1 %vm4583_vm6, %v14086_v12 }
 0xd09   :  { %11465 = vmatprep.mubr.msk.f32.mxu1 %vm4596_vm7, %v9977_v21  ;;  %v10013_v21 = vld [vmem:[%s15131_s6 + $0xf0] sm:$0xff] }
 0xd0a   :  { %v11551_v51 = vpop.f32.mrb[60].mxu0 }
 0xd0b   :  { %v6056_v52 = vpop.f32.mrb[61].mxu0 }
 0xd0c   :  { %v11552_v46 = vpop.f32.mrb[62].mxu0 }
 0xd0d   :  { %v14385_v53 = vpack.c.bf16 %v11552_v46, %v11551_v51  ;;  %v6059_v54 = vpop.f32.mrb[63].mxu0 }
 0xd0e   :  { %v14387_v55 = vpack.c.bf16 %v6059_v54, %v6056_v52 }
 0xd1a   :  { %v11583_v56 = vpop.f32.mrb[64].mxu0 }
 0xd1b   :  { %v6284_v57 = vpop.f32.mrb[65].mxu0 }
 0xd1c   :  { %v11584_v59 = vpop.f32.mrb[66].mxu0 }
 0xd1d   :  { %v14389_v61 = vpack.c.bf16 %v11584_v59, %v11583_v56  ;;  %v6287_v62 = vpop.f32.mrb[67].mxu0 }
 0xd1e   :  { %v14391_v63 = vpack.c.bf16 %v6287_v62, %v6284_v57 }
 0xd2a   :  { %v11615_v6 = vpop.f32.mrb[68].mxu0 }
 0xd2b   :  { %v6512_v0 = vpop.f32.mrb[69].mxu0 }
 0xd2c   :  { %v11616_v2 = vpop.f32.mrb[70].mxu0 }
 0xd2d   :  { %v14393_v12 = vpack.c.bf16 %v11616_v2, %v11615_v6  ;;  %v6515_v3 = vpop.f32.mrb[71].mxu0 }
 0xd2e   :  { %v14395_v23 = vpack.c.bf16 %v6515_v3, %v6512_v0 }
 0xd3a   :  { %v11647_v25 = vpop.f32.mrb[72].mxu0 }
 0xd3b   :  { %v6740_v28 = vpop.f32.mrb[73].mxu0 }
 0xd3c   :  { %v11648_v29 = vpop.f32.mrb[74].mxu0 }
 0xd3d   :  { %v14397_v4 = vpack.c.bf16 %v11648_v29, %v11647_v25  ;;  %v6743_v5 = vpop.f32.mrb[75].mxu0  ;;  %v9978_v29 = vld [vmem:[%s15131_s6 + $0x88] sm:$0xff] }
 0xd3e   :  { %v14399_v7 = vpack.c.bf16 %v6743_v5, %v6740_v28  ;;  %v9979_v5 = vld [vmem:[%s15131_s6 + $0x90] sm:$0xff] }
 0xd4a   :  { %v11679_v8 = vpop.f32.mrb[76].mxu0 }
 0xd4b   :  { %v6968_v9 = vpop.f32.mrb[77].mxu0 }
 0xd4c   :  { %v11680_v20 = vpop.f32.mrb[78].mxu0 }
 0xd4d   :  { %v14401_v10 = vpack.c.bf16 %v11680_v20, %v11679_v8  ;;  %v6971_v11 = vpop.f32.mrb[79].mxu0  ;;  %v9980_v8 = vld [vmem:[%s15131_s6 + $0x98] sm:$0xff]  ;;  %v9983_v20 = vld [vmem:[%s15131_s6 + $0xb0] sm:$0xff] }
 0xd4e   :  { %v14403_v14 = vpack.c.bf16 %v6971_v11, %v6968_v9  ;;  %v9981_v9 = vld [vmem:[%s15131_s6 + $0xa0] sm:$0xff] }
 0xd4f   :  { %v10007_v11 = vld [vmem:[%s15131_s6 + $0xc0] sm:$0xff] }
 0xd5a   :  { %v11711_v15 = vpop.f32.mrb[80].mxu0 }
 0xd5b   :  { %v7196_v32 = vpop.f32.mrb[81].mxu0 }
 0xd5c   :  { %v11712_v16 = vpop.f32.mrb[82].mxu0 }
 0xd5d   :  { %v14405_v17 = vpack.c.bf16 %v11712_v16, %v11711_v15  ;;  %v7199_v18 = vpop.f32.mrb[83].mxu0  ;;  %v10008_v15 = vld [vmem:[%s15131_s6 + $0xc8] sm:$0xff]  ;;  %v10010_v16 = vld [vmem:[%s15131_s6 + $0xd8] sm:$0xff] }
 0xd5e   :  { %v14407_v19 = vpack.c.bf16 %v7199_v18, %v7196_v32  ;;  %v10009_v32 = vld [vmem:[%s15131_s6 + $0xd0] sm:$0xff]  ;;  %v10011_v18 = vld [vmem:[%s15131_s6 + $0xe0] sm:$0xff] }
 0xd6a   :  { %v11743_v22 = vpop.f32.mrb[84].mxu0 }
 0xd6b   :  { %v7424_v24 = vpop.f32.mrb[85].mxu0 }
 0xd6c   :  { %v11744_v26 = vpop.f32.mrb[86].mxu0 }
 0xd6d   :  { %v14413_v60 = vpack.c.bf16 %v11744_v26, %v11743_v22  ;;  %v7427_v30 = vpop.f32.mrb[87].mxu0  ;;  %v10037_v22 = vld [vmem:[%s15131_s6 + $0x100] sm:$0xff]  ;;  %v10039_v26 = vld [vmem:[%s15131_s6 + $0x110] sm:$0xff] }
 0xd6e   :  { %v14415_v33 = vpack.c.bf16 %v7427_v30, %v7424_v24  ;;  %v10038_v24 = vld [vmem:[%s15131_s6 + $0x108] sm:$0xff]  ;;  %v10040_v30 = vld [vmem:[%s15131_s6 + $0x118] sm:$0xff] }
 0xd7a   :  { %v11775_v34 = vpop.f32.mrb[88].mxu0 }
 0xd7b   :  { %v7652_v35 = vpop.f32.mrb[89].mxu0 }
 0xd7c   :  { %v11776_v36 = vpop.f32.mrb[90].mxu0 }
 0xd7d   :  { %v14417_v37 = vpack.c.bf16 %v11776_v36, %v11775_v34  ;;  %v7655_v38 = vpop.f32.mrb[91].mxu0  ;;  %v10041_v34 = vld [vmem:[%s15131_s6 + $0x120] sm:$0xff] }
 0xd7e   :  { %v14419_v40 = vpack.c.bf16 %v7655_v38, %v7652_v35  ;;  %v10043_v35 = vld [vmem:[%s15131_s6 + $0x130] sm:$0xff]  ;;  %v10067_v36 = vld [vmem:[%s15131_s6 + $0x140] sm:$0xff]  ;;  %v10068_v38 = vld [vmem:[%s15131_s6 + $0x148] sm:$0xff] }
 0xd8a   :  { %v11807_v41 = vpop.f32.mrb[92].mxu0 }
 0xd8b   :  { %v7880_v13 = vpop.f32.mrb[93].mxu0 }
 0xd8c   :  { %v11808_v42 = vpop.f32.mrb[94].mxu0 }
 0xd8d   :  { %v14421_v43 = vpack.c.bf16 %v11808_v42, %v11807_v41  ;;  %v7883_v44 = vpop.f32.mrb[95].mxu0  ;;  %v10069_v41 = vld [vmem:[%s15131_s6 + $0x150] sm:$0xff]  ;;  %v10071_v42 = vld [vmem:[%s15131_s6 + $0x160] sm:$0xff] }
 0xd8e   :  { %v14423_v58 = vpack.c.bf16 %v7883_v44, %v7880_v13  ;;  %v10070_v13 = vld [vmem:[%s15131_s6 + $0x158] sm:$0xff]  ;;  %v10073_v44 = vld [vmem:[%s15131_s6 + $0x170] sm:$0xff] }
 0xd9a   :  { %v11839_v47 = vpop.f32.mrb[96].mxu0 }
 0xd9b   :  { %v8108_v39 = vpop.f32.mrb[97].mxu0 }
 0xd9c   :  { %v11840_v49 = vpop.f32.mrb[98].mxu0 }
 0xd9d   :  { %v14425_v50 = vpack.c.bf16 %v11840_v49, %v11839_v47  ;;  %v8111_v51 = vpop.f32.mrb[99].mxu0  ;;  %v10097_v47 = vld [vmem:[%s15131_s6 + $0x180] sm:$0xff]  ;;  %v10099_v49 = vld [vmem:[%s15131_s6 + $0x190] sm:$0xff] }
 0xd9e   :  { %v14427_v52 = vpack.c.bf16 %v8111_v51, %v8108_v39  ;;  %v10098_v39 = vld [vmem:[%s15131_s6 + $0x188] sm:$0xff]  ;;  %v10100_v51 = vld [vmem:[%s15131_s6 + $0x198] sm:$0xff] }
 0xdaa   :  { %v11871_v46 = vpop.f32.mrb[100].mxu0 }
 0xdab   :  { %v8336_v54 = vpop.f32.mrb[101].mxu0 }
 0xdac   :  { %v11872_v56 = vpop.f32.mrb[102].mxu0 }
 0xdad   :  { %v14429_v57 = vpack.c.bf16 %v11872_v56, %v11871_v46  ;;  %v8339_v59 = vpop.f32.mrb[103].mxu0  ;;  %v10101_v46 = vld [vmem:[%s15131_s6 + $0x1a0] sm:$0xff] }
 0xdae   :  { %v14431_v62 = vpack.c.bf16 %v8339_v59, %v8336_v54  ;;  %v10103_v54 = vld [vmem:[%s15131_s6 + $0x1b0] sm:$0xff]  ;;  %v10127_v56 = vld [vmem:[%s15131_s6 + $0x1c0] sm:$0xff]  ;;  %v10128_v59 = vld [vmem:[%s15131_s6 + $0x1c8] sm:$0xff] }
 0xddb   :  { %v11455_v6 = vpop.f32.mrb[48].mxu1 }
 0xddc   :  { %v5372_v0 = vpop.f32.mrb[49].mxu1 }
 0xddd   :  { %v11456_v2 = vpop.f32.mrb[50].mxu1 }
 0xdde   :  { %v12092_v3 = vpack.c.bf16 %v11456_v2, %v11455_v6  ;;  %v5375_v25 = vpop.f32.mrb[51].mxu1  ;;  %v10129_v6 = vld [vmem:[%s15131_s6 + $0x1d0] sm:$0xff]  ;;  %v10131_v2 = vld [vmem:[%s15131_s6 + $0x1e0] sm:$0xff] }
 0xddf   :  { %v12088_v28 = vpack.c.bf16 %v5375_v25, %v5372_v0  ;;  %v10130_v0 = vld [vmem:[%s15131_s6 + $0x1d8] sm:$0xff]  ;;  %v10157_v25 = vld [vmem:[%s15131_s6 + $0x200] sm:$0xff] }
 0xde1   :  { %12089 = vmatprep.subr.bf16.mxu1 %v12088_v28 }
 0xde2   :  { %12091 = vmatpush3.bf16.msra.mxu1 %v12088_v28  ;;  %v10158_v28 = vld [vmem:[%s15131_s6 + $0x208] sm:$0xff] }
 0xde3   :  { %12093 = vmatprep.subr.bf16.mxu1 %v12092_v3 }
 0xde6   :  { %12095 = vmatpush3.bf16.msra.mxu1 %v12092_v3  ;;  %v10133_v3 = vld [vmem:[%s15131_s6 + $0x1f0] sm:$0xff] }
 0xde7   :  { %12097 = vmatprep.subr.bf16.mxu1 %v14325_v31 }
 0xde9   :  { %11466 = vmatmul.mubr.msk.f32.vlgmr.msra.gmra.mrb[40].mxu1 %vm4596_vm7, %v9978_v29  ;;  %v10159_v29 = vld [vmem:[%s15131_s6 + $0x210] sm:$0xff] }
 0xdea   :  { %12099 = vmatpush3.bf16.msra.mxu1 %v14325_v31  ;;  %11468 = vmatprep.mubr.msk.f32.mxu1 %vm4596_vm7, %v9979_v5  ;;  %v9982_v31 = vld [vmem:[%s15131_s6 + $0xa8] sm:$0xff]  ;;  %v10160_v5 = vld [vmem:[%s15131_s6 + $0x218] sm:$0xff] }
 0xdeb   :  { %12101 = vmatprep.subr.bf16.mxu1 %v14319_v27 }
 0xded   :  { %11469 = vmatmul.mubr.msk.f32.gmra.mrb[42].mxu1 %vm4596_vm7, %v9980_v8  ;;  %v10161_v8 = vld [vmem:[%s15131_s6 + $0x220] sm:$0xff] }
 0xdee   :  { %12103 = vmatpush3.bf16.msra.mxu1 %v14319_v27  ;;  %11471 = vmatprep.mubr.msk.f32.mxu1 %vm4596_vm7, %v9981_v9  ;;  %v9984_v27 = vld [vmem:[%s15131_s6 + $0xb8] sm:$0xff]  ;;  %v10163_v9 = vld [vmem:[%s15131_s6 + $0x230] sm:$0xff] }
 0xdef   :  { %12105 = vmatprep.subr.bf16.mxu1 %v14367_v48 }
 0xdf1   :  { %11472 = vmatmul.mubr.msk.f32.gmra.mrb[44].mxu1 %vm4596_vm7, %v9982_v31  ;;  %v10187_v31 = vld [vmem:[%s15131_s6 + $0x240] sm:$0xff] }
 0xdf2   :  { %11474 = vmatprep.mubr.msk.f32.mxu1 %vm4596_vm7, %v9983_v20  ;;  %v10188_v20 = vld [vmem:[%s15131_s6 + $0x248] sm:$0xff] }
 0xdf5   :  { %11475 = vmatmul.mubr.msk.f32.gmra.mrb[46].mxu1 %vm4596_vm7, %v9984_v27  ;;  %v10189_v27 = vld [vmem:[%s15131_s6 + $0x250] sm:$0xff] }
 0xdf6   :  { %11497 = vmatprep.mubr.msk.f32.mxu1 %vm4596_vm7, %v10007_v11  ;;  %v10190_v11 = vld [vmem:[%s15131_s6 + $0x258] sm:$0xff] }
 0xdf9   :  { %11498 = vmatmul.mubr.msk.f32.vlgmr.msra.gmra.mrb[40].mxu1 %vm4596_vm7, %v10008_v15  ;;  %v10191_v15 = vld [vmem:[%s15131_s6 + $0x260] sm:$0xff] }
 0xdfa   :  { %12107 = vmatpush3.bf16.msra.mxu1 %v14367_v48  ;;  %11500 = vmatprep.mubr.msk.f32.mxu1 %vm4596_vm7, %v10009_v32  ;;  %v10012_v48 = vld [vmem:[%s15131_s6 + $0xe8] sm:$0xff]  ;;  %v10193_v32 = vld [vmem:[%s15131_s6 + $0x270] sm:$0xff] }
 0xdfb   :  { %12109 = vmatprep.subr.bf16.mxu1 %v14361_v45 }
 0xdfd   :  { %11501 = vmatmul.mubr.msk.f32.gmra.mrb[42].mxu1 %vm4596_vm7, %v10010_v16  ;;  %v10217_v16 = vld [vmem:[%s15131_s6 + $0x280] sm:$0xff] }
 0xdfe   :  { %12111 = vmatpush3.bf16.msra.mxu1 %v14361_v45  ;;  %11503 = vmatprep.mubr.msk.f32.mxu1 %vm4596_vm7, %v10011_v18  ;;  %v10014_v45 = vld [vmem:[%s15131_s6 + $0xf8] sm:$0xff]  ;;  %v10218_v18 = vld [vmem:[%s15131_s6 + $0x288] sm:$0xff] }
 0xdff   :  { %12113 = vmatprep.subr.bf16.mxu1 %v14387_v55 }
 0xe01   :  { %11504 = vmatmul.mubr.msk.f32.gmra.mrb[44].mxu1 %vm4596_vm7, %v10012_v48  ;;  %v10219_v48 = vld [vmem:[%s15131_s6 + $0x290] sm:$0xff] }
 0xe02   :  { %11506 = vmatprep.mubr.msk.f32.mxu1 %vm4596_vm7, %v10013_v21  ;;  %v10220_v21 = vld [vmem:[%s15131_s6 + $0x298] sm:$0xff] }
 0xe05   :  { %11507 = vmatmul.mubr.msk.f32.gmra.mrb[46].mxu1 %vm4596_vm7, %v10014_v45  ;;  %v10221_v45 = vld [vmem:[%s15131_s6 + $0x2a0] sm:$0xff] }
 0xe06   :  { %11529 = vmatprep.mubr.msk.f32.mxu1 %vm4596_vm7, %v10037_v22  ;;  %v10223_v22 = vld [vmem:[%s15131_s6 + $0x2b0] sm:$0xff] }
 0xe09   :  { %11530 = vmatmul.mubr.msk.f32.vlgmr.msra.gmra.mrb[40].mxu1 %vm4596_vm7, %v10038_v24  ;;  %v10247_v24 = vld [vmem:[%s15131_s6 + $0x2c0] sm:$0xff] }
 0xe0a   :  { %12115 = vmatpush3.bf16.msra.mxu1 %v14387_v55  ;;  %11532 = vmatprep.mubr.msk.f32.mxu1 %vm4596_vm7, %v10039_v26  ;;  %v10042_v55 = vld [vmem:[%s15131_s6 + $0x128] sm:$0xff] }
 0xe0b   :  { %12117 = vmatprep.subr.bf16.mxu1 %v14385_v53  ;;  %v10248_v26 = vld [vmem:[%s15131_s6 + $0x2c8] sm:$0xff] }
 0xe0d   :  { %11533 = vmatmul.mubr.msk.f32.gmra.mrb[42].mxu1 %vm4596_vm7, %v10040_v30  ;;  %v10249_v30 = vld [vmem:[%s15131_s6 + $0x2d0] sm:$0xff] }
 0xe0e   :  { %12119 = vmatpush3.bf16.msra.mxu1 %v14385_v53  ;;  %11535 = vmatprep.mubr.msk.f32.mxu1 %vm4596_vm7, %v10041_v34  ;;  %v10044_v53 = vld [vmem:[%s15131_s6 + $0x138] sm:$0xff] }
 0xe0f   :  { %12121 = vmatprep.subr.bf16.mxu1 %v14391_v63  ;;  %v10250_v34 = vld [vmem:[%s15131_s6 + $0x2d8] sm:$0xff] }
 0xe11   :  { %11536 = vmatmul.mubr.msk.f32.gmra.mrb[44].mxu1 %vm4596_vm7, %v10042_v55  ;;  %v10251_v55 = vld [vmem:[%s15131_s6 + $0x2e0] sm:$0xff] }
 0xe12   :  { %11538 = vmatprep.mubr.msk.f32.mxu1 %vm4596_vm7, %v10043_v35  ;;  %v10253_v35 = vld [vmem:[%s15131_s6 + $0x2f0] sm:$0xff] }
 0xe15   :  { %11539 = vmatmul.mubr.msk.f32.gmra.mrb[46].mxu1 %vm4596_vm7, %v10044_v53  ;;  %v10277_v53 = vld [vmem:[%s15131_s6 + $0x300] sm:$0xff] }
 0xe16   :  { %11561 = vmatprep.mubr.msk.f32.mxu1 %vm4596_vm7, %v10067_v36  ;;  %v10278_v36 = vld [vmem:[%s15131_s6 + $0x308] sm:$0xff] }
 0xe19   :  { %11562 = vmatmul.mubr.msk.f32.vlgmr.msra.gmra.mrb[40].mxu1 %vm4596_vm7, %v10068_v38  ;;  %v10279_v38 = vld [vmem:[%s15131_s6 + $0x310] sm:$0xff] }
 0xe1a   :  { %12123 = vmatpush3.bf16.msra.mxu1 %v14391_v63  ;;  %11564 = vmatprep.mubr.msk.f32.mxu1 %vm4596_vm7, %v10069_v41  ;;  %v10072_v63 = vld [vmem:[%s15131_s6 + $0x168] sm:$0xff]  ;;  %v10280_v41 = vld [vmem:[%s15131_s6 + $0x318] sm:$0xff] }
 0xe1b   :  { %12125 = vmatprep.subr.bf16.mxu1 %v14389_v61 }
 0xe1d   :  { %11565 = vmatmul.mubr.msk.f32.gmra.mrb[42].mxu1 %vm4596_vm7, %v10070_v13  ;;  %v10281_v13 = vld [vmem:[%s15131_s6 + $0x320] sm:$0xff] }
 0xe1e   :  { %12127 = vmatpush3.bf16.msra.mxu1 %v14389_v61  ;;  %11567 = vmatprep.mubr.msk.f32.mxu1 %vm4596_vm7, %v10071_v42  ;;  %v10074_v61 = vld [vmem:[%s15131_s6 + $0x178] sm:$0xff]  ;;  %v10283_v42 = vld [vmem:[%s15131_s6 + $0x330] sm:$0xff] }
 0xe1f   :  { %12129 = vmatprep.subr.bf16.mxu1 %v14395_v23 }
 0xe21   :  { %11568 = vmatmul.mubr.msk.f32.gmra.mrb[44].mxu1 %vm4596_vm7, %v10072_v63  ;;  %v10307_v63 = vld [vmem:[%s15131_s6 + $0x340] sm:$0xff] }
 0xe22   :  { %11570 = vmatprep.mubr.msk.f32.mxu1 %vm4596_vm7, %v10073_v44  ;;  %v10308_v44 = vld [vmem:[%s15131_s6 + $0x348] sm:$0xff] }
 0xe25   :  { %11571 = vmatmul.mubr.msk.f32.gmra.mrb[46].mxu1 %vm4596_vm7, %v10074_v61  ;;  %v10309_v61 = vld [vmem:[%s15131_s6 + $0x350] sm:$0xff] }
 0xe26   :  { %11593 = vmatprep.mubr.msk.f32.mxu1 %vm4596_vm7, %v10097_v47  ;;  %v10310_v47 = vld [vmem:[%s15131_s6 + $0x358] sm:$0xff] }
 0xe29   :  { %11594 = vmatmul.mubr.msk.f32.vlgmr.msra.gmra.mrb[40].mxu1 %vm4596_vm7, %v10098_v39  ;;  %v10311_v39 = vld [vmem:[%s15131_s6 + $0x360] sm:$0xff] }
 0xe2a   :  { %12131 = vmatpush3.bf16.msra.mxu1 %v14395_v23  ;;  %11596 = vmatprep.mubr.msk.f32.mxu1 %vm4596_vm7, %v10099_v49  ;;  %v10102_v23 = vld [vmem:[%s15131_s6 + $0x1a8] sm:$0xff]  ;;  %v10313_v49 = vld [vmem:[%s15131_s6 + $0x370] sm:$0xff] }
 0xe2b   :  { %12133 = vmatprep.subr.bf16.mxu1 %v14393_v12 }
 0xe2d   :  { %11597 = vmatmul.mubr.msk.f32.gmra.mrb[42].mxu1 %vm4596_vm7, %v10100_v51  ;;  %v10337_v51 = vld [vmem:[%s15131_s6 + $0x380] sm:$0xff] }
 0xe2e   :  { %12135 = vmatpush3.bf16.msra.mxu1 %v14393_v12  ;;  %11599 = vmatprep.mubr.msk.f32.mxu1 %vm4596_vm7, %v10101_v46  ;;  %v10104_v12 = vld [vmem:[%s15131_s6 + $0x1b8] sm:$0xff]  ;;  %v10338_v46 = vld [vmem:[%s15131_s6 + $0x388] sm:$0xff] }
 0xe2f   :  { %12137 = vmatprep.subr.bf16.mxu1 %v14399_v7 }
 0xe31   :  { %11600 = vmatmul.mubr.msk.f32.gmra.mrb[44].mxu1 %vm4596_vm7, %v10102_v23  ;;  %v10339_v23 = vld [vmem:[%s15131_s6 + $0x390] sm:$0xff] }
 0xe32   :  { %11602 = vmatprep.mubr.msk.f32.mxu1 %vm4596_vm7, %v10103_v54  ;;  %v10340_v54 = vld [vmem:[%s15131_s6 + $0x398] sm:$0xff] }
 0xe35   :  { %11603 = vmatmul.mubr.msk.f32.gmra.mrb[46].mxu1 %vm4596_vm7, %v10104_v12  ;;  %v10341_v12 = vld [vmem:[%s15131_s6 + $0x3a0] sm:$0xff] }
 0xe36   :  { %11625 = vmatprep.mubr.msk.f32.mxu1 %vm4596_vm7, %v10127_v56  ;;  %v10343_v56 = vld [vmem:[%s15131_s6 + $0x3b0] sm:$0xff] }
 0xe39   :  { %11626 = vmatmul.mubr.msk.f32.vlgmr.msra.gmra.mrb[40].mxu1 %vm4596_vm7, %v10128_v59  ;;  %v10344_v59 = vld [vmem:[%s15131_s6 + $0x3b8] sm:$0xff] }
 0xe3a   :  { %12139 = vmatpush3.bf16.msra.mxu1 %v14399_v7  ;;  %11628 = vmatprep.mubr.msk.f32.mxu1 %vm4596_vm7, %v10129_v6  ;;  %v10132_v7 = vld [vmem:[%s15131_s6 + $0x1e8] sm:$0xff] }
 0xe3b   :  { %12141 = vmatprep.subr.bf16.mxu1 %v14397_v4  ;;  %v10368_v6 = vld [vmem:[%s15131_s6 + $0x3c8] sm:$0xff] }
 0xe3d   :  { %11629 = vmatmul.mubr.msk.f32.gmra.mrb[42].mxu1 %vm4596_vm7, %v10130_v0  ;;  %v10369_v0 = vld [vmem:[%s15131_s6 + $0x3d0] sm:$0xff] }
 0xe3e   :  { %12143 = vmatpush3.bf16.msra.mxu1 %v14397_v4  ;;  %11631 = vmatprep.mubr.msk.f32.mxu1 %vm4596_vm7, %v10131_v2  ;;  %v10134_v4 = vld [vmem:[%s15131_s6 + $0x1f8] sm:$0xff] }
 0xe3f   :  { %12145 = vmatprep.subr.bf16.mxu1 %v14403_v14  ;;  %v10370_v2 = vld [vmem:[%s15131_s6 + $0x3d8] sm:$0xff] }
 0xe41   :  { %11632 = vmatmul.mubr.msk.f32.gmra.mrb[44].mxu1 %vm4596_vm7, %v10132_v7  ;;  %v10371_v7 = vld [vmem:[%s15131_s6 + $0x3e0] sm:$0xff] }
 0xe42   :  { %11634 = vmatprep.mubr.msk.f32.mxu1 %vm4596_vm7, %v10133_v3  ;;  %v10372_v3 = vld [vmem:[%s15131_s6 + $0x3e8] sm:$0xff] }
 0xe45   :  { %11635 = vmatmul.mubr.msk.f32.gmra.mrb[46].mxu1 %vm4596_vm7, %v10134_v4  ;;  %v10373_v4 = vld [vmem:[%s15131_s6 + $0x3f0] sm:$0xff] }
 0xe46   :  { %11657 = vmatprep.mubr.msk.f32.mxu1 %vm4596_vm7, %v10157_v25  ;;  %v10374_v25 = vld [vmem:[%s15131_s6 + $0x3f8] sm:$0xff] }
 0xe49   :  { %11658 = vmatmul.mubr.msk.f32.vlgmr.msra.gmra.mrb[40].mxu1 %vm4596_vm7, %v10158_v28 }
 0xe4a   :  { %12147 = vmatpush3.bf16.msra.mxu1 %v14403_v14  ;;  %11660 = vmatprep.mubr.msk.f32.mxu1 %vm4596_vm7, %v10159_v29  ;;  %v10162_v14 = vld [vmem:[%s15131_s6 + $0x228] sm:$0xff] }
 0xe4b   :  { %12149 = vmatprep.subr.bf16.mxu1 %v14401_v10 }
 0xe4d   :  { %11661 = vmatmul.mubr.msk.f32.gmra.mrb[42].mxu1 %vm4596_vm7, %v10160_v5 }
 0xe4e   :  { %12151 = vmatpush3.bf16.msra.mxu1 %v14401_v10  ;;  %11663 = vmatprep.mubr.msk.f32.mxu1 %vm4596_vm7, %v10161_v8  ;;  %v10164_v10 = vld [vmem:[%s15131_s6 + $0x238] sm:$0xff] }
 0xe4f   :  { %12153 = vmatprep.subr.bf16.mxu1 %v14407_v19 }
 0xe51   :  { %11664 = vmatmul.mubr.msk.f32.gmra.mrb[44].mxu1 %vm4596_vm7, %v10162_v14 }
 0xe52   :  { %11666 = vmatprep.mubr.msk.f32.mxu1 %vm4596_vm7, %v10163_v9 }
 0xe55   :  { %11667 = vmatmul.mubr.msk.f32.gmra.mrb[46].mxu1 %vm4596_vm7, %v10164_v10 }
 0xe56   :  { %11689 = vmatprep.mubr.msk.f32.mxu1 %vm4596_vm7, %v10187_v31 }
 0xe59   :  { %11690 = vmatmul.mubr.msk.f32.vlgmr.msra.gmra.mrb[40].mxu1 %vm4596_vm7, %v10188_v20 }
 0xe5a   :  { %12155 = vmatpush3.bf16.msra.mxu1 %v14407_v19  ;;  %11692 = vmatprep.mubr.msk.f32.mxu1 %vm4596_vm7, %v10189_v27  ;;  %v10192_v19 = vld [vmem:[%s15131_s6 + $0x268] sm:$0xff] }
 0xe5b   :  { %12157 = vmatprep.subr.bf16.mxu1 %v14405_v17 }
 0xe5d   :  { %11693 = vmatmul.mubr.msk.f32.gmra.mrb[42].mxu1 %vm4596_vm7, %v10190_v11 }
 0xe5e   :  { %12159 = vmatpush3.bf16.msra.mxu1 %v14405_v17  ;;  %11695 = vmatprep.mubr.msk.f32.mxu1 %vm4596_vm7, %v10191_v15  ;;  %v10194_v17 = vld [vmem:[%s15131_s6 + $0x278] sm:$0xff] }
 0xe5f   :  { %12161 = vmatprep.subr.bf16.mxu1 %v14415_v33 }
 0xe61   :  { %11696 = vmatmul.mubr.msk.f32.gmra.mrb[44].mxu1 %vm4596_vm7, %v10192_v19 }
 0xe62   :  { %11698 = vmatprep.mubr.msk.f32.mxu1 %vm4596_vm7, %v10193_v32 }
 0xe65   :  { %11699 = vmatmul.mubr.msk.f32.gmra.mrb[46].mxu1 %vm4596_vm7, %v10194_v17 }
 0xe66   :  { %11721 = vmatprep.mubr.msk.f32.mxu1 %vm4596_vm7, %v10217_v16 }
 0xe69   :  { %11722 = vmatmul.mubr.msk.f32.vlgmr.msra.gmra.mrb[40].mxu1 %vm4596_vm7, %v10218_v18  ;;  %v8497_v18 = vld [vmem:[%s15132_s7] sm:$0xff] }
 0xe6a   :  { %12163 = vmatpush3.bf16.msra.mxu1 %v14415_v33  ;;  %11724 = vmatprep.mubr.msk.f32.mxu1 %vm4596_vm7, %v10219_v48  ;;  %v10222_v33 = vld [vmem:[%s15131_s6 + $0x2a8] sm:$0xff] }
 0xe6b   :  { %12165 = vmatprep.subr.bf16.mxu1 %v14413_v60  ;;  %11909 = vmatprep.mubr.msk.f32.mxu0 %vm4583_vm6, %v8497_v18 }
 0xe6d   :  { %11725 = vmatmul.mubr.msk.f32.gmra.mrb[42].mxu1 %vm4596_vm7, %v10220_v21 }
 0xe6e   :  { %12167 = vmatpush3.bf16.msra.mxu1 %v14413_v60  ;;  %11727 = vmatprep.mubr.msk.f32.mxu1 %vm4596_vm7, %v10221_v45  ;;  %v10224_v60 = vld [vmem:[%s15131_s6 + $0x2b8] sm:$0xff] }
 0xe6f   :  { %12169 = vmatprep.subr.bf16.mxu1 %v14419_v40 }
 0xe71   :  { %11728 = vmatmul.mubr.msk.f32.gmra.mrb[44].mxu1 %vm4596_vm7, %v10222_v33 }
 0xe72   :  { %11730 = vmatprep.mubr.msk.f32.mxu1 %vm4596_vm7, %v10223_v22 }
 0xe75   :  { %11731 = vmatmul.mubr.msk.f32.gmra.mrb[46].mxu1 %vm4596_vm7, %v10224_v60 }
 0xe76   :  { %11753 = vmatprep.mubr.msk.f32.mxu1 %vm4596_vm7, %v10247_v24 }
 0xe79   :  { %11754 = vmatmul.mubr.msk.f32.vlgmr.msra.gmra.mrb[40].mxu1 %vm4596_vm7, %v10248_v26 }
 0xe7a   :  { %12171 = vmatpush3.bf16.msra.mxu1 %v14419_v40  ;;  %11756 = vmatprep.mubr.msk.f32.mxu1 %vm4596_vm7, %v10249_v30  ;;  %v10252_v40 = vld [vmem:[%s15131_s6 + $0x2e8] sm:$0xff] }
 0xe7b   :  { %12173 = vmatprep.subr.bf16.mxu1 %v14417_v37 }
 0xe7d   :  { %11757 = vmatmul.mubr.msk.f32.gmra.mrb[42].mxu1 %vm4596_vm7, %v10250_v34 }
 0xe7e   :  { %12175 = vmatpush3.bf16.msra.mxu1 %v14417_v37  ;;  %11759 = vmatprep.mubr.msk.f32.mxu1 %vm4596_vm7, %v10251_v55  ;;  %v10254_v37 = vld [vmem:[%s15131_s6 + $0x2f8] sm:$0xff] }
 0xe7f   :  { %12177 = vmatprep.subr.bf16.mxu1 %v14423_v58 }
 0xe81   :  { %11760 = vmatmul.mubr.msk.f32.gmra.mrb[44].mxu1 %vm4596_vm7, %v10252_v40 }
 0xe82   :  { %11762 = vmatprep.mubr.msk.f32.mxu1 %vm4596_vm7, %v10253_v35  ;;  %v14968_v35 = vld [vmem:[%s15132_s7 + $0x8] sm:$0xff] }
 0xe85   :  { %11763 = vmatmul.mubr.msk.f32.gmra.mrb[46].mxu1 %vm4596_vm7, %v10254_v37  ;;  %v14973_v37 = vld [vmem:[%s15132_s7 + $0x10] sm:$0xff] }
 0xe86   :  { %11785 = vmatprep.mubr.msk.f32.mxu1 %vm4596_vm7, %v10277_v53  ;;  %v14982_v53 = vld [vmem:[%s15132_s7 + $0x18] sm:$0xff] }
 0xe89   :  { %11786 = vmatmul.mubr.msk.f32.vlgmr.msra.gmra.mrb[40].mxu1 %vm4596_vm7, %v10278_v36  ;;  %v14987_v36 = vld [vmem:[%s15132_s7 + $0x20] sm:$0xff] }
 0xe8a   :  { %12179 = vmatpush3.bf16.msra.mxu1 %v14423_v58  ;;  %11788 = vmatprep.mubr.msk.f32.mxu1 %vm4596_vm7, %v10279_v38  ;;  %v10282_v58 = vld [vmem:[%s15131_s6 + $0x328] sm:$0xff] }
 0xe8b   :  { %12181 = vmatprep.subr.bf16.mxu1 %v14421_v43  ;;  %v14996_v38 = vld [vmem:[%s15132_s7 + $0x28] sm:$0xff] }
 0xe8d   :  { %11789 = vmatmul.mubr.msk.f32.gmra.mrb[42].mxu1 %vm4596_vm7, %v10280_v41  ;;  %v15001_v41 = vld [vmem:[%s15132_s7 + $0x30] sm:$0xff] }
 0xe8e   :  { %12183 = vmatpush3.bf16.msra.mxu1 %v14421_v43  ;;  %11791 = vmatprep.mubr.msk.f32.mxu1 %vm4596_vm7, %v10281_v13  ;;  %v10284_v43 = vld [vmem:[%s15131_s6 + $0x338] sm:$0xff] }
 0xe8f   :  { %12185 = vmatprep.subr.bf16.mxu1 %v14427_v52  ;;  %v15010_v13 = vld [vmem:[%s15132_s7 + $0x38] sm:$0xff] }
 0xe91   :  { %11792 = vmatmul.mubr.msk.f32.gmra.mrb[44].mxu1 %vm4596_vm7, %v10282_v58 }
 0xe92   :  { %11794 = vmatprep.mubr.msk.f32.mxu1 %vm4596_vm7, %v10283_v42 }
 0xe95   :  { %11795 = vmatmul.mubr.msk.f32.gmra.mrb[46].mxu1 %vm4596_vm7, %v10284_v43 }
 0xe96   :  { %11817 = vmatprep.mubr.msk.f32.mxu1 %vm4596_vm7, %v10307_v63 }
 0xe99   :  { %11818 = vmatmul.mubr.msk.f32.vlgmr.msra.gmra.mrb[40].mxu1 %vm4596_vm7, %v10308_v44 }
 0xe9a   :  { %12187 = vmatpush3.bf16.msra.mxu1 %v14427_v52  ;;  %11820 = vmatprep.mubr.msk.f32.mxu1 %vm4596_vm7, %v10309_v61  ;;  %v10312_v52 = vld [vmem:[%s15131_s6 + $0x368] sm:$0xff] }
 0xe9b   :  { %12189 = vmatprep.subr.bf16.mxu1 %v14425_v50 }
 0xe9d   :  { %11821 = vmatmul.mubr.msk.f32.gmra.mrb[42].mxu1 %vm4596_vm7, %v10310_v47 }
 0xe9e   :  { %12191 = vmatpush3.bf16.msra.mxu1 %v14425_v50  ;;  %11823 = vmatprep.mubr.msk.f32.mxu1 %vm4596_vm7, %v10311_v39  ;;  %v10314_v50 = vld [vmem:[%s15131_s6 + $0x378] sm:$0xff] }
 0xe9f   :  { %12193 = vmatprep.subr.bf16.mxu1 %v14431_v62 }
 0xea1   :  { %11824 = vmatmul.mubr.msk.f32.gmra.mrb[44].mxu1 %vm4596_vm7, %v10312_v52 }
 0xea2   :  { %11826 = vmatprep.mubr.msk.f32.mxu1 %vm4596_vm7, %v10313_v49 }
 0xea5   :  { %11827 = vmatmul.mubr.msk.f32.gmra.mrb[46].mxu1 %vm4596_vm7, %v10314_v50 }
 0xea6   :  { %11849 = vmatprep.mubr.msk.f32.mxu1 %vm4596_vm7, %v10337_v51 }
 0xea9   :  { %11850 = vmatmul.mubr.msk.f32.vlgmr.msra.gmra.mrb[40].mxu1 %vm4596_vm7, %v10338_v46 }
 0xeaa   :  { %12195 = vmatpush3.bf16.msra.mxu1 %v14431_v62  ;;  %11852 = vmatprep.mubr.msk.f32.mxu1 %vm4596_vm7, %v10339_v23  ;;  %v10342_v62 = vld [vmem:[%s15131_s6 + $0x3a8] sm:$0xff] }
 0xeab   :  { %12197 = vmatprep.subr.bf16.mxu1 %v14429_v57 }
 0xead   :  { %11853 = vmatmul.mubr.msk.f32.gmra.mrb[42].mxu1 %vm4596_vm7, %v10340_v54 }
 0xeae   :  { %12199 = vmatpush3.bf16.msra.mxu1 %v14429_v57  ;;  %11855 = vmatprep.mubr.msk.f32.mxu1 %vm4596_vm7, %v10341_v12  ;;  %v10367_v57 = vld [vmem:[%s15131_s6 + $0x3c0] sm:$0xff] }
 0xeb1   :  { %11856 = vmatmul.mubr.msk.f32.gmra.mrb[44].mxu1 %vm4596_vm7, %v10342_v62 }
 0xeb2   :  { %11858 = vmatprep.mubr.msk.f32.mxu1 %vm4596_vm7, %v10343_v56 }
 0xeb5   :  { %11859 = vmatmul.mubr.msk.f32.gmra.mrb[46].mxu1 %vm4596_vm7, %v10344_v59 }
 0xeb6   :  { %11881 = vmatprep.mubr.msk.f32.mxu1 %vm4596_vm7, %v10367_v57 }
 0xeb9   :  { %11882 = vmatmul.mubr.msk.f32.vlgmr.msra.gmra.mrb[40].mxu1 %vm4596_vm7, %v10368_v6 }
 0xeba   :  { %11884 = vmatprep.mubr.msk.f32.mxu1 %vm4596_vm7, %v10369_v0 }
 0xebd   :  { %11885 = vmatmul.mubr.msk.f32.gmra.mrb[42].mxu1 %vm4596_vm7, %v10370_v2 }
 0xebe   :  { %11887 = vmatprep.mubr.msk.f32.mxu1 %vm4596_vm7, %v10371_v7 }
 0xec1   :  { %11888 = vmatmul.mubr.msk.f32.gmra.mrb[44].mxu1 %vm4596_vm7, %v10372_v3 }
 0xec2   :  { %11890 = vmatprep.mubr.msk.f32.mxu1 %vm4596_vm7, %v10373_v4 }
 0xec5   :  { %11891 = vmatmul.mubr.msk.f32.gmra.mrb[46].mxu1 %vm4596_vm7, %v10374_v25 }
 0xec6   :  { %11965 = vmatprep.mubr.msk.f32.mxu1 %vm12811_vm4, %v12808_v1  ;;  %v8963_v1 = vld [vmem:[%s15134_s9] sm:$0x3] }
 0xf8c   :  { %v14929_v28 = vpop.f32.mrb[40].mxu1 }
 0xf8d   :  { %v14931_v29 = vpop.f32.mrb[41].mxu1  ;;  %v8508_v5 = vsel %vm520_vm5, %v14929_v28, 0.0 }
 0xf8e   :  { %8509 = vadd.xlane.f32.xlu0 %v8508_v5  ;;  %v8505_v8 = vsel %vm520_vm5, %v14931_v29, 0.0 }
 0xf8f   :  { %8506 = vadd.xlane.f32.xlu1 %v8505_v8 }
 0xf90   :  { %v14937_v14 = vpop.f32.mrb[42].mxu1 }
 0xf91   :  { %v14939_v9 = vpop.f32.mrb[43].mxu1  ;;  %v8514_v10 = vsel %vm520_vm5, %v14937_v14, 0.0 }
 0xf92   :  { %v8511_v31 = vsel %vm520_vm5, %v14939_v9, 0.0 }
 0xf93   :  { %8515 = vadd.xlane.f32.xlu1 %v8514_v10  ;;  %8512 = vadd.xlane.f32.xlu0 %v8511_v31 }
 0xf94   :  { %v14945_v20 = vpop.f32.mrb[44].mxu1 }
 0xf95   :  { %v14947_v27 = vpop.f32.mrb[45].mxu1  ;;  %v8520_v11 = vsel %vm520_vm5, %v14945_v20, 0.0 }
 0xf96   :  { %v8517_v15 = vsel %vm520_vm5, %v14947_v27, 0.0 }
 0xf97   :  { %8521 = vadd.xlane.f32.xlu1 %v8520_v11  ;;  %8518 = vadd.xlane.f32.xlu0 %v8517_v15 }
 0xf98   :  { %v14953_v19 = vpop.f32.mrb[46].mxu1 }
 0xf99   :  { %v14955_v32 = vpop.f32.mrb[47].mxu1  ;;  %v8526_v17 = vsel %vm520_vm5, %v14953_v19, 0.0 }
 0xf9a   :  { %v8523_v16 = vsel %vm520_vm5, %v14955_v32, 0.0 }
 0xf9b   :  { %8527 = vadd.xlane.f32.xlu1 %v8526_v17  ;;  %8524 = vadd.xlane.f32.xlu0 %v8523_v16 }
0x101b   :  { %v8510_v48 = vpop.xlane.xlu0 %8509 }
0x101c   :  { %v8507_v21 = vpop.xlane.xlu1 %8506 }
0x101d   :  { %v12200_v45 = vpack.c.bf16 %v8510_v48, %v8507_v21 }
0x101f   :  { %12201 = vmatprep.subr.bf16.mxu0 %v12200_v45 }
0x1020   :  { %12203 = vmatpush3.bf16.msra.mxu0 %v12200_v45  ;;  %v8516_v33 = vpop.xlane.xlu1 %8515  ;;  %v8513_v22 = vpop.xlane.xlu0 %8512 }
0x1021   :  { %v12204_v60 = vpack.c.bf16 %v8516_v33, %v8513_v22 }
0x1023   :  { %12205 = vmatprep.subr.bf16.mxu0 %v12204_v60 }
0x1024   :  { %12207 = vmatpush3.bf16.msra.mxu0 %v12204_v60  ;;  %v8522_v24 = vpop.xlane.xlu1 %8521  ;;  %v8519_v26 = vpop.xlane.xlu0 %8518 }
0x1025   :  { %v12208_v30 = vpack.c.bf16 %v8522_v24, %v8519_v26 }
0x1027   :  { %12209 = vmatprep.subr.bf16.mxu0 %v12208_v30 }
0x1028   :  { %12211 = vmatpush3.bf16.msra.mxu0 %v12208_v30  ;;  %v8528_v34 = vpop.xlane.xlu1 %8527  ;;  %v8525_v55 = vpop.xlane.xlu0 %8524 }
0x1029   :  { %v12212_v40 = vpack.c.bf16 %v8528_v34, %v8525_v55 }
0x102b   :  { %12213 = vmatprep.subr.bf16.mxu0 %v12212_v40 }
0x102c   :  { %12215 = vmatpush3.bf16.msra.mxu0 %v12212_v40 }
0x102f   :  { %11910 = vmatmul.mubr.msk.f32.vlgmr.msra.gmra.mrb[104].mxu0 %vm4583_vm6, %v14968_v35 }
0x1030   :  { %11912 = vmatprep.mubr.msk.f32.mxu0 %vm4583_vm6, %v14973_v37 }
0x1033   :  { %11913 = vmatmul.mubr.msk.f32.gmra.mrb[106].mxu0 %vm4583_vm6, %v14982_v53 }
0x1034   :  { %11915 = vmatprep.mubr.msk.f32.mxu0 %vm4583_vm6, %v14987_v36 }
0x1037   :  { %11916 = vmatmul.mubr.msk.f32.gmra.mrb[108].mxu0 %vm4583_vm6, %v14996_v38 }
0x1038   :  { %11918 = vmatprep.mubr.msk.f32.mxu0 %vm4583_vm6, %v15001_v41 }
0x103b   :  { %11919 = vmatmul.mubr.msk.f32.gmra.mrb[110].mxu0 %vm4583_vm6, %v15010_v13 }
0x103c   :  { %11937 = vmatprep.mubr.msk.f32.mxu0 %vm4583_vm6, %v8497_v18 }
0x1102   :  { %v11911_v58 = vpop.f32.mrb[104].mxu0 }
0x1103   :  { %8665 = vperm.xlu1 %12441, %v11911_v58   ;;  %v8619_v42 = vpop.f32.mrb[105].mxu0 }
0x1104   :  { %8660 = vperm.xlu0 %12440, %v8619_v42  }
0x1106   :  { %v11914_v43 = vpop.f32.mrb[106].mxu0 }
0x1107   :  { %v8629_v63 = vpop.f32.mrb[107].mxu0 }
0x1108   :  { %8675 = vperm.xlu0 %12440, %v11914_v43   ;;  %8670 = vperm.xlu1 %12441, %v8629_v63  }
0x110a   :  { %v11917_v44 = vpop.f32.mrb[108].mxu0 }
0x110b   :  { %v8639_v61 = vpop.f32.mrb[109].mxu0 }
0x110c   :  { %8685 = vperm.xlu0 %12440, %v11917_v44   ;;  %8680 = vperm.xlu1 %12441, %v8639_v61  }
0x110e   :  { %v11920_v47 = vpop.f32.mrb[110].mxu0 }
0x110f   :  { %v8649_v39 = vpop.f32.mrb[111].mxu0 }
0x1110   :  { %8695 = vperm.xlu0 %12440, %v11920_v47   ;;  %8690 = vperm.xlu1 %12441, %v8649_v39  }
0x1182   :  { %v8666_v52 = vpop.permute.xlu1 %8665 }
0x1183   :  { %v15016_v49 = vsub.f32 %v14929_v28, %v8666_v52  ;;  %v8661_v50 = vpop.permute.xlu0 %8660 }
0x1184   :  { %v15019_v51 = vsub.f32 %v14931_v29, %v8661_v50 }
0x1185   :  { %v8707_v46 = vmul.f32 %v15016_v49, %v15016_v49 }
0x1186   :  { %v8706_v23 = vmul.f32 %v15019_v51, %v15019_v51 }
0x1187   :  { %v8676_v54 = vpop.permute.xlu0 %8675  ;;  %v8671_v12 = vpop.permute.xlu1 %8670  ;;  %v8717_v62 = vsel %vm520_vm5, %v8707_v46, 0.0 }
0x1188   :  { %v15027_v56 = vsub.f32 %v14937_v14, %v8676_v54  ;;  %v15030_v59 = vsub.f32 %v14939_v9, %v8671_v12  ;;  %8718 = vadd.xlane.f32.xlu0 %v8717_v62  ;;  %v8714_v57 = vsel %vm520_vm5, %v8706_v23, 0.0 }
0x1189   :  { %8715 = vadd.xlane.f32.xlu1 %v8714_v57 }
0x118a   :  { %v8708_v6 = vmul.f32 %v15030_v59, %v15030_v59  ;;  %v8709_v0 = vmul.f32 %v15027_v56, %v15027_v56 }
0x118b   :  { %v8686_v2 = vpop.permute.xlu0 %8685  ;;  %v8681_v7 = vpop.permute.xlu1 %8680 }
0x118c   :  { %v15038_v3 = vsub.f32 %v14945_v20, %v8686_v2  ;;  %v15041_v4 = vsub.f32 %v14947_v27, %v8681_v7  ;;  %v8720_v25 = vsel %vm520_vm5, %v8708_v6, 0.0  ;;  %v8723_v28 = vsel %vm520_vm5, %v8709_v0, 0.0  ;;  %v8924_v2 = vld [vmem:[%s15133_s8 + $0x8] sm:$0xff] }
0x118d   :  { %8721 = vadd.xlane.f32.xlu0 %v8720_v25  ;;  %8724 = vadd.xlane.f32.xlu1 %v8723_v28  ;;  %v8923_v25 = vld [vmem:[%s15133_s8] sm:$0xff] }
0x118e   :  { %v8710_v29 = vmul.f32 %v15041_v4, %v15041_v4  ;;  %v8711_v5 = vmul.f32 %v15038_v3, %v15038_v3 }
0x118f   :  { %v8696_v8 = vpop.permute.xlu0 %8695  ;;  %v8691_v14 = vpop.permute.xlu1 %8690 }
0x1190   :  { %v15050_v9 = vsub.f32 %v14953_v19, %v8696_v8  ;;  %v15053_v10 = vsub.f32 %v14955_v32, %v8691_v14  ;;  %v8726_v31 = vsel %vm520_vm5, %v8710_v29, 0.0  ;;  %v8729_v20 = vsel %vm520_vm5, %v8711_v5, 0.0 }
0x1191   :  { %8727 = vadd.xlane.f32.xlu0 %v8726_v31  ;;  %8730 = vadd.xlane.f32.xlu1 %v8729_v20  ;;  %v8925_v20 = vld [vmem:[%s15133_s8 + $0x10] sm:$0xff] }
0x1192   :  { %v8713_v27 = vmul.f32 %v15050_v9, %v15050_v9  ;;  %v8712_v11 = vmul.f32 %v15053_v10, %v15053_v10 }
0x1194   :  { %v8735_v15 = vsel %vm520_vm5, %v8713_v27, 0.0  ;;  %v8732_v19 = vsel %vm520_vm5, %v8712_v11, 0.0 }
0x1195   :  { %8736 = vadd.xlane.f32.xlu1 %v8735_v15  ;;  %8733 = vadd.xlane.f32.xlu0 %v8732_v19 }
0x1215   :  { %v8719_v32 = vpop.xlane.xlu0 %8718 }
0x1216   :  { %v8716_v17 = vpop.xlane.xlu1 %8715 }
0x1217   :  { %v12216_v16 = vpack.c.bf16 %v8719_v32, %v8716_v17 }
0x1219   :  { %12217 = vmatprep.subr.bf16.mxu0 %v12216_v16 }
0x121a   :  { %v8722_v18 = vpop.xlane.xlu0 %8721  ;;  %12219 = vmatpush3.bf16.msra.mxu0 %v12216_v16  ;;  %v8725_v48 = vpop.xlane.xlu1 %8724 }
0x121b   :  { %v12220_v21 = vpack.c.bf16 %v8725_v48, %v8722_v18  ;;  %v8926_v18 = vld [vmem:[%s15133_s8 + $0x18] sm:$0xff] }
0x121d   :  { %12221 = vmatprep.subr.bf16.mxu0 %v12220_v21 }
0x121e   :  { %v8728_v45 = vpop.xlane.xlu0 %8727  ;;  %12223 = vmatpush3.bf16.msra.mxu0 %v12220_v21  ;;  %v8731_v33 = vpop.xlane.xlu1 %8730 }
0x121f   :  { %v12224_v22 = vpack.c.bf16 %v8731_v33, %v8728_v45  ;;  %v8927_v45 = vld [vmem:[%s15133_s8 + $0x20] sm:$0xff]  ;;  %v8928_v33 = vld [vmem:[%s15133_s8 + $0x28] sm:$0xff] }
0x1221   :  { %12225 = vmatprep.subr.bf16.mxu0 %v12224_v22 }
0x1222   :  { %v8734_v60 = vpop.xlane.xlu0 %8733  ;;  %12227 = vmatpush3.bf16.msra.mxu0 %v12224_v22  ;;  %v8737_v24 = vpop.xlane.xlu1 %8736 }
0x1223   :  { %v12228_v26 = vpack.c.bf16 %v8737_v24, %v8734_v60 }
0x1225   :  { %12229 = vmatprep.subr.bf16.mxu0 %v12228_v26 }
0x1226   :  { %12231 = vmatpush3.bf16.msra.mxu0 %v12228_v26 }
0x1229   :  { %11938 = vmatmul.mubr.msk.f32.vlgmr.msra.gmra.mrb[112].mxu0 %vm4583_vm6, %v14968_v35 }
0x122a   :  { %11940 = vmatprep.mubr.msk.f32.mxu0 %vm4583_vm6, %v14973_v37 }
0x122d   :  { %11941 = vmatmul.mubr.msk.f32.gmra.mrb[114].mxu0 %vm4583_vm6, %v14982_v53 }
0x122e   :  { %11943 = vmatprep.mubr.msk.f32.mxu0 %vm4583_vm6, %v14987_v36 }
0x1231   :  { %11944 = vmatmul.mubr.msk.f32.gmra.mrb[116].mxu0 %vm4583_vm6, %v14996_v38 }
0x1232   :  { %11946 = vmatprep.mubr.msk.f32.mxu0 %vm4583_vm6, %v15001_v41 }
0x1235   :  { %11947 = vmatmul.mubr.msk.f32.gmra.mrb[118].mxu0 %vm4583_vm6, %v15010_v13 }
0x12fc   :  { %v11939_v30 = vpop.f32.mrb[112].mxu0 }
0x12fd   :  { %v8810_v34 = vadd.f32 1e-05, %v11939_v30  ;;  %v8804_v55 = vpop.f32.mrb[113].mxu0 }
0x12fe   :  { %v8805_v40 = vadd.f32 1e-05, %v8804_v55 }
0x12ff   :  { %12788 = vrsqrt.f32 %v8810_v34 }
0x1300   :  { %12790 = vrsqrt.f32 %v8805_v40  ;;  %v11942_v35 = vpop.f32.mrb[114].mxu0 }
0x1301   :  { %v8820_v37 = vadd.f32 1e-05, %v11942_v35  ;;  %v8814_v53 = vpop.f32.mrb[115].mxu0 }
0x1302   :  { %v8815_v58 = vadd.f32 1e-05, %v8814_v53 }
0x1303   :  { %12792 = vrsqrt.f32 %v8820_v37 }
0x1304   :  { %12794 = vrsqrt.f32 %v8815_v58  ;;  %v11945_v36 = vpop.f32.mrb[116].mxu0  ;;  %v8929_v58 = vld [vmem:[%s15133_s8 + $0x30] sm:$0xff] }
0x1305   :  { %v8830_v38 = vadd.f32 1e-05, %v11945_v36  ;;  %v8824_v42 = vpop.f32.mrb[117].mxu0  ;;  %v8930_v36 = vld [vmem:[%s15133_s8 + $0x38] sm:$0xff] }
0x1306   :  { %v8825_v43 = vadd.f32 1e-05, %v8824_v42 }
0x1307   :  { %12796 = vrsqrt.f32 %v8830_v38 }
0x1308   :  { %12798 = vrsqrt.f32 %v8825_v43  ;;  %v11948_v41 = vpop.f32.mrb[118].mxu0 }
0x1309   :  { %v12789_v13 = vpop.eup %12788  ;;  %v8840_v63 = vadd.f32 1e-05, %v11948_v41  ;;  %v8834_v44 = vpop.f32.mrb[119].mxu0 }
0x130a   :  { %v12791_v61 = vpop.eup %12790  ;;  %v8835_v47 = vadd.f32 1e-05, %v8834_v44  ;;  %8858 = vperm.xlu1 %12441, %v12789_v13  }
0x130b   :  { %12800 = vrsqrt.f32 %v8840_v63  ;;  %8853 = vperm.xlu0 %12440, %v12791_v61  }
0x130c   :  { %12802 = vrsqrt.f32 %v8835_v47  ;;  %v12810_v47 = vmov 0.0|0.0  }
0x130d   :  { %v12793_v39 = vpop.eup %12792  ;;  %12232 = vmatprep.subr.bf16.mxu1 %v12810_v47 }
0x130e   :  { %v12795_v52 = vpop.eup %12794 }
0x130f   :  { %8863 = vperm.xlu1 %12441, %v12795_v52   ;;  %8868 = vperm.xlu0 %12440, %v12793_v39  }
0x1311   :  { %v12797_v50 = vpop.eup %12796 }
0x1312   :  { %v12799_v46 = vpop.eup %12798 }
0x1313   :  { %8873 = vperm.xlu1 %12441, %v12799_v46   ;;  %8878 = vperm.xlu0 %12440, %v12797_v50  }
0x1315   :  { %v12801_v23 = vpop.eup %12800 }
0x1316   :  { %v12803_v54 = vpop.eup %12802 }
0x1317   :  { %8883 = vperm.xlu1 %12441, %v12803_v54   ;;  %8888 = vperm.xlu0 %12440, %v12801_v23  }
0x1389   :  { %v8859_v12 = vpop.permute.xlu1 %8858 }
0x138a   :  { %v8892_v62 = vmul.f32 %v8859_v12, %v15016_v49  ;;  %v8854_v57 = vpop.permute.xlu0 %8853 }
0x138b   :  { %v8891_v6 = vmul.f32 %v8854_v57, %v15019_v51 }
0x138c   :  { %vm8900_vm12 = vcmp.ge.f32.partialorder %v8892_v62, 0.0  ;;  %v8908_v0 = vmul.f32 0.2, %v8892_v62 }
0x138d   :  { %vm8899_vm13 = vcmp.ge.f32.partialorder %v8891_v6, 0.0  ;;  %v8907_v7 = vmul.f32 0.2, %v8891_v6 }
0x138e   :  { %v8864_v28 = vpop.permute.xlu1 %8863  ;;  %v8869_v29 = vpop.permute.xlu0 %8868  ;;  %v8916_v5 = vsel %vm8900_vm12, %v8892_v62, %v8908_v0 }
0x138f   :  { %v8893_v49 = vmul.f32 %v8864_v28, %v15030_v59  ;;  %v8894_v8 = vmul.f32 %v8869_v29, %v15027_v56  ;;  %v8932_v51 = vmul.f32 %v8924_v2, %v8916_v5  ;;  %v8915_v14 = vsel %vm8899_vm13, %v8891_v6, %v8907_v7 }
0x1390   :  { %v8931_v31 = vmul.f32 %v8923_v25, %v8915_v14 }
0x1391   :  { %vm8901_vm14 = vcmp.ge.f32.partialorder %v8893_v49, 0.0  ;;  %v8909_v27 = vmul.f32 0.2, %v8893_v49  ;;  %vm8902_vm15 = vcmp.ge.f32.partialorder %v8894_v8, 0.0  ;;  %v8910_v11 = vmul.f32 0.2, %v8894_v8 }
0x1392   :  { %v8874_v15 = vpop.permute.xlu1 %8873  ;;  %v8942_v19 = vsel %vm520_vm5, %v8932_v51, 0.0  ;;  %v8879_v32 = vpop.permute.xlu0 %8878  ;;  %v8939_v17 = vsel %vm520_vm5, %v8931_v31, 0.0 }
0x1393   :  { %v8895_v59 = vmul.f32 %v8874_v15, %v15041_v4  ;;  %8943 = vadd.xlane.f32.xlu0 %v8942_v19  ;;  %v8896_v56 = vmul.f32 %v8879_v32, %v15038_v3  ;;  %8940 = vadd.xlane.f32.xlu1 %v8939_v17  ;;  %v8917_v16 = vsel %vm8901_vm14, %v8893_v49, %v8909_v27 }
0x1394   :  { %v8933_v48 = vmul.f32 %v8925_v20, %v8917_v16  ;;  %v8918_v21 = vsel %vm8902_vm15, %v8894_v8, %v8910_v11 }
0x1395   :  { %vm8903_vm0 = vcmp.ge.f32.partialorder %v8895_v59, 0.0  ;;  %v8911_v4 = vmul.f32 0.2, %v8895_v59  ;;  %vm8904_vm1 = vcmp.ge.f32.partialorder %v8896_v56, 0.0  ;;  %v8912_v3 = vmul.f32 0.2, %v8896_v56 }
0x1396   :  { %v8884_v22 = vpop.permute.xlu1 %8883  ;;  %v8889_v60 = vpop.permute.xlu0 %8888  ;;  %v8945_v24 = vsel %vm520_vm5, %v8933_v48, 0.0  ;;  %v8934_v26 = vmul.f32 %v8926_v18, %v8918_v21 }
0x1397   :  { %v8897_v30 = vmul.f32 %v8884_v22, %v15053_v10  ;;  %v8898_v34 = vmul.f32 %v8889_v60, %v15050_v9  ;;  %8946 = vadd.xlane.f32.xlu0 %v8945_v24  ;;  %v8919_v55 = vsel %vm8903_vm0, %v8895_v59, %v8911_v4  ;;  %v8920_v40 = vsel %vm8904_vm1, %v8896_v56, %v8912_v3 }
0x1398   :  { %v8948_v35 = vsel %vm520_vm5, %v8934_v26, 0.0  ;;  %v8935_v37 = vmul.f32 %v8927_v45, %v8919_v55  ;;  %v8936_v53 = vmul.f32 %v8928_v33, %v8920_v40 }
0x1399   :  { %vm8905_vm2 = vcmp.ge.f32.partialorder %v8897_v30, 0.0  ;;  %v8913_v38 = vmul.f32 0.2, %v8897_v30  ;;  %vm8906_vm3 = vcmp.ge.f32.partialorder %v8898_v34, 0.0  ;;  %v8914_v10 = vmul.f32 0.2, %v8898_v34  ;;  %8949 = vadd.xlane.f32.xlu1 %v8948_v35 }
0x139a   :  { %v8951_v9 = vsel %vm520_vm5, %v8935_v37, 0.0  ;;  %v8954_v42 = vsel %vm520_vm5, %v8936_v53, 0.0 }
0x139b   :  { %8952 = vadd.xlane.f32.xlu0 %v8951_v9  ;;  %v8921_v43 = vsel %vm8905_vm2, %v8897_v30, %v8913_v38  ;;  %v8922_v41 = vsel %vm8906_vm3, %v8898_v34, %v8914_v10 }
0x139c   :  { %v8937_v13 = vmul.f32 %v8929_v58, %v8921_v43  ;;  %v8938_v63 = vmul.f32 %v8930_v36, %v8922_v41 }
0x139d   :  { %8955 = vadd.xlane.f32.xlu1 %v8954_v42 }
0x139e   :  { %v8957_v44 = vsel %vm520_vm5, %v8937_v13, 0.0  ;;  %v8960_v61 = vsel %vm520_vm5, %v8938_v63, 0.0  ;;  %vm9043_vm5 = vcmask 1024  }
0x139f   :  { %8958 = vadd.xlane.f32.xlu0 %v8957_v44 }
0x13a1   :  { %8961 = vadd.xlane.f32.xlu1 %v8960_v61 }
0x1420   :  { %v8944_v39 = vpop.xlane.xlu0 %8943  ;;  %v8941_v52 = vpop.xlane.xlu1 %8940 }
0x1421   :  { %v12233_v50 = vpack.c.bf16 %v8944_v39, %v8941_v52 }
0x1423   :  { %12234 = vmatpush3.bf16.msra.mxu1 %v12233_v50 }
0x1424   :  { %v8947_v46 = vpop.xlane.xlu0 %8946  ;;  %12235 = vmatprep.subr.bf16.mxu1 %v12810_v47 }
0x1426   :  { %v8950_v23 = vpop.xlane.xlu1 %8949 }
0x1427   :  { %v12236_v54 = vpack.c.bf16 %v8950_v23, %v8947_v46 }
0x1428   :  { %v8953_v12 = vpop.xlane.xlu0 %8952 }
0x1429   :  { %12237 = vmatpush3.bf16.msra.mxu1 %v12236_v54 }
0x142a   :  { %v8956_v62 = vpop.xlane.xlu1 %8955  ;;  %12238 = vmatprep.subr.bf16.mxu1 %v12810_v47 }
0x142b   :  { %v12239_v57 = vpack.c.bf16 %v8956_v62, %v8953_v12 }
0x142c   :  { %v8959_v6 = vpop.xlane.xlu0 %8958 }
0x142d   :  { %12240 = vmatpush3.bf16.msra.mxu1 %v12239_v57 }
0x142e   :  { %v8962_v0 = vpop.xlane.xlu1 %8961  ;;  %12241 = vmatprep.subr.bf16.mxu1 %v12810_v47 }
0x142f   :  { %v12242_v2 = vpack.c.bf16 %v8962_v0, %v8959_v6 }
0x1431   :  { %12243 = vmatpush3.bf16.msra.mxu1 %v12242_v2 }
0x1434   :  { %11966 = vmatmul.mubr.msk.f32.vlgmr.msra.gmra.mrb[52].mxu1 %vm4583_vm6, %v8963_v1 }
0x1507   :  { %v9033_v7 = vpop.f32.mrb[52].mxu1 }
0x1508   :  { %v9037_v25 = vsub.f32 0.0, %v9033_v7  ;;  %v11967_v28 = vpop.f32.mrb[53].mxu1 }
0x150a   :  { %v9038_v29 = vmul.f32 1.442695, %v9037_v25 }
0x150c   :  { %12804 = vpow2.f32 %v9038_v29 }
0x1516   :  { %v12805_v5 = vpop.eup %12804 }
0x1517   :  { %v9040_v49 = vadd.f32 1.0, %v12805_v5 }
0x1519   :  { %12806 = vrcp.f32 %v9040_v49 }
0x1523   :  { %v12807_v8 = vpop.eup %12806 }
0x1524   :  { %9044 = vst.msk [vmem:[%s15135_s10] sm:$0x3] %vm9043_vm5, %v12807_v8 }

</bundles_post_ra>
